<compile_context>
chip_gen: v7x
topology: tpu7x:2x2x1
jax: 0.10.0
libtpu: 0.0.40
codegen_flags: <defaults>
</compile_context>

<pallas_src>
import jax
import jax.numpy as jnp
from jax.experimental import pallas as pl
from jax.experimental.pallas import tpu as pltpu

HIGHEST = jax.lax.Precision.HIGHEST


def _round_up(x, m):
    return ((x + m - 1) // m) * m


# ------------------------------------------------------------------ kernel ---
def _make_fused_kernel(S, H, num_layers, G):
    """Fused bidirectional multi-layer GRU + Linear + sigmoid (batch = 1).

    Gate column layout: 3 groups of G(=128) lanes [r | z | n]; inside each group
    [fwd (0:H) | bwd (H:2H) | zero pad (2H:G)].  The carried hidden state
    h = [h_fwd | h_bwd] is a (1, 2H) f32 row held in vregs.
    """
    HH = 2 * H

    def kernel(*refs):
        x_ref, xrev_ref = refs[0], refs[1]
        layer_refs = [refs[2 + 5 * l: 2 + 5 * (l + 1)] for l in range(num_layers)]
        base = 2 + 5 * num_layers
        wla_ref, wlb_ref, blin_ref = refs[base], refs[base + 1], refs[base + 2]
        out_ref = refs[base + 3]
        scr = refs[base + 4:]
        # (a_buf, arev_buf) ping-pong pairs:
        #   a_buf row t    = [h_f_t | h_b_t]
        #   arev_buf row t = a_buf row S-1-t
        bufs = [(scr[0], scr[1]), (scr[2], scr[3])]

        for li, (wa_ref, wb_ref, bih_ref, whh_ref, bhh_ref) in enumerate(layer_refs):
            a_buf, ar_buf = bufs[li & 1]
            if li == 0:
                a = x_ref[...]                                    # (S, E_pad) bf16
                arev = xrev_ref[...]
            else:
                pa_buf, par_buf = bufs[(li - 1) & 1]
                a = pa_buf[...].astype(jnp.bfloat16)              # (S, 2H)
                arev = par_buf[...].astype(jnp.bfloat16)

            # Input projection for BOTH directions, all timesteps (off the serial
            # chain): row t holds fwd gates from position t and bwd gates from
            # position S-1-t, columns [r | z | n], each group padded to G lanes.
            gi_all = (jnp.dot(a, wa_ref[...], preferred_element_type=jnp.float32)
                      + jnp.dot(arev, wb_ref[...], preferred_element_type=jnp.float32)
                      + bih_ref[...])                             # (S, 3G) f32

            whh = whh_ref[...]                                    # (2H, 3G) bf16
            bhh = bhh_ref[...]                                    # (1, 3G)  f32

            h = jnp.zeros((1, HH), jnp.float32)                   # h0 = 0 (as in module)
            for t in range(S):                                    # fully unrolled
                gh = (jnp.dot(h.astype(jnp.bfloat16), whh,
                              preferred_element_type=jnp.float32)
                      + bhh)                                      # (1, 3G)
                gi = gi_all[t:t + 1, :]
                # one fused EUP sigmoid for r and z; all slices 128-lane aligned
                rz = jax.nn.sigmoid(gi[:, 0:2 * G] + gh[:, 0:2 * G])
                r = rz[:, 0:G]
                z = rz[:, G:2 * G]
                n = jnp.tanh(gi[:, 2 * G:3 * G] + r * gh[:, 2 * G:3 * G])
                h = ((1.0 - z) * n)[:, 0:HH] + z[:, 0:HH] * h
                # off-chain single-sublane stores (idle store slot)
                a_buf[t:t + 1, :] = h
                ar_buf[S - 1 - t:S - t, :] = h

        # Classifier: Linear(2H -> class_num) + sigmoid; lane-dense (S, Cpad) store.
        la_buf, lar_buf = bufs[(num_layers - 1) & 1]
        y = (jnp.dot(la_buf[...].astype(jnp.bfloat16), wla_ref[...],
                     preferred_element_type=jnp.float32)
             + jnp.dot(lar_buf[...].astype(jnp.bfloat16), wlb_ref[...],
                       preferred_element_type=jnp.float32)
             + blin_ref[...])
        out_ref[...] = jax.nn.sigmoid(y)

    return kernel


# --------------------------------------------------------- weight packing ----
def _place_gate_cols(w_t, H, dir_idx, G):
    """(K, 3H) gate-ordered [r|z|n] -> (K, 3G) with this direction's columns placed."""
    K = w_t.shape[0]
    out = jnp.zeros((K, 3 * G), jnp.float32)
    for g in range(3):
        out = out.at[:, g * G + dir_idx * H: g * G + (dir_idx + 1) * H].set(
            w_t[:, g * H:(g + 1) * H])
    return out


def _place_gate_bias(b, H, dir_idx, G):
    out = jnp.zeros((1, 3 * G), jnp.float32)
    for g in range(3):
        out = out.at[0, g * G + dir_idx * H: g * G + (dir_idx + 1) * H].set(
            b[g * H:(g + 1) * H])
    return out


def _pack_layer(lp, H, G, first, e_pad):
    """Pack one layer's PyTorch-layout GRU params into the fused kernel layout.

    Returns (w_a, w_b, b_ih, w_hh, b_hh):
      w_a : applied to the layer input in original row order   (K, 3G) bf16
      w_b : applied to the layer input in reversed row order   (K, 3G) bf16
      b_ih, b_hh : (1, 3G) f32;  w_hh : (2H, 3G) bf16, rows [h_fwd | h_bwd]
    """
    wf, wb = lp["w_ih_f"].T, lp["w_ih_b"].T            # (E_in, 3H), gate cols [r|z|n]
    if first:
        w_a = _place_gate_cols(wf, H, 0, G)
        w_b = _place_gate_cols(wb, H, 1, G)
        pad = e_pad - w_a.shape[0]
        w_a = jnp.pad(w_a, ((0, pad), (0, 0)))
        w_b = jnp.pad(w_b, ((0, pad), (0, 0)))
    else:
        # Layer input rows (A / A_rev buffers): 0:H fwd hidden, H:2H bwd hidden.
        #   A row t     = [h_f_t       | h_b_t      ]
        #   A_rev row t = [h_f_{S-1-t} | h_b_{S-1-t}]
        # fwd gates at step t consume [h_f_t | h_b_{S-1-t}];
        # bwd gates at step t consume [h_f_{S-1-t} | h_b_t].
        w_a = jnp.concatenate([_place_gate_cols(wf[0:H], H, 0, G),
                               _place_gate_cols(wb[H:2 * H], H, 1, G)], axis=0)
        w_b = jnp.concatenate([_place_gate_cols(wb[0:H], H, 1, G),
                               _place_gate_cols(wf[H:2 * H], H, 0, G)], axis=0)
    w_hh = jnp.concatenate([_place_gate_cols(lp["w_hh_f"].T, H, 0, G),
                            _place_gate_cols(lp["w_hh_b"].T, H, 1, G)], axis=0)
    b_ih = (_place_gate_bias(lp["b_ih_f"], H, 0, G)
            + _place_gate_bias(lp["b_ih_b"], H, 1, G))
    b_hh = (_place_gate_bias(lp["b_hh_f"], H, 0, G)
            + _place_gate_bias(lp["b_hh_b"], H, 1, G))
    return (w_a.astype(jnp.bfloat16), w_b.astype(jnp.bfloat16), b_ih,
            w_hh.astype(jnp.bfloat16), b_hh)


def _pack_linear(w, b, H, c_pad):
    wt = w.T                                            # (2H, C), rows [fwd | bwd]
    C = wt.shape[1]
    wla = jnp.zeros((2 * H, c_pad), jnp.float32).at[0:H, 0:C].set(wt[0:H])
    wlb = jnp.zeros((2 * H, c_pad), jnp.float32).at[H:2 * H, 0:C].set(wt[H:2 * H])
    blin = jnp.zeros((1, c_pad), jnp.float32).at[0, 0:C].set(b)
    return wla.astype(jnp.bfloat16), wlb.astype(jnp.bfloat16), blin


# --------------------------------------------------------------- wrapper -----
def build_decoder_gru(params):
    """Pack weights once; return a jitted forward(features) -> (B, class_num)."""
    H = params["gru"][0]["w_hh_f"].shape[1]
    E = params["gru"][0]["w_ih_f"].shape[1]
    L = len(params["gru"])
    C = params["linear_w"].shape[0]
    G = _round_up(2 * H, 128)          # lanes per gate group (128-aligned slices)
    e_pad = _round_up(E, 128)
    c_pad = _round_up(C, 128)

    packed = []
    for li, lp in enumerate(params["gru"]):
        packed.extend(_pack_layer(lp, H, G, first=(li == 0), e_pad=e_pad))
    packed.extend(_pack_linear(params["linear_w"], params["linear_b"], H, c_pad))
    packed = tuple(packed)

    vmem = pl.BlockSpec(memory_space=pltpu.MemorySpace.VMEM)

    @jax.jit
    def forward(features):
        S = features.shape[0]          # sequence length = batch dim of the module
        x = jnp.pad(features, ((0, 0), (0, e_pad - E))).astype(jnp.bfloat16)
        x_rev = x[::-1]                # reversed rows, fused into the jit (no kernel work)
        out = pl.pallas_call(
            _make_fused_kernel(S, H, L, G),
            out_shape=jax.ShapeDtypeStruct((S, c_pad), jnp.float32),
            in_specs=[vmem] * (2 + len(packed)),
            out_specs=vmem,
            scratch_shapes=[pltpu.VMEM((S, 2 * H), jnp.float32) for _ in range(4)],
        )(x, x_rev, *packed)
        return out[:, :C]

    return forward


# -------------------------------------------------------------- reference ----
def _gru_dir_ref(x, w_ih, w_hh, b_ih, b_hh):
    H = w_hh.shape[1]

    def step(h, x_t):
        gi = jnp.dot(x_t, w_ih.T, precision=HIGHEST) + b_ih
        gh = jnp.dot(h, w_hh.T, precision=HIGHEST) + b_hh
        r = jax.nn.sigmoid(gi[0:H] + gh[0:H])
        z = jax.nn.sigmoid(gi[H:2 * H] + gh[H:2 * H])
        n = jnp.tanh(gi[2 * H:] + r * gh[2 * H:])
        h_new = (1.0 - z) * n + z * h
        return h_new, h_new

    _, hs = jax.lax.scan(step, jnp.zeros((H,), x.dtype), x)
    return hs


def decoder_gru_ref(features, params):
    x = features
    for lp in params["gru"]:
        fwd = _gru_dir_ref(x, lp["w_ih_f"], lp["w_hh_f"], lp["b_ih_f"], lp["b_hh_f"])
        bwd = _gru_dir_ref(x[::-1], lp["w_ih_b"], lp["w_hh_b"],
                           lp["b_ih_b"], lp["b_hh_b"])[::-1]
        x = jnp.concatenate([fwd, bwd], axis=-1)
    y = jnp.dot(x, params["linear_w"].T, precision=HIGHEST) + params["linear_b"]
    return jax.nn.sigmoid(y)


# ------------------------------------------------------------------ params ---
def init_params(key, embed_size, hidden_size, class_num, num_layers):
    """Deterministic synthetic init (PyTorch-shaped GRU / Linear params)."""
    k = 1.0 / (hidden_size ** 0.5)
    layers = []
    for l in range(num_layers):
        in_size = embed_size if l == 0 else 2 * hidden_size
        layer = {}
        for d in ("f", "b"):   # forward / backward direction
            key, k1, k2, k3, k4 = jax.random.split(key, 5)
            layer[f"w_ih_{d}"] = jax.random.uniform(
                k1, (3 * hidden_size, in_size), jnp.float32, -k, k)
            layer[f"w_hh_{d}"] = jax.random.uniform(
                k2, (3 * hidden_size, hidden_size), jnp.float32, -k, k)
            layer[f"b_ih_{d}"] = jax.random.uniform(
                k3, (3 * hidden_size,), jnp.float32, -k, k)
            layer[f"b_hh_{d}"] = jax.random.uniform(
                k4, (3 * hidden_size,), jnp.float32, -k, k)
        layers.append(layer)
    key, kw = jax.random.split(key)
    # init_weights(): linear.weight ~ U(-0.1, 0.1), bias = 0
    linear_w = jax.random.uniform(
        kw, (class_num, 2 * hidden_size), jnp.float32, -0.1, 0.1)
    linear_b = jnp.zeros((class_num,), jnp.float32)
    return {"gru": layers, "linear_w": linear_w, "linear_b": linear_b}


# -------------------------------------------------------------------- main ---
if __name__ == "__main__":
    B, EMBED, HIDDEN, CLASS_NUM, NUM_LAYERS = 8, 16, 32, 8, 2

    key = jax.random.PRNGKey(0)
    k_feat, k_param = jax.random.split(key)
    features = jax.random.normal(k_feat, (B, EMBED), jnp.float32)
    params = init_params(k_param, EMBED, HIDDEN, CLASS_NUM, NUM_LAYERS)

    forward = build_decoder_gru(params)     # pack once + jit (perf-review item #1)
    out = jax.block_until_ready(forward(features))
    assert out.shape == (B, CLASS_NUM), out.shape

    ref = decoder_gru_ref(features, params)
    max_err = float(jnp.max(jnp.abs(out - ref)))
    # Kernel runs bf16 matmul operands (single-pass MXU); reference is f32 HIGHEST,
    # so allow for bf16 truncation compounding over the 16 recurrent steps.
    assert max_err < 2e-2, max_err

    print("KERNEL_OK")
</pallas_src>

<mosaic_0001>
module attributes {stable_mosaic.version = 11 : i64} {
  func.func @kernel(%arg0: memref<8x128xbf16, #tpu.memory_space<vmem>>, %arg1: memref<8x128xbf16, #tpu.memory_space<vmem>>, %arg2: memref<128x384xbf16, #tpu.memory_space<vmem>>, %arg3: memref<128x384xbf16, #tpu.memory_space<vmem>>, %arg4: memref<1x384xf32, #tpu.memory_space<vmem>>, %arg5: memref<64x384xbf16, #tpu.memory_space<vmem>>, %arg6: memref<1x384xf32, #tpu.memory_space<vmem>>, %arg7: memref<64x384xbf16, #tpu.memory_space<vmem>>, %arg8: memref<64x384xbf16, #tpu.memory_space<vmem>>, %arg9: memref<1x384xf32, #tpu.memory_space<vmem>>, %arg10: memref<64x384xbf16, #tpu.memory_space<vmem>>, %arg11: memref<1x384xf32, #tpu.memory_space<vmem>>, %arg12: memref<64x128xbf16, #tpu.memory_space<vmem>>, %arg13: memref<64x128xbf16, #tpu.memory_space<vmem>>, %arg14: memref<1x128xf32, #tpu.memory_space<vmem>>, %arg15: memref<8x128xf32, #tpu.memory_space<vmem>>, %arg16: memref<8x64xf32, #tpu.memory_space<vmem>>, %arg17: memref<8x64xf32, #tpu.memory_space<vmem>>, %arg18: memref<8x64xf32, #tpu.memory_space<vmem>>, %arg19: memref<8x64xf32, #tpu.memory_space<vmem>>) attributes {dimension_semantics = [], scalar_prefetch = 0 : i64, scratch_operands = 4 : i64, tpu.core_type = #tpu.core_type<tc>} {
    %c0 = arith.constant 0 : index
    %c0_0 = arith.constant 0 : index
    %0 = vector.load %arg0[%c0, %c0_0] : memref<8x128xbf16, #tpu.memory_space<vmem>>, vector<8x128xbf16>
    %c0_1 = arith.constant 0 : index
    %c0_2 = arith.constant 0 : index
    %1 = vector.load %arg1[%c0_1, %c0_2] : memref<8x128xbf16, #tpu.memory_space<vmem>>, vector<8x128xbf16>
    %c0_3 = arith.constant 0 : index
    %c0_4 = arith.constant 0 : index
    %2 = vector.load %arg2[%c0_3, %c0_4] : memref<128x384xbf16, #tpu.memory_space<vmem>>, vector<128x384xbf16>
    %cst = arith.constant dense<0.000000e+00> : vector<8x384xf32>
    %3 = tpu.matmul %0, %2, %cst {dimension_numbers = #tpu.dot_dimension_numbers<[1], [0], [0], [1], [0, 0, 1, 1], [], []>} : vector<8x128xbf16>, vector<128x384xbf16>, vector<8x384xf32> -> vector<8x384xf32>
    %c0_5 = arith.constant 0 : index
    %c0_6 = arith.constant 0 : index
    %4 = vector.load %arg3[%c0_5, %c0_6] : memref<128x384xbf16, #tpu.memory_space<vmem>>, vector<128x384xbf16>
    %cst_7 = arith.constant dense<0.000000e+00> : vector<8x384xf32>
    %5 = tpu.matmul %1, %4, %cst_7 {dimension_numbers = #tpu.dot_dimension_numbers<[1], [0], [0], [1], [0, 0, 1, 1], [], []>} : vector<8x128xbf16>, vector<128x384xbf16>, vector<8x384xf32> -> vector<8x384xf32>
    %6 = arith.addf %3, %5 : vector<8x384xf32>
    %c0_8 = arith.constant 0 : index
    %c0_9 = arith.constant 0 : index
    %7 = vector.load %arg4[%c0_8, %c0_9] : memref<1x384xf32, #tpu.memory_space<vmem>>, vector<1x384xf32>
    %8 = vector.broadcast %7 : vector<1x384xf32> to vector<8x384xf32>
    %9 = arith.addf %6, %8 : vector<8x384xf32>
    %c0_10 = arith.constant 0 : index
    %c0_11 = arith.constant 0 : index
    %10 = vector.load %arg5[%c0_10, %c0_11] : memref<64x384xbf16, #tpu.memory_space<vmem>>, vector<64x384xbf16>
    %c0_12 = arith.constant 0 : index
    %c0_13 = arith.constant 0 : index
    %11 = vector.load %arg6[%c0_12, %c0_13] : memref<1x384xf32, #tpu.memory_space<vmem>>, vector<1x384xf32>
    %cst_14 = arith.constant 0.000000e+00 : f32
    %12 = vector.broadcast %cst_14 : f32 to vector<1x64xf32>
    %13 = arith.truncf %12 : vector<1x64xf32> to vector<1x64xbf16>
    %cst_15 = arith.constant dense<0.000000e+00> : vector<1x384xf32>
    %14 = tpu.matmul %13, %10, %cst_15 {dimension_numbers = #tpu.dot_dimension_numbers<[1], [0], [0], [1], [0, 0, 1, 1], [], []>} : vector<1x64xbf16>, vector<64x384xbf16>, vector<1x384xf32> -> vector<1x384xf32>
    %15 = arith.addf %14, %11 : vector<1x384xf32>
    %16 = vector.extract_strided_slice %9 {offsets = [0, 0], sizes = [1, 384], strides = [1, 1]} : vector<8x384xf32> to vector<1x384xf32>
    %17 = vector.extract_strided_slice %16 {offsets = [0, 0], sizes = [1, 256], strides = [1, 1]} : vector<1x384xf32> to vector<1x256xf32>
    %18 = vector.extract_strided_slice %15 {offsets = [0, 0], sizes = [1, 256], strides = [1, 1]} : vector<1x384xf32> to vector<1x256xf32>
    %19 = arith.addf %17, %18 : vector<1x256xf32>
    %20 = arith.negf %19 : vector<1x256xf32>
    %21 = math.exp %20 : vector<1x256xf32>
    %cst_16 = arith.constant 1.000000e+00 : f32
    %22 = vector.broadcast %cst_16 : f32 to vector<1x256xf32>
    %23 = arith.addf %22, %21 : vector<1x256xf32>
    %24 = arith.divf %22, %23 : vector<1x256xf32>
    %25 = vector.extract_strided_slice %24 {offsets = [0, 0], sizes = [1, 128], strides = [1, 1]} : vector<1x256xf32> to vector<1x128xf32>
    %26 = vector.extract_strided_slice %24 {offsets = [0, 128], sizes = [1, 128], strides = [1, 1]} : vector<1x256xf32> to vector<1x128xf32>
    %27 = vector.extract_strided_slice %16 {offsets = [0, 256], sizes = [1, 128], strides = [1, 1]} : vector<1x384xf32> to vector<1x128xf32>
    %28 = vector.extract_strided_slice %15 {offsets = [0, 256], sizes = [1, 128], strides = [1, 1]} : vector<1x384xf32> to vector<1x128xf32>
    %29 = arith.mulf %25, %28 : vector<1x128xf32>
    %30 = arith.addf %27, %29 : vector<1x128xf32>
    %31 = math.tanh %30 : vector<1x128xf32>
    %cst_17 = arith.constant 1.000000e+00 : f32
    %32 = vector.broadcast %cst_17 : f32 to vector<1x128xf32>
    %33 = arith.subf %32, %26 : vector<1x128xf32>
    %34 = arith.mulf %33, %31 : vector<1x128xf32>
    %35 = vector.extract_strided_slice %34 {offsets = [0, 0], sizes = [1, 64], strides = [1, 1]} : vector<1x128xf32> to vector<1x64xf32>
    %36 = vector.extract_strided_slice %26 {offsets = [0, 0], sizes = [1, 64], strides = [1, 1]} : vector<1x128xf32> to vector<1x64xf32>
    %37 = arith.mulf %36, %12 : vector<1x64xf32>
    %38 = arith.addf %35, %37 : vector<1x64xf32>
    %c0_18 = arith.constant 0 : index
    %c0_19 = arith.constant 0 : index
    %39 = vector.load %arg16[%c0_18, %c0_19] : memref<8x64xf32, #tpu.memory_space<vmem>>, vector<1x64xf32>
    tpu.vector_store %arg16[%c0_18, %c0_19], %38 {strides = array<i32>} : memref<8x64xf32, #tpu.memory_space<vmem>>, vector<1x64xf32>,
    %c7 = arith.constant 7 : index
    %c0_20 = arith.constant 0 : index
    %40 = vector.load %arg17[%c7, %c0_20] : memref<8x64xf32, #tpu.memory_space<vmem>>, vector<1x64xf32>
    tpu.vector_store %arg17[%c7, %c0_20], %38 {strides = array<i32>} : memref<8x64xf32, #tpu.memory_space<vmem>>, vector<1x64xf32>,
    %41 = arith.truncf %38 : vector<1x64xf32> to vector<1x64xbf16>
    %cst_21 = arith.constant dense<0.000000e+00> : vector<1x384xf32>
    %42 = tpu.matmul %41, %10, %cst_21 {dimension_numbers = #tpu.dot_dimension_numbers<[1], [0], [0], [1], [0, 0, 1, 1], [], []>} : vector<1x64xbf16>, vector<64x384xbf16>, vector<1x384xf32> -> vector<1x384xf32>
    %43 = arith.addf %42, %11 : vector<1x384xf32>
    %44 = vector.extract_strided_slice %9 {offsets = [1, 0], sizes = [1, 384], strides = [1, 1]} : vector<8x384xf32> to vector<1x384xf32>
    %45 = vector.extract_strided_slice %44 {offsets = [0, 0], sizes = [1, 256], strides = [1, 1]} : vector<1x384xf32> to vector<1x256xf32>
    %46 = vector.extract_strided_slice %43 {offsets = [0, 0], sizes = [1, 256], strides = [1, 1]} : vector<1x384xf32> to vector<1x256xf32>
    %47 = arith.addf %45, %46 : vector<1x256xf32>
    %48 = arith.negf %47 : vector<1x256xf32>
    %49 = math.exp %48 : vector<1x256xf32>
    %cst_22 = arith.constant 1.000000e+00 : f32
    %50 = vector.broadcast %cst_22 : f32 to vector<1x256xf32>
    %51 = arith.addf %50, %49 : vector<1x256xf32>
    %52 = arith.divf %50, %51 : vector<1x256xf32>
    %53 = vector.extract_strided_slice %52 {offsets = [0, 0], sizes = [1, 128], strides = [1, 1]} : vector<1x256xf32> to vector<1x128xf32>
    %54 = vector.extract_strided_slice %52 {offsets = [0, 128], sizes = [1, 128], strides = [1, 1]} : vector<1x256xf32> to vector<1x128xf32>
    %55 = vector.extract_strided_slice %44 {offsets = [0, 256], sizes = [1, 128], strides = [1, 1]} : vector<1x384xf32> to vector<1x128xf32>
    %56 = vector.extract_strided_slice %43 {offsets = [0, 256], sizes = [1, 128], strides = [1, 1]} : vector<1x384xf32> to vector<1x128xf32>
    %57 = arith.mulf %53, %56 : vector<1x128xf32>
    %58 = arith.addf %55, %57 : vector<1x128xf32>
    %59 = math.tanh %58 : vector<1x128xf32>
    %cst_23 = arith.constant 1.000000e+00 : f32
    %60 = vector.broadcast %cst_23 : f32 to vector<1x128xf32>
    %61 = arith.subf %60, %54 : vector<1x128xf32>
    %62 = arith.mulf %61, %59 : vector<1x128xf32>
    %63 = vector.extract_strided_slice %62 {offsets = [0, 0], sizes = [1, 64], strides = [1, 1]} : vector<1x128xf32> to vector<1x64xf32>
    %64 = vector.extract_strided_slice %54 {offsets = [0, 0], sizes = [1, 64], strides = [1, 1]} : vector<1x128xf32> to vector<1x64xf32>
    %65 = arith.mulf %64, %38 : vector<1x64xf32>
    %66 = arith.addf %63, %65 : vector<1x64xf32>
    %c1 = arith.constant 1 : index
    %c0_24 = arith.constant 0 : index
    %67 = vector.load %arg16[%c1, %c0_24] : memref<8x64xf32, #tpu.memory_space<vmem>>, vector<1x64xf32>
    tpu.vector_store %arg16[%c1, %c0_24], %66 {strides = array<i32>} : memref<8x64xf32, #tpu.memory_space<vmem>>, vector<1x64xf32>,
    %c6 = arith.constant 6 : index
    %c0_25 = arith.constant 0 : index
    %68 = vector.load %arg17[%c6, %c0_25] : memref<8x64xf32, #tpu.memory_space<vmem>>, vector<1x64xf32>
    tpu.vector_store %arg17[%c6, %c0_25], %66 {strides = array<i32>} : memref<8x64xf32, #tpu.memory_space<vmem>>, vector<1x64xf32>,
    %69 = arith.truncf %66 : vector<1x64xf32> to vector<1x64xbf16>
    %cst_26 = arith.constant dense<0.000000e+00> : vector<1x384xf32>
    %70 = tpu.matmul %69, %10, %cst_26 {dimension_numbers = #tpu.dot_dimension_numbers<[1], [0], [0], [1], [0, 0, 1, 1], [], []>} : vector<1x64xbf16>, vector<64x384xbf16>, vector<1x384xf32> -> vector<1x384xf32>
    %71 = arith.addf %70, %11 : vector<1x384xf32>
    %72 = vector.extract_strided_slice %9 {offsets = [2, 0], sizes = [1, 384], strides = [1, 1]} : vector<8x384xf32> to vector<1x384xf32>
    %73 = vector.extract_strided_slice %72 {offsets = [0, 0], sizes = [1, 256], strides = [1, 1]} : vector<1x384xf32> to vector<1x256xf32>
    %74 = vector.extract_strided_slice %71 {offsets = [0, 0], sizes = [1, 256], strides = [1, 1]} : vector<1x384xf32> to vector<1x256xf32>
    %75 = arith.addf %73, %74 : vector<1x256xf32>
    %76 = arith.negf %75 : vector<1x256xf32>
    %77 = math.exp %76 : vector<1x256xf32>
    %cst_27 = arith.constant 1.000000e+00 : f32
    %78 = vector.broadcast %cst_27 : f32 to vector<1x256xf32>
    %79 = arith.addf %78, %77 : vector<1x256xf32>
    %80 = arith.divf %78, %79 : vector<1x256xf32>
    %81 = vector.extract_strided_slice %80 {offsets = [0, 0], sizes = [1, 128], strides = [1, 1]} : vector<1x256xf32> to vector<1x128xf32>
    %82 = vector.extract_strided_slice %80 {offsets = [0, 128], sizes = [1, 128], strides = [1, 1]} : vector<1x256xf32> to vector<1x128xf32>
    %83 = vector.extract_strided_slice %72 {offsets = [0, 256], sizes = [1, 128], strides = [1, 1]} : vector<1x384xf32> to vector<1x128xf32>
    %84 = vector.extract_strided_slice %71 {offsets = [0, 256], sizes = [1, 128], strides = [1, 1]} : vector<1x384xf32> to vector<1x128xf32>
    %85 = arith.mulf %81, %84 : vector<1x128xf32>
    %86 = arith.addf %83, %85 : vector<1x128xf32>
    %87 = math.tanh %86 : vector<1x128xf32>
    %cst_28 = arith.constant 1.000000e+00 : f32
    %88 = vector.broadcast %cst_28 : f32 to vector<1x128xf32>
    %89 = arith.subf %88, %82 : vector<1x128xf32>
    %90 = arith.mulf %89, %87 : vector<1x128xf32>
    %91 = vector.extract_strided_slice %90 {offsets = [0, 0], sizes = [1, 64], strides = [1, 1]} : vector<1x128xf32> to vector<1x64xf32>
    %92 = vector.extract_strided_slice %82 {offsets = [0, 0], sizes = [1, 64], strides = [1, 1]} : vector<1x128xf32> to vector<1x64xf32>
    %93 = arith.mulf %92, %66 : vector<1x64xf32>
    %94 = arith.addf %91, %93 : vector<1x64xf32>
    %c2 = arith.constant 2 : index
    %c0_29 = arith.constant 0 : index
    %95 = vector.load %arg16[%c2, %c0_29] : memref<8x64xf32, #tpu.memory_space<vmem>>, vector<1x64xf32>
    tpu.vector_store %arg16[%c2, %c0_29], %94 {strides = array<i32>} : memref<8x64xf32, #tpu.memory_space<vmem>>, vector<1x64xf32>,
    %c5 = arith.constant 5 : index
    %c0_30 = arith.constant 0 : index
    %96 = vector.load %arg17[%c5, %c0_30] : memref<8x64xf32, #tpu.memory_space<vmem>>, vector<1x64xf32>
    tpu.vector_store %arg17[%c5, %c0_30], %94 {strides = array<i32>} : memref<8x64xf32, #tpu.memory_space<vmem>>, vector<1x64xf32>,
    %97 = arith.truncf %94 : vector<1x64xf32> to vector<1x64xbf16>
    %cst_31 = arith.constant dense<0.000000e+00> : vector<1x384xf32>
    %98 = tpu.matmul %97, %10, %cst_31 {dimension_numbers = #tpu.dot_dimension_numbers<[1], [0], [0], [1], [0, 0, 1, 1], [], []>} : vector<1x64xbf16>, vector<64x384xbf16>, vector<1x384xf32> -> vector<1x384xf32>
    %99 = arith.addf %98, %11 : vector<1x384xf32>
    %100 = vector.extract_strided_slice %9 {offsets = [3, 0], sizes = [1, 384], strides = [1, 1]} : vector<8x384xf32> to vector<1x384xf32>
    %101 = vector.extract_strided_slice %100 {offsets = [0, 0], sizes = [1, 256], strides = [1, 1]} : vector<1x384xf32> to vector<1x256xf32>
    %102 = vector.extract_strided_slice %99 {offsets = [0, 0], sizes = [1, 256], strides = [1, 1]} : vector<1x384xf32> to vector<1x256xf32>
    %103 = arith.addf %101, %102 : vector<1x256xf32>
    %104 = arith.negf %103 : vector<1x256xf32>
    %105 = math.exp %104 : vector<1x256xf32>
    %cst_32 = arith.constant 1.000000e+00 : f32
    %106 = vector.broadcast %cst_32 : f32 to vector<1x256xf32>
    %107 = arith.addf %106, %105 : vector<1x256xf32>
    %108 = arith.divf %106, %107 : vector<1x256xf32>
    %109 = vector.extract_strided_slice %108 {offsets = [0, 0], sizes = [1, 128], strides = [1, 1]} : vector<1x256xf32> to vector<1x128xf32>
    %110 = vector.extract_strided_slice %108 {offsets = [0, 128], sizes = [1, 128], strides = [1, 1]} : vector<1x256xf32> to vector<1x128xf32>
    %111 = vector.extract_strided_slice %100 {offsets = [0, 256], sizes = [1, 128], strides = [1, 1]} : vector<1x384xf32> to vector<1x128xf32>
    %112 = vector.extract_strided_slice %99 {offsets = [0, 256], sizes = [1, 128], strides = [1, 1]} : vector<1x384xf32> to vector<1x128xf32>
    %113 = arith.mulf %109, %112 : vector<1x128xf32>
    %114 = arith.addf %111, %113 : vector<1x128xf32>
    %115 = math.tanh %114 : vector<1x128xf32>
    %cst_33 = arith.constant 1.000000e+00 : f32
    %116 = vector.broadcast %cst_33 : f32 to vector<1x128xf32>
    %117 = arith.subf %116, %110 : vector<1x128xf32>
    %118 = arith.mulf %117, %115 : vector<1x128xf32>
    %119 = vector.extract_strided_slice %118 {offsets = [0, 0], sizes = [1, 64], strides = [1, 1]} : vector<1x128xf32> to vector<1x64xf32>
    %120 = vector.extract_strided_slice %110 {offsets = [0, 0], sizes = [1, 64], strides = [1, 1]} : vector<1x128xf32> to vector<1x64xf32>
    %121 = arith.mulf %120, %94 : vector<1x64xf32>
    %122 = arith.addf %119, %121 : vector<1x64xf32>
    %c3 = arith.constant 3 : index
    %c0_34 = arith.constant 0 : index
    %123 = vector.load %arg16[%c3, %c0_34] : memref<8x64xf32, #tpu.memory_space<vmem>>, vector<1x64xf32>
    tpu.vector_store %arg16[%c3, %c0_34], %122 {strides = array<i32>} : memref<8x64xf32, #tpu.memory_space<vmem>>, vector<1x64xf32>,
    %c4 = arith.constant 4 : index
    %c0_35 = arith.constant 0 : index
    %124 = vector.load %arg17[%c4, %c0_35] : memref<8x64xf32, #tpu.memory_space<vmem>>, vector<1x64xf32>
    tpu.vector_store %arg17[%c4, %c0_35], %122 {strides = array<i32>} : memref<8x64xf32, #tpu.memory_space<vmem>>, vector<1x64xf32>,
    %125 = arith.truncf %122 : vector<1x64xf32> to vector<1x64xbf16>
    %cst_36 = arith.constant dense<0.000000e+00> : vector<1x384xf32>
    %126 = tpu.matmul %125, %10, %cst_36 {dimension_numbers = #tpu.dot_dimension_numbers<[1], [0], [0], [1], [0, 0, 1, 1], [], []>} : vector<1x64xbf16>, vector<64x384xbf16>, vector<1x384xf32> -> vector<1x384xf32>
    %127 = arith.addf %126, %11 : vector<1x384xf32>
    %128 = vector.extract_strided_slice %9 {offsets = [4, 0], sizes = [1, 384], strides = [1, 1]} : vector<8x384xf32> to vector<1x384xf32>
    %129 = vector.extract_strided_slice %128 {offsets = [0, 0], sizes = [1, 256], strides = [1, 1]} : vector<1x384xf32> to vector<1x256xf32>
    %130 = vector.extract_strided_slice %127 {offsets = [0, 0], sizes = [1, 256], strides = [1, 1]} : vector<1x384xf32> to vector<1x256xf32>
    %131 = arith.addf %129, %130 : vector<1x256xf32>
    %132 = arith.negf %131 : vector<1x256xf32>
    %133 = math.exp %132 : vector<1x256xf32>
    %cst_37 = arith.constant 1.000000e+00 : f32
    %134 = vector.broadcast %cst_37 : f32 to vector<1x256xf32>
    %135 = arith.addf %134, %133 : vector<1x256xf32>
    %136 = arith.divf %134, %135 : vector<1x256xf32>
    %137 = vector.extract_strided_slice %136 {offsets = [0, 0], sizes = [1, 128], strides = [1, 1]} : vector<1x256xf32> to vector<1x128xf32>
    %138 = vector.extract_strided_slice %136 {offsets = [0, 128], sizes = [1, 128], strides = [1, 1]} : vector<1x256xf32> to vector<1x128xf32>
    %139 = vector.extract_strided_slice %128 {offsets = [0, 256], sizes = [1, 128], strides = [1, 1]} : vector<1x384xf32> to vector<1x128xf32>
    %140 = vector.extract_strided_slice %127 {offsets = [0, 256], sizes = [1, 128], strides = [1, 1]} : vector<1x384xf32> to vector<1x128xf32>
    %141 = arith.mulf %137, %140 : vector<1x128xf32>
    %142 = arith.addf %139, %141 : vector<1x128xf32>
    %143 = math.tanh %142 : vector<1x128xf32>
    %cst_38 = arith.constant 1.000000e+00 : f32
    %144 = vector.broadcast %cst_38 : f32 to vector<1x128xf32>
    %145 = arith.subf %144, %138 : vector<1x128xf32>
    %146 = arith.mulf %145, %143 : vector<1x128xf32>
    %147 = vector.extract_strided_slice %146 {offsets = [0, 0], sizes = [1, 64], strides = [1, 1]} : vector<1x128xf32> to vector<1x64xf32>
    %148 = vector.extract_strided_slice %138 {offsets = [0, 0], sizes = [1, 64], strides = [1, 1]} : vector<1x128xf32> to vector<1x64xf32>
    %149 = arith.mulf %148, %122 : vector<1x64xf32>
    %150 = arith.addf %147, %149 : vector<1x64xf32>
    %c4_39 = arith.constant 4 : index
    %c0_40 = arith.constant 0 : index
    %151 = vector.load %arg16[%c4_39, %c0_40] : memref<8x64xf32, #tpu.memory_space<vmem>>, vector<1x64xf32>
    tpu.vector_store %arg16[%c4_39, %c0_40], %150 {strides = array<i32>} : memref<8x64xf32, #tpu.memory_space<vmem>>, vector<1x64xf32>,
    %c3_41 = arith.constant 3 : index
    %c0_42 = arith.constant 0 : index
    %152 = vector.load %arg17[%c3_41, %c0_42] : memref<8x64xf32, #tpu.memory_space<vmem>>, vector<1x64xf32>
    tpu.vector_store %arg17[%c3_41, %c0_42], %150 {strides = array<i32>} : memref<8x64xf32, #tpu.memory_space<vmem>>, vector<1x64xf32>,
    %153 = arith.truncf %150 : vector<1x64xf32> to vector<1x64xbf16>
    %cst_43 = arith.constant dense<0.000000e+00> : vector<1x384xf32>
    %154 = tpu.matmul %153, %10, %cst_43 {dimension_numbers = #tpu.dot_dimension_numbers<[1], [0], [0], [1], [0, 0, 1, 1], [], []>} : vector<1x64xbf16>, vector<64x384xbf16>, vector<1x384xf32> -> vector<1x384xf32>
    %155 = arith.addf %154, %11 : vector<1x384xf32>
    %156 = vector.extract_strided_slice %9 {offsets = [5, 0], sizes = [1, 384], strides = [1, 1]} : vector<8x384xf32> to vector<1x384xf32>
    %157 = vector.extract_strided_slice %156 {offsets = [0, 0], sizes = [1, 256], strides = [1, 1]} : vector<1x384xf32> to vector<1x256xf32>
    %158 = vector.extract_strided_slice %155 {offsets = [0, 0], sizes = [1, 256], strides = [1, 1]} : vector<1x384xf32> to vector<1x256xf32>
    %159 = arith.addf %157, %158 : vector<1x256xf32>
    %160 = arith.negf %159 : vector<1x256xf32>
    %161 = math.exp %160 : vector<1x256xf32>
    %cst_44 = arith.constant 1.000000e+00 : f32
    %162 = vector.broadcast %cst_44 : f32 to vector<1x256xf32>
    %163 = arith.addf %162, %161 : vector<1x256xf32>
    %164 = arith.divf %162, %163 : vector<1x256xf32>
    %165 = vector.extract_strided_slice %164 {offsets = [0, 0], sizes = [1, 128], strides = [1, 1]} : vector<1x256xf32> to vector<1x128xf32>
    %166 = vector.extract_strided_slice %164 {offsets = [0, 128], sizes = [1, 128], strides = [1, 1]} : vector<1x256xf32> to vector<1x128xf32>
    %167 = vector.extract_strided_slice %156 {offsets = [0, 256], sizes = [1, 128], strides = [1, 1]} : vector<1x384xf32> to vector<1x128xf32>
    %168 = vector.extract_strided_slice %155 {offsets = [0, 256], sizes = [1, 128], strides = [1, 1]} : vector<1x384xf32> to vector<1x128xf32>
    %169 = arith.mulf %165, %168 : vector<1x128xf32>
    %170 = arith.addf %167, %169 : vector<1x128xf32>
    %171 = math.tanh %170 : vector<1x128xf32>
    %cst_45 = arith.constant 1.000000e+00 : f32
    %172 = vector.broadcast %cst_45 : f32 to vector<1x128xf32>
    %173 = arith.subf %172, %166 : vector<1x128xf32>
    %174 = arith.mulf %173, %171 : vector<1x128xf32>
    %175 = vector.extract_strided_slice %174 {offsets = [0, 0], sizes = [1, 64], strides = [1, 1]} : vector<1x128xf32> to vector<1x64xf32>
    %176 = vector.extract_strided_slice %166 {offsets = [0, 0], sizes = [1, 64], strides = [1, 1]} : vector<1x128xf32> to vector<1x64xf32>
    %177 = arith.mulf %176, %150 : vector<1x64xf32>
    %178 = arith.addf %175, %177 : vector<1x64xf32>
    %c5_46 = arith.constant 5 : index
    %c0_47 = arith.constant 0 : index
    %179 = vector.load %arg16[%c5_46, %c0_47] : memref<8x64xf32, #tpu.memory_space<vmem>>, vector<1x64xf32>
    tpu.vector_store %arg16[%c5_46, %c0_47], %178 {strides = array<i32>} : memref<8x64xf32, #tpu.memory_space<vmem>>, vector<1x64xf32>,
    %c2_48 = arith.constant 2 : index
    %c0_49 = arith.constant 0 : index
    %180 = vector.load %arg17[%c2_48, %c0_49] : memref<8x64xf32, #tpu.memory_space<vmem>>, vector<1x64xf32>
    tpu.vector_store %arg17[%c2_48, %c0_49], %178 {strides = array<i32>} : memref<8x64xf32, #tpu.memory_space<vmem>>, vector<1x64xf32>,
    %181 = arith.truncf %178 : vector<1x64xf32> to vector<1x64xbf16>
    %cst_50 = arith.constant dense<0.000000e+00> : vector<1x384xf32>
    %182 = tpu.matmul %181, %10, %cst_50 {dimension_numbers = #tpu.dot_dimension_numbers<[1], [0], [0], [1], [0, 0, 1, 1], [], []>} : vector<1x64xbf16>, vector<64x384xbf16>, vector<1x384xf32> -> vector<1x384xf32>
    %183 = arith.addf %182, %11 : vector<1x384xf32>
    %184 = vector.extract_strided_slice %9 {offsets = [6, 0], sizes = [1, 384], strides = [1, 1]} : vector<8x384xf32> to vector<1x384xf32>
    %185 = vector.extract_strided_slice %184 {offsets = [0, 0], sizes = [1, 256], strides = [1, 1]} : vector<1x384xf32> to vector<1x256xf32>
    %186 = vector.extract_strided_slice %183 {offsets = [0, 0], sizes = [1, 256], strides = [1, 1]} : vector<1x384xf32> to vector<1x256xf32>
    %187 = arith.addf %185, %186 : vector<1x256xf32>
    %188 = arith.negf %187 : vector<1x256xf32>
    %189 = math.exp %188 : vector<1x256xf32>
    %cst_51 = arith.constant 1.000000e+00 : f32
    %190 = vector.broadcast %cst_51 : f32 to vector<1x256xf32>
    %191 = arith.addf %190, %189 : vector<1x256xf32>
    %192 = arith.divf %190, %191 : vector<1x256xf32>
    %193 = vector.extract_strided_slice %192 {offsets = [0, 0], sizes = [1, 128], strides = [1, 1]} : vector<1x256xf32> to vector<1x128xf32>
    %194 = vector.extract_strided_slice %192 {offsets = [0, 128], sizes = [1, 128], strides = [1, 1]} : vector<1x256xf32> to vector<1x128xf32>
    %195 = vector.extract_strided_slice %184 {offsets = [0, 256], sizes = [1, 128], strides = [1, 1]} : vector<1x384xf32> to vector<1x128xf32>
    %196 = vector.extract_strided_slice %183 {offsets = [0, 256], sizes = [1, 128], strides = [1, 1]} : vector<1x384xf32> to vector<1x128xf32>
    %197 = arith.mulf %193, %196 : vector<1x128xf32>
    %198 = arith.addf %195, %197 : vector<1x128xf32>
    %199 = math.tanh %198 : vector<1x128xf32>
    %cst_52 = arith.constant 1.000000e+00 : f32
    %200 = vector.broadcast %cst_52 : f32 to vector<1x128xf32>
    %201 = arith.subf %200, %194 : vector<1x128xf32>
    %202 = arith.mulf %201, %199 : vector<1x128xf32>
    %203 = vector.extract_strided_slice %202 {offsets = [0, 0], sizes = [1, 64], strides = [1, 1]} : vector<1x128xf32> to vector<1x64xf32>
    %204 = vector.extract_strided_slice %194 {offsets = [0, 0], sizes = [1, 64], strides = [1, 1]} : vector<1x128xf32> to vector<1x64xf32>
    %205 = arith.mulf %204, %178 : vector<1x64xf32>
    %206 = arith.addf %203, %205 : vector<1x64xf32>
    %c6_53 = arith.constant 6 : index
    %c0_54 = arith.constant 0 : index
    %207 = vector.load %arg16[%c6_53, %c0_54] : memref<8x64xf32, #tpu.memory_space<vmem>>, vector<1x64xf32>
    tpu.vector_store %arg16[%c6_53, %c0_54], %206 {strides = array<i32>} : memref<8x64xf32, #tpu.memory_space<vmem>>, vector<1x64xf32>,
    %c1_55 = arith.constant 1 : index
    %c0_56 = arith.constant 0 : index
    %208 = vector.load %arg17[%c1_55, %c0_56] : memref<8x64xf32, #tpu.memory_space<vmem>>, vector<1x64xf32>
    tpu.vector_store %arg17[%c1_55, %c0_56], %206 {strides = array<i32>} : memref<8x64xf32, #tpu.memory_space<vmem>>, vector<1x64xf32>,
    %209 = arith.truncf %206 : vector<1x64xf32> to vector<1x64xbf16>
    %cst_57 = arith.constant dense<0.000000e+00> : vector<1x384xf32>
    %210 = tpu.matmul %209, %10, %cst_57 {dimension_numbers = #tpu.dot_dimension_numbers<[1], [0], [0], [1], [0, 0, 1, 1], [], []>} : vector<1x64xbf16>, vector<64x384xbf16>, vector<1x384xf32> -> vector<1x384xf32>
    %211 = arith.addf %210, %11 : vector<1x384xf32>
    %212 = vector.extract_strided_slice %9 {offsets = [7, 0], sizes = [1, 384], strides = [1, 1]} : vector<8x384xf32> to vector<1x384xf32>
    %213 = vector.extract_strided_slice %212 {offsets = [0, 0], sizes = [1, 256], strides = [1, 1]} : vector<1x384xf32> to vector<1x256xf32>
    %214 = vector.extract_strided_slice %211 {offsets = [0, 0], sizes = [1, 256], strides = [1, 1]} : vector<1x384xf32> to vector<1x256xf32>
    %215 = arith.addf %213, %214 : vector<1x256xf32>
    %216 = arith.negf %215 : vector<1x256xf32>
    %217 = math.exp %216 : vector<1x256xf32>
    %cst_58 = arith.constant 1.000000e+00 : f32
    %218 = vector.broadcast %cst_58 : f32 to vector<1x256xf32>
    %219 = arith.addf %218, %217 : vector<1x256xf32>
    %220 = arith.divf %218, %219 : vector<1x256xf32>
    %221 = vector.extract_strided_slice %220 {offsets = [0, 0], sizes = [1, 128], strides = [1, 1]} : vector<1x256xf32> to vector<1x128xf32>
    %222 = vector.extract_strided_slice %220 {offsets = [0, 128], sizes = [1, 128], strides = [1, 1]} : vector<1x256xf32> to vector<1x128xf32>
    %223 = vector.extract_strided_slice %212 {offsets = [0, 256], sizes = [1, 128], strides = [1, 1]} : vector<1x384xf32> to vector<1x128xf32>
    %224 = vector.extract_strided_slice %211 {offsets = [0, 256], sizes = [1, 128], strides = [1, 1]} : vector<1x384xf32> to vector<1x128xf32>
    %225 = arith.mulf %221, %224 : vector<1x128xf32>
    %226 = arith.addf %223, %225 : vector<1x128xf32>
    %227 = math.tanh %226 : vector<1x128xf32>
    %cst_59 = arith.constant 1.000000e+00 : f32
    %228 = vector.broadcast %cst_59 : f32 to vector<1x128xf32>
    %229 = arith.subf %228, %222 : vector<1x128xf32>
    %230 = arith.mulf %229, %227 : vector<1x128xf32>
    %231 = vector.extract_strided_slice %230 {offsets = [0, 0], sizes = [1, 64], strides = [1, 1]} : vector<1x128xf32> to vector<1x64xf32>
    %232 = vector.extract_strided_slice %222 {offsets = [0, 0], sizes = [1, 64], strides = [1, 1]} : vector<1x128xf32> to vector<1x64xf32>
    %233 = arith.mulf %232, %206 : vector<1x64xf32>
    %234 = arith.addf %231, %233 : vector<1x64xf32>
    %c7_60 = arith.constant 7 : index
    %c0_61 = arith.constant 0 : index
    %235 = vector.load %arg16[%c7_60, %c0_61] : memref<8x64xf32, #tpu.memory_space<vmem>>, vector<1x64xf32>
    tpu.vector_store %arg16[%c7_60, %c0_61], %234 {strides = array<i32>} : memref<8x64xf32, #tpu.memory_space<vmem>>, vector<1x64xf32>,
    %c0_62 = arith.constant 0 : index
    %c0_63 = arith.constant 0 : index
    %236 = vector.load %arg17[%c0_62, %c0_63] : memref<8x64xf32, #tpu.memory_space<vmem>>, vector<1x64xf32>
    tpu.vector_store %arg17[%c0_62, %c0_63], %234 {strides = array<i32>} : memref<8x64xf32, #tpu.memory_space<vmem>>, vector<1x64xf32>,
    %c0_64 = arith.constant 0 : index
    %c0_65 = arith.constant 0 : index
    %237 = vector.load %arg16[%c0_64, %c0_65] : memref<8x64xf32, #tpu.memory_space<vmem>>, vector<8x64xf32>
    %238 = arith.truncf %237 : vector<8x64xf32> to vector<8x64xbf16>
    %c0_66 = arith.constant 0 : index
    %c0_67 = arith.constant 0 : index
    %239 = vector.load %arg17[%c0_66, %c0_67] : memref<8x64xf32, #tpu.memory_space<vmem>>, vector<8x64xf32>
    %240 = arith.truncf %239 : vector<8x64xf32> to vector<8x64xbf16>
    %c0_68 = arith.constant 0 : index
    %c0_69 = arith.constant 0 : index
    %241 = vector.load %arg7[%c0_68, %c0_69] : memref<64x384xbf16, #tpu.memory_space<vmem>>, vector<64x384xbf16>
    %cst_70 = arith.constant dense<0.000000e+00> : vector<8x384xf32>
    %242 = tpu.matmul %238, %241, %cst_70 {dimension_numbers = #tpu.dot_dimension_numbers<[1], [0], [0], [1], [0, 0, 1, 1], [], []>} : vector<8x64xbf16>, vector<64x384xbf16>, vector<8x384xf32> -> vector<8x384xf32>
    %c0_71 = arith.constant 0 : index
    %c0_72 = arith.constant 0 : index
    %243 = vector.load %arg8[%c0_71, %c0_72] : memref<64x384xbf16, #tpu.memory_space<vmem>>, vector<64x384xbf16>
    %cst_73 = arith.constant dense<0.000000e+00> : vector<8x384xf32>
    %244 = tpu.matmul %240, %243, %cst_73 {dimension_numbers = #tpu.dot_dimension_numbers<[1], [0], [0], [1], [0, 0, 1, 1], [], []>} : vector<8x64xbf16>, vector<64x384xbf16>, vector<8x384xf32> -> vector<8x384xf32>
    %245 = arith.addf %242, %244 : vector<8x384xf32>
    %c0_74 = arith.constant 0 : index
    %c0_75 = arith.constant 0 : index
    %246 = vector.load %arg9[%c0_74, %c0_75] : memref<1x384xf32, #tpu.memory_space<vmem>>, vector<1x384xf32>
    %247 = vector.broadcast %246 : vector<1x384xf32> to vector<8x384xf32>
    %248 = arith.addf %245, %247 : vector<8x384xf32>
    %c0_76 = arith.constant 0 : index
    %c0_77 = arith.constant 0 : index
    %249 = vector.load %arg10[%c0_76, %c0_77] : memref<64x384xbf16, #tpu.memory_space<vmem>>, vector<64x384xbf16>
    %c0_78 = arith.constant 0 : index
    %c0_79 = arith.constant 0 : index
    %250 = vector.load %arg11[%c0_78, %c0_79] : memref<1x384xf32, #tpu.memory_space<vmem>>, vector<1x384xf32>
    %cst_80 = arith.constant 0.000000e+00 : f32
    %251 = vector.broadcast %cst_80 : f32 to vector<1x64xf32>
    %252 = arith.truncf %251 : vector<1x64xf32> to vector<1x64xbf16>
    %cst_81 = arith.constant dense<0.000000e+00> : vector<1x384xf32>
    %253 = tpu.matmul %252, %249, %cst_81 {dimension_numbers = #tpu.dot_dimension_numbers<[1], [0], [0], [1], [0, 0, 1, 1], [], []>} : vector<1x64xbf16>, vector<64x384xbf16>, vector<1x384xf32> -> vector<1x384xf32>
    %254 = arith.addf %253, %250 : vector<1x384xf32>
    %255 = vector.extract_strided_slice %248 {offsets = [0, 0], sizes = [1, 384], strides = [1, 1]} : vector<8x384xf32> to vector<1x384xf32>
    %256 = vector.extract_strided_slice %255 {offsets = [0, 0], sizes = [1, 256], strides = [1, 1]} : vector<1x384xf32> to vector<1x256xf32>
    %257 = vector.extract_strided_slice %254 {offsets = [0, 0], sizes = [1, 256], strides = [1, 1]} : vector<1x384xf32> to vector<1x256xf32>
    %258 = arith.addf %256, %257 : vector<1x256xf32>
    %259 = arith.negf %258 : vector<1x256xf32>
    %260 = math.exp %259 : vector<1x256xf32>
    %cst_82 = arith.constant 1.000000e+00 : f32
    %261 = vector.broadcast %cst_82 : f32 to vector<1x256xf32>
    %262 = arith.addf %261, %260 : vector<1x256xf32>
    %263 = arith.divf %261, %262 : vector<1x256xf32>
    %264 = vector.extract_strided_slice %263 {offsets = [0, 0], sizes = [1, 128], strides = [1, 1]} : vector<1x256xf32> to vector<1x128xf32>
    %265 = vector.extract_strided_slice %263 {offsets = [0, 128], sizes = [1, 128], strides = [1, 1]} : vector<1x256xf32> to vector<1x128xf32>
    %266 = vector.extract_strided_slice %255 {offsets = [0, 256], sizes = [1, 128], strides = [1, 1]} : vector<1x384xf32> to vector<1x128xf32>
    %267 = vector.extract_strided_slice %254 {offsets = [0, 256], sizes = [1, 128], strides = [1, 1]} : vector<1x384xf32> to vector<1x128xf32>
    %268 = arith.mulf %264, %267 : vector<1x128xf32>
    %269 = arith.addf %266, %268 : vector<1x128xf32>
    %270 = math.tanh %269 : vector<1x128xf32>
    %cst_83 = arith.constant 1.000000e+00 : f32
    %271 = vector.broadcast %cst_83 : f32 to vector<1x128xf32>
    %272 = arith.subf %271, %265 : vector<1x128xf32>
    %273 = arith.mulf %272, %270 : vector<1x128xf32>
    %274 = vector.extract_strided_slice %273 {offsets = [0, 0], sizes = [1, 64], strides = [1, 1]} : vector<1x128xf32> to vector<1x64xf32>
    %275 = vector.extract_strided_slice %265 {offsets = [0, 0], sizes = [1, 64], strides = [1, 1]} : vector<1x128xf32> to vector<1x64xf32>
    %276 = arith.mulf %275, %251 : vector<1x64xf32>
    %277 = arith.addf %274, %276 : vector<1x64xf32>
    %c0_84 = arith.constant 0 : index
    %c0_85 = arith.constant 0 : index
    %278 = vector.load %arg18[%c0_84, %c0_85] : memref<8x64xf32, #tpu.memory_space<vmem>>, vector<1x64xf32>
    tpu.vector_store %arg18[%c0_84, %c0_85], %277 {strides = array<i32>} : memref<8x64xf32, #tpu.memory_space<vmem>>, vector<1x64xf32>,
    %c7_86 = arith.constant 7 : index
    %c0_87 = arith.constant 0 : index
    %279 = vector.load %arg19[%c7_86, %c0_87] : memref<8x64xf32, #tpu.memory_space<vmem>>, vector<1x64xf32>
    tpu.vector_store %arg19[%c7_86, %c0_87], %277 {strides = array<i32>} : memref<8x64xf32, #tpu.memory_space<vmem>>, vector<1x64xf32>,
    %280 = arith.truncf %277 : vector<1x64xf32> to vector<1x64xbf16>
    %cst_88 = arith.constant dense<0.000000e+00> : vector<1x384xf32>
    %281 = tpu.matmul %280, %249, %cst_88 {dimension_numbers = #tpu.dot_dimension_numbers<[1], [0], [0], [1], [0, 0, 1, 1], [], []>} : vector<1x64xbf16>, vector<64x384xbf16>, vector<1x384xf32> -> vector<1x384xf32>
    %282 = arith.addf %281, %250 : vector<1x384xf32>
    %283 = vector.extract_strided_slice %248 {offsets = [1, 0], sizes = [1, 384], strides = [1, 1]} : vector<8x384xf32> to vector<1x384xf32>
    %284 = vector.extract_strided_slice %283 {offsets = [0, 0], sizes = [1, 256], strides = [1, 1]} : vector<1x384xf32> to vector<1x256xf32>
    %285 = vector.extract_strided_slice %282 {offsets = [0, 0], sizes = [1, 256], strides = [1, 1]} : vector<1x384xf32> to vector<1x256xf32>
    %286 = arith.addf %284, %285 : vector<1x256xf32>
    %287 = arith.negf %286 : vector<1x256xf32>
    %288 = math.exp %287 : vector<1x256xf32>
    %cst_89 = arith.constant 1.000000e+00 : f32
    %289 = vector.broadcast %cst_89 : f32 to vector<1x256xf32>
    %290 = arith.addf %289, %288 : vector<1x256xf32>
    %291 = arith.divf %289, %290 : vector<1x256xf32>
    %292 = vector.extract_strided_slice %291 {offsets = [0, 0], sizes = [1, 128], strides = [1, 1]} : vector<1x256xf32> to vector<1x128xf32>
    %293 = vector.extract_strided_slice %291 {offsets = [0, 128], sizes = [1, 128], strides = [1, 1]} : vector<1x256xf32> to vector<1x128xf32>
    %294 = vector.extract_strided_slice %283 {offsets = [0, 256], sizes = [1, 128], strides = [1, 1]} : vector<1x384xf32> to vector<1x128xf32>
    %295 = vector.extract_strided_slice %282 {offsets = [0, 256], sizes = [1, 128], strides = [1, 1]} : vector<1x384xf32> to vector<1x128xf32>
    %296 = arith.mulf %292, %295 : vector<1x128xf32>
    %297 = arith.addf %294, %296 : vector<1x128xf32>
    %298 = math.tanh %297 : vector<1x128xf32>
    %cst_90 = arith.constant 1.000000e+00 : f32
    %299 = vector.broadcast %cst_90 : f32 to vector<1x128xf32>
    %300 = arith.subf %299, %293 : vector<1x128xf32>
    %301 = arith.mulf %300, %298 : vector<1x128xf32>
    %302 = vector.extract_strided_slice %301 {offsets = [0, 0], sizes = [1, 64], strides = [1, 1]} : vector<1x128xf32> to vector<1x64xf32>
    %303 = vector.extract_strided_slice %293 {offsets = [0, 0], sizes = [1, 64], strides = [1, 1]} : vector<1x128xf32> to vector<1x64xf32>
    %304 = arith.mulf %303, %277 : vector<1x64xf32>
    %305 = arith.addf %302, %304 : vector<1x64xf32>
    %c1_91 = arith.constant 1 : index
    %c0_92 = arith.constant 0 : index
    %306 = vector.load %arg18[%c1_91, %c0_92] : memref<8x64xf32, #tpu.memory_space<vmem>>, vector<1x64xf32>
    tpu.vector_store %arg18[%c1_91, %c0_92], %305 {strides = array<i32>} : memref<8x64xf32, #tpu.memory_space<vmem>>, vector<1x64xf32>,
    %c6_93 = arith.constant 6 : index
    %c0_94 = arith.constant 0 : index
    %307 = vector.load %arg19[%c6_93, %c0_94] : memref<8x64xf32, #tpu.memory_space<vmem>>, vector<1x64xf32>
    tpu.vector_store %arg19[%c6_93, %c0_94], %305 {strides = array<i32>} : memref<8x64xf32, #tpu.memory_space<vmem>>, vector<1x64xf32>,
    %308 = arith.truncf %305 : vector<1x64xf32> to vector<1x64xbf16>
    %cst_95 = arith.constant dense<0.000000e+00> : vector<1x384xf32>
    %309 = tpu.matmul %308, %249, %cst_95 {dimension_numbers = #tpu.dot_dimension_numbers<[1], [0], [0], [1], [0, 0, 1, 1], [], []>} : vector<1x64xbf16>, vector<64x384xbf16>, vector<1x384xf32> -> vector<1x384xf32>
    %310 = arith.addf %309, %250 : vector<1x384xf32>
    %311 = vector.extract_strided_slice %248 {offsets = [2, 0], sizes = [1, 384], strides = [1, 1]} : vector<8x384xf32> to vector<1x384xf32>
    %312 = vector.extract_strided_slice %311 {offsets = [0, 0], sizes = [1, 256], strides = [1, 1]} : vector<1x384xf32> to vector<1x256xf32>
    %313 = vector.extract_strided_slice %310 {offsets = [0, 0], sizes = [1, 256], strides = [1, 1]} : vector<1x384xf32> to vector<1x256xf32>
    %314 = arith.addf %312, %313 : vector<1x256xf32>
    %315 = arith.negf %314 : vector<1x256xf32>
    %316 = math.exp %315 : vector<1x256xf32>
    %cst_96 = arith.constant 1.000000e+00 : f32
    %317 = vector.broadcast %cst_96 : f32 to vector<1x256xf32>
    %318 = arith.addf %317, %316 : vector<1x256xf32>
    %319 = arith.divf %317, %318 : vector<1x256xf32>
    %320 = vector.extract_strided_slice %319 {offsets = [0, 0], sizes = [1, 128], strides = [1, 1]} : vector<1x256xf32> to vector<1x128xf32>
    %321 = vector.extract_strided_slice %319 {offsets = [0, 128], sizes = [1, 128], strides = [1, 1]} : vector<1x256xf32> to vector<1x128xf32>
    %322 = vector.extract_strided_slice %311 {offsets = [0, 256], sizes = [1, 128], strides = [1, 1]} : vector<1x384xf32> to vector<1x128xf32>
    %323 = vector.extract_strided_slice %310 {offsets = [0, 256], sizes = [1, 128], strides = [1, 1]} : vector<1x384xf32> to vector<1x128xf32>
    %324 = arith.mulf %320, %323 : vector<1x128xf32>
    %325 = arith.addf %322, %324 : vector<1x128xf32>
    %326 = math.tanh %325 : vector<1x128xf32>
    %cst_97 = arith.constant 1.000000e+00 : f32
    %327 = vector.broadcast %cst_97 : f32 to vector<1x128xf32>
    %328 = arith.subf %327, %321 : vector<1x128xf32>
    %329 = arith.mulf %328, %326 : vector<1x128xf32>
    %330 = vector.extract_strided_slice %329 {offsets = [0, 0], sizes = [1, 64], strides = [1, 1]} : vector<1x128xf32> to vector<1x64xf32>
    %331 = vector.extract_strided_slice %321 {offsets = [0, 0], sizes = [1, 64], strides = [1, 1]} : vector<1x128xf32> to vector<1x64xf32>
    %332 = arith.mulf %331, %305 : vector<1x64xf32>
    %333 = arith.addf %330, %332 : vector<1x64xf32>
    %c2_98 = arith.constant 2 : index
    %c0_99 = arith.constant 0 : index
    %334 = vector.load %arg18[%c2_98, %c0_99] : memref<8x64xf32, #tpu.memory_space<vmem>>, vector<1x64xf32>
    tpu.vector_store %arg18[%c2_98, %c0_99], %333 {strides = array<i32>} : memref<8x64xf32, #tpu.memory_space<vmem>>, vector<1x64xf32>,
    %c5_100 = arith.constant 5 : index
    %c0_101 = arith.constant 0 : index
    %335 = vector.load %arg19[%c5_100, %c0_101] : memref<8x64xf32, #tpu.memory_space<vmem>>, vector<1x64xf32>
    tpu.vector_store %arg19[%c5_100, %c0_101], %333 {strides = array<i32>} : memref<8x64xf32, #tpu.memory_space<vmem>>, vector<1x64xf32>,
    %336 = arith.truncf %333 : vector<1x64xf32> to vector<1x64xbf16>
    %cst_102 = arith.constant dense<0.000000e+00> : vector<1x384xf32>
    %337 = tpu.matmul %336, %249, %cst_102 {dimension_numbers = #tpu.dot_dimension_numbers<[1], [0], [0], [1], [0, 0, 1, 1], [], []>} : vector<1x64xbf16>, vector<64x384xbf16>, vector<1x384xf32> -> vector<1x384xf32>
    %338 = arith.addf %337, %250 : vector<1x384xf32>
    %339 = vector.extract_strided_slice %248 {offsets = [3, 0], sizes = [1, 384], strides = [1, 1]} : vector<8x384xf32> to vector<1x384xf32>
    %340 = vector.extract_strided_slice %339 {offsets = [0, 0], sizes = [1, 256], strides = [1, 1]} : vector<1x384xf32> to vector<1x256xf32>
    %341 = vector.extract_strided_slice %338 {offsets = [0, 0], sizes = [1, 256], strides = [1, 1]} : vector<1x384xf32> to vector<1x256xf32>
    %342 = arith.addf %340, %341 : vector<1x256xf32>
    %343 = arith.negf %342 : vector<1x256xf32>
    %344 = math.exp %343 : vector<1x256xf32>
    %cst_103 = arith.constant 1.000000e+00 : f32
    %345 = vector.broadcast %cst_103 : f32 to vector<1x256xf32>
    %346 = arith.addf %345, %344 : vector<1x256xf32>
    %347 = arith.divf %345, %346 : vector<1x256xf32>
    %348 = vector.extract_strided_slice %347 {offsets = [0, 0], sizes = [1, 128], strides = [1, 1]} : vector<1x256xf32> to vector<1x128xf32>
    %349 = vector.extract_strided_slice %347 {offsets = [0, 128], sizes = [1, 128], strides = [1, 1]} : vector<1x256xf32> to vector<1x128xf32>
    %350 = vector.extract_strided_slice %339 {offsets = [0, 256], sizes = [1, 128], strides = [1, 1]} : vector<1x384xf32> to vector<1x128xf32>
    %351 = vector.extract_strided_slice %338 {offsets = [0, 256], sizes = [1, 128], strides = [1, 1]} : vector<1x384xf32> to vector<1x128xf32>
    %352 = arith.mulf %348, %351 : vector<1x128xf32>
    %353 = arith.addf %350, %352 : vector<1x128xf32>
    %354 = math.tanh %353 : vector<1x128xf32>
    %cst_104 = arith.constant 1.000000e+00 : f32
    %355 = vector.broadcast %cst_104 : f32 to vector<1x128xf32>
    %356 = arith.subf %355, %349 : vector<1x128xf32>
    %357 = arith.mulf %356, %354 : vector<1x128xf32>
    %358 = vector.extract_strided_slice %357 {offsets = [0, 0], sizes = [1, 64], strides = [1, 1]} : vector<1x128xf32> to vector<1x64xf32>
    %359 = vector.extract_strided_slice %349 {offsets = [0, 0], sizes = [1, 64], strides = [1, 1]} : vector<1x128xf32> to vector<1x64xf32>
    %360 = arith.mulf %359, %333 : vector<1x64xf32>
    %361 = arith.addf %358, %360 : vector<1x64xf32>
    %c3_105 = arith.constant 3 : index
    %c0_106 = arith.constant 0 : index
    %362 = vector.load %arg18[%c3_105, %c0_106] : memref<8x64xf32, #tpu.memory_space<vmem>>, vector<1x64xf32>
    tpu.vector_store %arg18[%c3_105, %c0_106], %361 {strides = array<i32>} : memref<8x64xf32, #tpu.memory_space<vmem>>, vector<1x64xf32>,
    %c4_107 = arith.constant 4 : index
    %c0_108 = arith.constant 0 : index
    %363 = vector.load %arg19[%c4_107, %c0_108] : memref<8x64xf32, #tpu.memory_space<vmem>>, vector<1x64xf32>
    tpu.vector_store %arg19[%c4_107, %c0_108], %361 {strides = array<i32>} : memref<8x64xf32, #tpu.memory_space<vmem>>, vector<1x64xf32>,
    %364 = arith.truncf %361 : vector<1x64xf32> to vector<1x64xbf16>
    %cst_109 = arith.constant dense<0.000000e+00> : vector<1x384xf32>
    %365 = tpu.matmul %364, %249, %cst_109 {dimension_numbers = #tpu.dot_dimension_numbers<[1], [0], [0], [1], [0, 0, 1, 1], [], []>} : vector<1x64xbf16>, vector<64x384xbf16>, vector<1x384xf32> -> vector<1x384xf32>
    %366 = arith.addf %365, %250 : vector<1x384xf32>
    %367 = vector.extract_strided_slice %248 {offsets = [4, 0], sizes = [1, 384], strides = [1, 1]} : vector<8x384xf32> to vector<1x384xf32>
    %368 = vector.extract_strided_slice %367 {offsets = [0, 0], sizes = [1, 256], strides = [1, 1]} : vector<1x384xf32> to vector<1x256xf32>
    %369 = vector.extract_strided_slice %366 {offsets = [0, 0], sizes = [1, 256], strides = [1, 1]} : vector<1x384xf32> to vector<1x256xf32>
    %370 = arith.addf %368, %369 : vector<1x256xf32>
    %371 = arith.negf %370 : vector<1x256xf32>
    %372 = math.exp %371 : vector<1x256xf32>
    %cst_110 = arith.constant 1.000000e+00 : f32
    %373 = vector.broadcast %cst_110 : f32 to vector<1x256xf32>
    %374 = arith.addf %373, %372 : vector<1x256xf32>
    %375 = arith.divf %373, %374 : vector<1x256xf32>
    %376 = vector.extract_strided_slice %375 {offsets = [0, 0], sizes = [1, 128], strides = [1, 1]} : vector<1x256xf32> to vector<1x128xf32>
    %377 = vector.extract_strided_slice %375 {offsets = [0, 128], sizes = [1, 128], strides = [1, 1]} : vector<1x256xf32> to vector<1x128xf32>
    %378 = vector.extract_strided_slice %367 {offsets = [0, 256], sizes = [1, 128], strides = [1, 1]} : vector<1x384xf32> to vector<1x128xf32>
    %379 = vector.extract_strided_slice %366 {offsets = [0, 256], sizes = [1, 128], strides = [1, 1]} : vector<1x384xf32> to vector<1x128xf32>
    %380 = arith.mulf %376, %379 : vector<1x128xf32>
    %381 = arith.addf %378, %380 : vector<1x128xf32>
    %382 = math.tanh %381 : vector<1x128xf32>
    %cst_111 = arith.constant 1.000000e+00 : f32
    %383 = vector.broadcast %cst_111 : f32 to vector<1x128xf32>
    %384 = arith.subf %383, %377 : vector<1x128xf32>
    %385 = arith.mulf %384, %382 : vector<1x128xf32>
    %386 = vector.extract_strided_slice %385 {offsets = [0, 0], sizes = [1, 64], strides = [1, 1]} : vector<1x128xf32> to vector<1x64xf32>
    %387 = vector.extract_strided_slice %377 {offsets = [0, 0], sizes = [1, 64], strides = [1, 1]} : vector<1x128xf32> to vector<1x64xf32>
    %388 = arith.mulf %387, %361 : vector<1x64xf32>
    %389 = arith.addf %386, %388 : vector<1x64xf32>
    %c4_112 = arith.constant 4 : index
    %c0_113 = arith.constant 0 : index
    %390 = vector.load %arg18[%c4_112, %c0_113] : memref<8x64xf32, #tpu.memory_space<vmem>>, vector<1x64xf32>
    tpu.vector_store %arg18[%c4_112, %c0_113], %389 {strides = array<i32>} : memref<8x64xf32, #tpu.memory_space<vmem>>, vector<1x64xf32>,
    %c3_114 = arith.constant 3 : index
    %c0_115 = arith.constant 0 : index
    %391 = vector.load %arg19[%c3_114, %c0_115] : memref<8x64xf32, #tpu.memory_space<vmem>>, vector<1x64xf32>
    tpu.vector_store %arg19[%c3_114, %c0_115], %389 {strides = array<i32>} : memref<8x64xf32, #tpu.memory_space<vmem>>, vector<1x64xf32>,
    %392 = arith.truncf %389 : vector<1x64xf32> to vector<1x64xbf16>
    %cst_116 = arith.constant dense<0.000000e+00> : vector<1x384xf32>
    %393 = tpu.matmul %392, %249, %cst_116 {dimension_numbers = #tpu.dot_dimension_numbers<[1], [0], [0], [1], [0, 0, 1, 1], [], []>} : vector<1x64xbf16>, vector<64x384xbf16>, vector<1x384xf32> -> vector<1x384xf32>
    %394 = arith.addf %393, %250 : vector<1x384xf32>
    %395 = vector.extract_strided_slice %248 {offsets = [5, 0], sizes = [1, 384], strides = [1, 1]} : vector<8x384xf32> to vector<1x384xf32>
    %396 = vector.extract_strided_slice %395 {offsets = [0, 0], sizes = [1, 256], strides = [1, 1]} : vector<1x384xf32> to vector<1x256xf32>
    %397 = vector.extract_strided_slice %394 {offsets = [0, 0], sizes = [1, 256], strides = [1, 1]} : vector<1x384xf32> to vector<1x256xf32>
    %398 = arith.addf %396, %397 : vector<1x256xf32>
    %399 = arith.negf %398 : vector<1x256xf32>
    %400 = math.exp %399 : vector<1x256xf32>
    %cst_117 = arith.constant 1.000000e+00 : f32
    %401 = vector.broadcast %cst_117 : f32 to vector<1x256xf32>
    %402 = arith.addf %401, %400 : vector<1x256xf32>
    %403 = arith.divf %401, %402 : vector<1x256xf32>
    %404 = vector.extract_strided_slice %403 {offsets = [0, 0], sizes = [1, 128], strides = [1, 1]} : vector<1x256xf32> to vector<1x128xf32>
    %405 = vector.extract_strided_slice %403 {offsets = [0, 128], sizes = [1, 128], strides = [1, 1]} : vector<1x256xf32> to vector<1x128xf32>
    %406 = vector.extract_strided_slice %395 {offsets = [0, 256], sizes = [1, 128], strides = [1, 1]} : vector<1x384xf32> to vector<1x128xf32>
    %407 = vector.extract_strided_slice %394 {offsets = [0, 256], sizes = [1, 128], strides = [1, 1]} : vector<1x384xf32> to vector<1x128xf32>
    %408 = arith.mulf %404, %407 : vector<1x128xf32>
    %409 = arith.addf %406, %408 : vector<1x128xf32>
    %410 = math.tanh %409 : vector<1x128xf32>
    %cst_118 = arith.constant 1.000000e+00 : f32
    %411 = vector.broadcast %cst_118 : f32 to vector<1x128xf32>
    %412 = arith.subf %411, %405 : vector<1x128xf32>
    %413 = arith.mulf %412, %410 : vector<1x128xf32>
    %414 = vector.extract_strided_slice %413 {offsets = [0, 0], sizes = [1, 64], strides = [1, 1]} : vector<1x128xf32> to vector<1x64xf32>
    %415 = vector.extract_strided_slice %405 {offsets = [0, 0], sizes = [1, 64], strides = [1, 1]} : vector<1x128xf32> to vector<1x64xf32>
    %416 = arith.mulf %415, %389 : vector<1x64xf32>
    %417 = arith.addf %414, %416 : vector<1x64xf32>
    %c5_119 = arith.constant 5 : index
    %c0_120 = arith.constant 0 : index
    %418 = vector.load %arg18[%c5_119, %c0_120] : memref<8x64xf32, #tpu.memory_space<vmem>>, vector<1x64xf32>
    tpu.vector_store %arg18[%c5_119, %c0_120], %417 {strides = array<i32>} : memref<8x64xf32, #tpu.memory_space<vmem>>, vector<1x64xf32>,
    %c2_121 = arith.constant 2 : index
    %c0_122 = arith.constant 0 : index
    %419 = vector.load %arg19[%c2_121, %c0_122] : memref<8x64xf32, #tpu.memory_space<vmem>>, vector<1x64xf32>
    tpu.vector_store %arg19[%c2_121, %c0_122], %417 {strides = array<i32>} : memref<8x64xf32, #tpu.memory_space<vmem>>, vector<1x64xf32>,
    %420 = arith.truncf %417 : vector<1x64xf32> to vector<1x64xbf16>
    %cst_123 = arith.constant dense<0.000000e+00> : vector<1x384xf32>
    %421 = tpu.matmul %420, %249, %cst_123 {dimension_numbers = #tpu.dot_dimension_numbers<[1], [0], [0], [1], [0, 0, 1, 1], [], []>} : vector<1x64xbf16>, vector<64x384xbf16>, vector<1x384xf32> -> vector<1x384xf32>
    %422 = arith.addf %421, %250 : vector<1x384xf32>
    %423 = vector.extract_strided_slice %248 {offsets = [6, 0], sizes = [1, 384], strides = [1, 1]} : vector<8x384xf32> to vector<1x384xf32>
    %424 = vector.extract_strided_slice %423 {offsets = [0, 0], sizes = [1, 256], strides = [1, 1]} : vector<1x384xf32> to vector<1x256xf32>
    %425 = vector.extract_strided_slice %422 {offsets = [0, 0], sizes = [1, 256], strides = [1, 1]} : vector<1x384xf32> to vector<1x256xf32>
    %426 = arith.addf %424, %425 : vector<1x256xf32>
    %427 = arith.negf %426 : vector<1x256xf32>
    %428 = math.exp %427 : vector<1x256xf32>
    %cst_124 = arith.constant 1.000000e+00 : f32
    %429 = vector.broadcast %cst_124 : f32 to vector<1x256xf32>
    %430 = arith.addf %429, %428 : vector<1x256xf32>
    %431 = arith.divf %429, %430 : vector<1x256xf32>
    %432 = vector.extract_strided_slice %431 {offsets = [0, 0], sizes = [1, 128], strides = [1, 1]} : vector<1x256xf32> to vector<1x128xf32>
    %433 = vector.extract_strided_slice %431 {offsets = [0, 128], sizes = [1, 128], strides = [1, 1]} : vector<1x256xf32> to vector<1x128xf32>
    %434 = vector.extract_strided_slice %423 {offsets = [0, 256], sizes = [1, 128], strides = [1, 1]} : vector<1x384xf32> to vector<1x128xf32>
    %435 = vector.extract_strided_slice %422 {offsets = [0, 256], sizes = [1, 128], strides = [1, 1]} : vector<1x384xf32> to vector<1x128xf32>
    %436 = arith.mulf %432, %435 : vector<1x128xf32>
    %437 = arith.addf %434, %436 : vector<1x128xf32>
    %438 = math.tanh %437 : vector<1x128xf32>
    %cst_125 = arith.constant 1.000000e+00 : f32
    %439 = vector.broadcast %cst_125 : f32 to vector<1x128xf32>
    %440 = arith.subf %439, %433 : vector<1x128xf32>
    %441 = arith.mulf %440, %438 : vector<1x128xf32>
    %442 = vector.extract_strided_slice %441 {offsets = [0, 0], sizes = [1, 64], strides = [1, 1]} : vector<1x128xf32> to vector<1x64xf32>
    %443 = vector.extract_strided_slice %433 {offsets = [0, 0], sizes = [1, 64], strides = [1, 1]} : vector<1x128xf32> to vector<1x64xf32>
    %444 = arith.mulf %443, %417 : vector<1x64xf32>
    %445 = arith.addf %442, %444 : vector<1x64xf32>
    %c6_126 = arith.constant 6 : index
    %c0_127 = arith.constant 0 : index
    %446 = vector.load %arg18[%c6_126, %c0_127] : memref<8x64xf32, #tpu.memory_space<vmem>>, vector<1x64xf32>
    tpu.vector_store %arg18[%c6_126, %c0_127], %445 {strides = array<i32>} : memref<8x64xf32, #tpu.memory_space<vmem>>, vector<1x64xf32>,
    %c1_128 = arith.constant 1 : index
    %c0_129 = arith.constant 0 : index
    %447 = vector.load %arg19[%c1_128, %c0_129] : memref<8x64xf32, #tpu.memory_space<vmem>>, vector<1x64xf32>
    tpu.vector_store %arg19[%c1_128, %c0_129], %445 {strides = array<i32>} : memref<8x64xf32, #tpu.memory_space<vmem>>, vector<1x64xf32>,
    %448 = arith.truncf %445 : vector<1x64xf32> to vector<1x64xbf16>
    %cst_130 = arith.constant dense<0.000000e+00> : vector<1x384xf32>
    %449 = tpu.matmul %448, %249, %cst_130 {dimension_numbers = #tpu.dot_dimension_numbers<[1], [0], [0], [1], [0, 0, 1, 1], [], []>} : vector<1x64xbf16>, vector<64x384xbf16>, vector<1x384xf32> -> vector<1x384xf32>
    %450 = arith.addf %449, %250 : vector<1x384xf32>
    %451 = vector.extract_strided_slice %248 {offsets = [7, 0], sizes = [1, 384], strides = [1, 1]} : vector<8x384xf32> to vector<1x384xf32>
    %452 = vector.extract_strided_slice %451 {offsets = [0, 0], sizes = [1, 256], strides = [1, 1]} : vector<1x384xf32> to vector<1x256xf32>
    %453 = vector.extract_strided_slice %450 {offsets = [0, 0], sizes = [1, 256], strides = [1, 1]} : vector<1x384xf32> to vector<1x256xf32>
    %454 = arith.addf %452, %453 : vector<1x256xf32>
    %455 = arith.negf %454 : vector<1x256xf32>
    %456 = math.exp %455 : vector<1x256xf32>
    %cst_131 = arith.constant 1.000000e+00 : f32
    %457 = vector.broadcast %cst_131 : f32 to vector<1x256xf32>
    %458 = arith.addf %457, %456 : vector<1x256xf32>
    %459 = arith.divf %457, %458 : vector<1x256xf32>
    %460 = vector.extract_strided_slice %459 {offsets = [0, 0], sizes = [1, 128], strides = [1, 1]} : vector<1x256xf32> to vector<1x128xf32>
    %461 = vector.extract_strided_slice %459 {offsets = [0, 128], sizes = [1, 128], strides = [1, 1]} : vector<1x256xf32> to vector<1x128xf32>
    %462 = vector.extract_strided_slice %451 {offsets = [0, 256], sizes = [1, 128], strides = [1, 1]} : vector<1x384xf32> to vector<1x128xf32>
    %463 = vector.extract_strided_slice %450 {offsets = [0, 256], sizes = [1, 128], strides = [1, 1]} : vector<1x384xf32> to vector<1x128xf32>
    %464 = arith.mulf %460, %463 : vector<1x128xf32>
    %465 = arith.addf %462, %464 : vector<1x128xf32>
    %466 = math.tanh %465 : vector<1x128xf32>
    %cst_132 = arith.constant 1.000000e+00 : f32
    %467 = vector.broadcast %cst_132 : f32 to vector<1x128xf32>
    %468 = arith.subf %467, %461 : vector<1x128xf32>
    %469 = arith.mulf %468, %466 : vector<1x128xf32>
    %470 = vector.extract_strided_slice %469 {offsets = [0, 0], sizes = [1, 64], strides = [1, 1]} : vector<1x128xf32> to vector<1x64xf32>
    %471 = vector.extract_strided_slice %461 {offsets = [0, 0], sizes = [1, 64], strides = [1, 1]} : vector<1x128xf32> to vector<1x64xf32>
    %472 = arith.mulf %471, %445 : vector<1x64xf32>
    %473 = arith.addf %470, %472 : vector<1x64xf32>
    %c7_133 = arith.constant 7 : index
    %c0_134 = arith.constant 0 : index
    %474 = vector.load %arg18[%c7_133, %c0_134] : memref<8x64xf32, #tpu.memory_space<vmem>>, vector<1x64xf32>
    tpu.vector_store %arg18[%c7_133, %c0_134], %473 {strides = array<i32>} : memref<8x64xf32, #tpu.memory_space<vmem>>, vector<1x64xf32>,
    %c0_135 = arith.constant 0 : index
    %c0_136 = arith.constant 0 : index
    %475 = vector.load %arg19[%c0_135, %c0_136] : memref<8x64xf32, #tpu.memory_space<vmem>>, vector<1x64xf32>
    tpu.vector_store %arg19[%c0_135, %c0_136], %473 {strides = array<i32>} : memref<8x64xf32, #tpu.memory_space<vmem>>, vector<1x64xf32>,
    %c0_137 = arith.constant 0 : index
    %c0_138 = arith.constant 0 : index
    %476 = vector.load %arg18[%c0_137, %c0_138] : memref<8x64xf32, #tpu.memory_space<vmem>>, vector<8x64xf32>
    %477 = arith.truncf %476 : vector<8x64xf32> to vector<8x64xbf16>
    %c0_139 = arith.constant 0 : index
    %c0_140 = arith.constant 0 : index
    %478 = vector.load %arg12[%c0_139, %c0_140] : memref<64x128xbf16, #tpu.memory_space<vmem>>, vector<64x128xbf16>
    %cst_141 = arith.constant dense<0.000000e+00> : vector<8x128xf32>
    %479 = tpu.matmul %477, %478, %cst_141 {dimension_numbers = #tpu.dot_dimension_numbers<[1], [0], [0], [1], [0, 0, 1, 1], [], []>} : vector<8x64xbf16>, vector<64x128xbf16>, vector<8x128xf32> -> vector<8x128xf32>
    %c0_142 = arith.constant 0 : index
    %c0_143 = arith.constant 0 : index
    %480 = vector.load %arg19[%c0_142, %c0_143] : memref<8x64xf32, #tpu.memory_space<vmem>>, vector<8x64xf32>
    %481 = arith.truncf %480 : vector<8x64xf32> to vector<8x64xbf16>
    %c0_144 = arith.constant 0 : index
    %c0_145 = arith.constant 0 : index
    %482 = vector.load %arg13[%c0_144, %c0_145] : memref<64x128xbf16, #tpu.memory_space<vmem>>, vector<64x128xbf16>
    %cst_146 = arith.constant dense<0.000000e+00> : vector<8x128xf32>
    %483 = tpu.matmul %481, %482, %cst_146 {dimension_numbers = #tpu.dot_dimension_numbers<[1], [0], [0], [1], [0, 0, 1, 1], [], []>} : vector<8x64xbf16>, vector<64x128xbf16>, vector<8x128xf32> -> vector<8x128xf32>
    %484 = arith.addf %479, %483 : vector<8x128xf32>
    %c0_147 = arith.constant 0 : index
    %c0_148 = arith.constant 0 : index
    %485 = vector.load %arg14[%c0_147, %c0_148] : memref<1x128xf32, #tpu.memory_space<vmem>>, vector<1x128xf32>
    %486 = vector.broadcast %485 : vector<1x128xf32> to vector<8x128xf32>
    %487 = arith.addf %484, %486 : vector<8x128xf32>
    %488 = arith.negf %487 : vector<8x128xf32>
    %489 = math.exp %488 : vector<8x128xf32>
    %cst_149 = arith.constant 1.000000e+00 : f32
    %490 = vector.broadcast %cst_149 : f32 to vector<8x128xf32>
    %491 = arith.addf %490, %489 : vector<8x128xf32>
    %492 = arith.divf %490, %491 : vector<8x128xf32>
    %c0_150 = arith.constant 0 : index
    %c0_151 = arith.constant 0 : index
    %493 = vector.load %arg15[%c0_150, %c0_151] : memref<8x128xf32, #tpu.memory_space<vmem>>, vector<8x128xf32>
    tpu.vector_store %arg15[%c0_150, %c0_151], %492 {strides = array<i32>} : memref<8x128xf32, #tpu.memory_space<vmem>>, vector<8x128xf32>,
    return
  }
}

</mosaic_0001>

<bundles_post_ra>
// kernel: forward.1
= control target key start
LH: loop header
LB: loop body
LE: loop exit
PB: predicated region body
PF: predicated region fallthrough
CT: control target
= control target key end

     0   :  { %v4117_v1 = vmov 0.0   ;;  %v4118_v3 = vmov 0   ;;  %vm4119_vm0 = vmmov 0   ;;  %s5161_s0 = inlined_call_operand.vmem [shape: bf16[8,128], index: 0, kind: input, shape index: {}]   ;;  %s5162_s1 = inlined_call_operand.vmem [shape: bf16[8,128], index: 1, kind: input, shape index: {}]   ;;  %s5163_s2 = inlined_call_operand.vmem [shape: bf16[128,384], index: 2, kind: input, shape index: {}]   ;;  %s5164_s3 = inlined_call_operand.vmem [shape: bf16[128,384], index: 3, kind: input, shape index: {}]   ;;  %s5165_s4 = inlined_call_operand.vmem [shape: f32[1,384], index: 4, kind: input, shape index: {}]   ;;  %s5166_s5 = inlined_call_operand.vmem [shape: bf16[64,384], index: 5, kind: input, shape index: {}]   ;;  %s5167_s6 = inlined_call_operand.vmem [shape: f32[1,384], index: 6, kind: input, shape index: {}]   ;;  %s5168_s7 = inlined_call_operand.vmem [shape: bf16[64,384], index: 7, kind: input, shape index: {}]   ;;  %s5169_s8 = inlined_call_operand.vmem [shape: bf16[64,384], index: 8, kind: input, shape index: {}]   ;;  %s5170_s9 = inlined_call_operand.vmem [shape: f32[1,384], index: 9, kind: input, shape index: {}]   ;;  %s5171_s10 = inlined_call_operand.vmem [shape: bf16[64,384], index: 10, kind: input, shape index: {}]   ;;  %s5172_s11 = inlined_call_operand.vmem [shape: f32[1,384], index: 11, kind: input, shape index: {}]   ;;  %s5173_s12 = inlined_call_operand.vmem [shape: bf16[64,128], index: 12, kind: input, shape index: {}]   ;;  %s5174_s13 = inlined_call_operand.vmem [shape: bf16[64,128], index: 13, kind: input, shape index: {}]   ;;  %s5175_s14 = inlined_call_operand.vmem [shape: f32[1,128], index: 14, kind: input, shape index: {}]   ;;  %s5176_s15 = inlined_call_operand.hbm [shape: f32[8,128], index: 15, kind: output, shape index: {}]  }
   0x1   :  { %v3793_v0 = vld [vmem:[%s5164_s3 + $0x4] ss:$12 sps:$4 sm:$0xff]   ;;  %3509 = vmatprep.subr.bf16.mxu1 %v4117_v1  ;;  %v3795_v2 = vld [vmem:[%s5164_s3 + $0x8] ss:$12 sps:$4 sm:$0xff]   ;;  %278 = vmatprep.mubr.bf16.mxu0 %v4118_v3  ;;  %v3796_v4 = vld [vmem:[%s5164_s3] ss:$12 sps:$4 sm:$0xff]  }
   0x2   :  { %246 = vmatprep.subr.bf16.mxu0 %v3793_v0  ;;  %3510 = vmatpush3.bf16.msra.mxu1 %v3795_v2  ;;  %v3797_v5 = vld [vmem:[%s5164_s3 + $0x1c] ss:$12 sps:$4 sm:$0xff]   ;;  %v3799_v6 = vld [vmem:[%s5164_s3 + $0x20] ss:$12 sps:$4 sm:$0xff]   ;;  %v3800_v7 = vld [vmem:[%s5164_s3 + $0x18] ss:$12 sps:$4 sm:$0xff]  }
   0x3   :  { %3525 = vmatprep.mubr.msk.bf16.mxu1 %vm4119_vm0, %v4117_v1  ;;  %247 = vmatpush1.bf16.msra.mxu0 %v3796_v4  ;;  %v3801_v8 = vld [vmem:[%s5164_s3 + $0x34] ss:$12 sps:$4 sm:$0xff]   ;;  %v3803_v9 = vld [vmem:[%s5164_s3 + $0x38] ss:$12 sps:$4 sm:$0xff]   ;;  %v3804_v10 = vld [vmem:[%s5164_s3 + $0x30] ss:$12 sps:$4 sm:$0xff]  }
   0x4   :  { %3511 = vmatprep.subr.bf16.mxu1 %v4117_v1  ;;  %248 = vmatprep.subr.bf16.mxu0 %v3797_v5  ;;  %v3805_v11 = vld [vmem:[%s5164_s3 + $0x4c] ss:$12 sps:$4 sm:$0xff]   ;;  %v3807_v12 = vld [vmem:[%s5164_s3 + $0x50] ss:$12 sps:$4 sm:$0xff]   ;;  %v3808_v13 = vld [vmem:[%s5164_s3 + $0x48] ss:$12 sps:$4 sm:$0xff]  }
   0x5   :  { %v3809_v14 = vld [vmem:[%s5164_s3 + $0x64] ss:$12 sps:$4 sm:$0xff]   ;;  %v3811_v15 = vld [vmem:[%s5164_s3 + $0x68] ss:$12 sps:$4 sm:$0xff]   ;;  %v3812_v16 = vld [vmem:[%s5164_s3 + $0x60] ss:$12 sps:$4 sm:$0xff]  }
   0x6   :  { %3512 = vmatpush3.bf16.msra.mxu1 %v3799_v6  ;;  %v3813_v17 = vld [vmem:[%s5164_s3 + $0x7c] ss:$12 sps:$4 sm:$0xff]   ;;  %v3815_v18 = vld [vmem:[%s5164_s3 + $0x80] ss:$12 sps:$4 sm:$0xff]   ;;  %v3816_v19 = vld [vmem:[%s5164_s3 + $0x78] ss:$12 sps:$4 sm:$0xff]  }
   0x7   :  { %249 = vmatpush1.bf16.msra.mxu0 %v3800_v7  ;;  %3513 = vmatprep.subr.bf16.mxu1 %v4117_v1  ;;  %v3817_v20 = vld [vmem:[%s5164_s3 + $0x94] ss:$12 sps:$4 sm:$0xff]   ;;  %v3819_v21 = vld [vmem:[%s5164_s3 + $0x98] ss:$12 sps:$4 sm:$0xff]   ;;  %v3820_v22 = vld [vmem:[%s5164_s3 + $0x90] ss:$12 sps:$4 sm:$0xff]  }
   0x8   :  { %250 = vmatprep.subr.bf16.mxu0 %v3801_v8  ;;  %v3821_v23 = vld [vmem:[%s5164_s3 + $0xac] ss:$12 sps:$4 sm:$0xff]   ;;  %v3823_v24 = vld [vmem:[%s5164_s3 + $0xb0] ss:$12 sps:$4 sm:$0xff]   ;;  %v3824_v25 = vld [vmem:[%s5164_s3 + $0xa8] ss:$12 sps:$4 sm:$0xff]  }
   0x9   :  { %v3827_v26 = vld [vmem:[%s5163_s2 + $0x4] ss:$12 sps:$4 sm:$0xff]   ;;  %v53_v27 = vld [vmem:[%s5162_s1] sm:$0xf]  ;;  %v3828_v28 = vld [vmem:[%s5163_s2 + $0x8] ss:$12 sps:$4 sm:$0xff]  }
   0xa   :  { %3514 = vmatpush3.bf16.msra.mxu1 %v3803_v9  ;;  %v3825_v29 = vld [vmem:[%s5163_s2] ss:$12 sps:$4 sm:$0xff]   ;;  %v3831_v30 = vld [vmem:[%s5163_s2 + $0x1c] ss:$12 sps:$4 sm:$0xff]   ;;  %v3829_v32 = vld [vmem:[%s5163_s2 + $0x18] ss:$12 sps:$4 sm:$0xff]  }
   0xb   :  { %251 = vmatpush1.bf16.msra.mxu0 %v3804_v10  ;;  %3515 = vmatprep.subr.bf16.mxu1 %v4117_v1  ;;  %v3832_v31 = vld [vmem:[%s5163_s2 + $0x20] ss:$12 sps:$4 sm:$0xff]   ;;  %v3836_v34 = vld [vmem:[%s5163_s2 + $0x38] ss:$12 sps:$4 sm:$0xff]   ;;  %v3833_v35 = vld [vmem:[%s5163_s2 + $0x30] ss:$12 sps:$4 sm:$0xff]  }
   0xc   :  { %252 = vmatprep.subr.bf16.mxu0 %v3805_v11  ;;  %v3835_v33 = vld [vmem:[%s5163_s2 + $0x34] ss:$12 sps:$4 sm:$0xff]   ;;  %v3839_v36 = vld [vmem:[%s5163_s2 + $0x4c] ss:$12 sps:$4 sm:$0xff]   ;;  %v3840_v37 = vld [vmem:[%s5163_s2 + $0x50] ss:$12 sps:$4 sm:$0xff]  }
   0xd   :  { %v3837_v38 = vld [vmem:[%s5163_s2 + $0x48] ss:$12 sps:$4 sm:$0xff]   ;;  %v3843_v39 = vld [vmem:[%s5163_s2 + $0x64] ss:$12 sps:$4 sm:$0xff]   ;;  %v3841_v40 = vld [vmem:[%s5163_s2 + $0x60] ss:$12 sps:$4 sm:$0xff]  }
   0xe   :  { %3516 = vmatpush3.bf16.msra.mxu1 %v3807_v12  ;;  %v3844_v41 = vld [vmem:[%s5163_s2 + $0x68] ss:$12 sps:$4 sm:$0xff]   ;;  %v3848_v43 = vld [vmem:[%s5163_s2 + $0x80] ss:$12 sps:$4 sm:$0xff]   ;;  %v3845_v44 = vld [vmem:[%s5163_s2 + $0x78] ss:$12 sps:$4 sm:$0xff]  }
   0xf   :  { %253 = vmatpush1.bf16.msra.mxu0 %v3808_v13  ;;  %3517 = vmatprep.subr.bf16.mxu1 %v4117_v1  ;;  %v3847_v42 = vld [vmem:[%s5163_s2 + $0x7c] ss:$12 sps:$4 sm:$0xff]   ;;  %v3851_v45 = vld [vmem:[%s5163_s2 + $0x94] ss:$12 sps:$4 sm:$0xff]   ;;  %v3852_v46 = vld [vmem:[%s5163_s2 + $0x98] ss:$12 sps:$4 sm:$0xff]  }
  0x10   :  { %254 = vmatprep.subr.bf16.mxu0 %v3809_v14  ;;  %v3849_v47 = vld [vmem:[%s5163_s2 + $0x90] ss:$12 sps:$4 sm:$0xff]   ;;  %v3855_v48 = vld [vmem:[%s5163_s2 + $0xac] ss:$12 sps:$4 sm:$0xff]   ;;  %v3853_v50 = vld [vmem:[%s5163_s2 + $0xa8] ss:$12 sps:$4 sm:$0xff]  }
  0x11   :  { %v3856_v49 = vld [vmem:[%s5163_s2 + $0xb0] ss:$12 sps:$4 sm:$0xff]   ;;  %v52_v52 = vld [vmem:[%s5161_s0] sm:$0xf]  ;;  %v4381_v53 = vld [vmem:[%s5166_s5 + $0x8] ss:$12 sps:$4 sm:$0xff]  }
  0x12   :  { %3518 = vmatpush3.bf16.msra.mxu1 %v3811_v15  ;;  %v4372_v51 = vld [vmem:[%s5166_s5 + $0x4] ss:$12 sps:$4 sm:$0xff]   ;;  %v4386_v54 = vld [vmem:[%s5166_s5] ss:$12 sps:$4 sm:$0xff]   ;;  %v4391_v55 = vld [vmem:[%s5166_s5 + $0x1c] ss:$12 sps:$4 sm:$0xff]  }
  0x13   :  { %255 = vmatpush1.bf16.msra.mxu0 %v3812_v16  ;;  %3519 = vmatprep.subr.bf16.mxu1 %v4117_v1  ;;  %v4398_v56 = vld [vmem:[%s5166_s5 + $0x20] ss:$12 sps:$4 sm:$0xff]   ;;  %v4403_v57 = vld [vmem:[%s5166_s5 + $0x18] ss:$12 sps:$4 sm:$0xff]  }
  0x14   :  { %256 = vmatprep.subr.bf16.mxu0 %v3813_v17 }
  0x16   :  { %3520 = vmatpush3.bf16.msra.mxu1 %v3815_v18 }
  0x17   :  { %257 = vmatpush1.bf16.msra.mxu0 %v3816_v19  ;;  %3521 = vmatprep.subr.bf16.mxu1 %v4117_v1 }
  0x18   :  { %258 = vmatprep.subr.bf16.mxu0 %v3817_v20 }
  0x1a   :  { %3522 = vmatpush3.bf16.msra.mxu1 %v3819_v21 }
  0x1b   :  { %259 = vmatpush1.bf16.msra.mxu0 %v3820_v22  ;;  %3523 = vmatprep.subr.bf16.mxu1 %v4117_v1 }
  0x1c   :  { %260 = vmatprep.subr.bf16.mxu0 %v3821_v23 }
  0x1e   :  { %3524 = vmatpush3.bf16.msra.mxu1 %v3823_v24 }
  0x1f   :  { %261 = vmatpush1.bf16.msra.mxu0 %v3824_v25  ;;  %3529 = vmatprep.subr.bf16.mxu1 %v4117_v1 }
  0x20   :  { %455 = vmatprep.subr.bf16.mxu0 %v3827_v26 }
  0x21   :  { %3526 = vmatmul.mubr.bf16.vlgmr.msra.gmra.mrb[0].mxu1 %v53_v27 }
  0x22   :  { %279 = vmatmul.mubr.bf16.vlgmr.msra.gmra.mrb[0].mxu0 %v53_v27  ;;  %3530 = vmatpush3.bf16.msra.mxu1 %v3828_v28 }
  0x23   :  { %456 = vmatpush1.bf16.msra.mxu0 %v3825_v29  ;;  %3531 = vmatprep.subr.bf16.mxu1 %v4117_v1 }
  0x24   :  { %457 = vmatprep.subr.bf16.mxu0 %v3831_v30  ;;  %3545 = vmatprep.mubr.msk.bf16.mxu1 %vm4119_vm0, %v4117_v1 }
  0x25   :  { %487 = vmatprep.mubr.bf16.mxu0 %v4118_v3 }
  0x26   :  { %3532 = vmatpush3.bf16.msra.mxu1 %v3832_v31 }
  0x27   :  { %458 = vmatpush1.bf16.msra.mxu0 %v3829_v32  ;;  %3533 = vmatprep.subr.bf16.mxu1 %v4117_v1 }
  0x28   :  { %459 = vmatprep.subr.bf16.mxu0 %v3835_v33 }
  0x2a   :  { %3534 = vmatpush3.bf16.msra.mxu1 %v3836_v34 }
  0x2b   :  { %460 = vmatpush1.bf16.msra.mxu0 %v3833_v35  ;;  %3535 = vmatprep.subr.bf16.mxu1 %v4117_v1 }
  0x2c   :  { %461 = vmatprep.subr.bf16.mxu0 %v3839_v36 }
  0x2e   :  { %3536 = vmatpush3.bf16.msra.mxu1 %v3840_v37 }
  0x2f   :  { %462 = vmatpush1.bf16.msra.mxu0 %v3837_v38  ;;  %3537 = vmatprep.subr.bf16.mxu1 %v4117_v1 }
  0x30   :  { %463 = vmatprep.subr.bf16.mxu0 %v3843_v39 }
  0x32   :  { %3538 = vmatpush3.bf16.msra.mxu1 %v3844_v41 }
  0x33   :  { %464 = vmatpush1.bf16.msra.mxu0 %v3841_v40  ;;  %3539 = vmatprep.subr.bf16.mxu1 %v4117_v1 }
  0x34   :  { %465 = vmatprep.subr.bf16.mxu0 %v3847_v42 }
  0x36   :  { %3540 = vmatpush3.bf16.msra.mxu1 %v3848_v43 }
  0x37   :  { %466 = vmatpush1.bf16.msra.mxu0 %v3845_v44  ;;  %3541 = vmatprep.subr.bf16.mxu1 %v4117_v1 }
  0x38   :  { %467 = vmatprep.subr.bf16.mxu0 %v3851_v45 }
  0x3a   :  { %3542 = vmatpush3.bf16.msra.mxu1 %v3852_v46 }
  0x3b   :  { %468 = vmatpush1.bf16.msra.mxu0 %v3849_v47  ;;  %3543 = vmatprep.subr.bf16.mxu1 %v4117_v1 }
  0x3c   :  { %469 = vmatprep.subr.bf16.mxu0 %v3855_v48 }
  0x3e   :  { %3544 = vmatpush3.bf16.msra.mxu1 %v3856_v49 }
  0x3f   :  { %470 = vmatpush1.bf16.msra.mxu0 %v3853_v50  ;;  %3549 = vmatprep.subr.bf16.mxu1 %v4117_v1 }
  0x40   :  { %657 = vmatprep.subr.bf16.mxu0 %v4372_v51 }
  0x41   :  { %3546 = vmatmul.mubr.bf16.vlgmr.msra.gmra.mrb[4].mxu1 %v52_v52 }
  0x42   :  { %488 = vmatmul.mubr.bf16.vlgmr.msra.gmra.mrb[4].mxu0 %v52_v52  ;;  %3550 = vmatpush3.bf16.msra.mxu1 %v4381_v53 }
  0x43   :  { %658 = vmatpush1.bf16.msra.mxu0 %v4386_v54  ;;  %689 = vmatprep.mubr.bf16.mxu0 %v4118_v3 }
  0x44   :  { %20 = vsyncpa [#allocation7], 0  ;;  %659 = vmatprep.subr.bf16.mxu0 %v4391_v55  ;;  %v4412_v58 = vld [vmem:[%s5166_s5 + $0x34] ss:$12 sps:$4 sm:$0xff]   ;;  %3551 = vmatprep.subr.bf16.mxu1 %v4117_v1  ;;  %v4421_v59 = vld [vmem:[%s5166_s5 + $0x38] ss:$12 sps:$4 sm:$0xff]   ;;  %v538_v14 = vlaneseq }
  0x45   :  { %3557 = vmatprep.mubr.msk.bf16.mxu1 %vm4119_vm0, %v4117_v1  ;;  %v4427_v60 = vld [vmem:[%s5166_s5 + $0x30] ss:$12 sps:$4 sm:$0xff]   ;;  %v4434_v61 = vld [vmem:[%s5166_s5 + $0x4c] ss:$12 sps:$4 sm:$0xff]   ;;  %v4446_v63 = vld [vmem:[%s5166_s5 + $0x48] ss:$12 sps:$4 sm:$0xff]  }
  0x46   :  { %3552 = vmatpush3.bf16.msra.mxu1 %v4398_v56  ;;  %v4440_v62 = vld [vmem:[%s5166_s5 + $0x50] ss:$12 sps:$4 sm:$0xff]   ;;  %v539_v22 = vshrl.u32 %v538_v14, 7  ;;  %v536_v24 = vld [vmem:[%s5165_s4] sm:$0x7]  ;;  %vm759_vm1 = vcmask 516096  }
  0x47   :  { %660 = vmatpush1.bf16.msra.mxu0 %v4403_v57  ;;  %3553 = vmatprep.subr.bf16.mxu1 %v4117_v1  ;;  %v572_v25 = vld [vmem:[%s5167_s6] sm:$0x7]  ;;  %vm653_vm2 = vcmask 523264   ;;  %vm880_vm3 = vcmask 517121   ;;  %vm1004_vm4 = vcmask 518146   ;;  %vm1127_vm5 = vcmask 519171  }
  0x48   :  { %661 = vmatprep.subr.bf16.mxu0 %v4412_v58  ;;  %v4475_v23 = vsub.s32 0, %v539_v22  ;;  %v4483_v26 = vsub.s32 1, %v539_v22  ;;  %v4501_v49 = vsub.s32 2, %v539_v22  ;;  %vm1252_vm6 = vcmask 520196   ;;  %s4120_s5 = smov [#allocation6]  }
  0x49   :  { %vm1375_vm7 = vcmask 521221   ;;  %vm1500_vm8 = vcmask 522246   ;;  %vm1623_vm9 = vcmask 523271   ;;  %s3211_s26 = sshll.u32 %s4120_s5, 4  ;;  %s3212_s26 = int_to_ptr.vmem [resolvable:$true] %s3211_s26 }
  0x4a   :  { %3554 = vmatpush3.bf16.msra.mxu1 %v4421_v59  ;;  %v541_v27 = vrot.slane %v536_v24, %v4475_v23  ;;  %v4487_v28 = vrot.slane %v572_v25, %v4475_v23  ;;  %v4490_v29 = vrot.slane %v572_v25, %v4483_v26  ;;  %v545_v31 = vrot.slane %v536_v24, %v4483_v26  ;;  %s4093_s27 = scalar_lea.vmem %s3212_s26, 128  ;;  %p4098_p1 = scmp.lt.s32.totalorder %s3212_s26, %s3212_s26 }
  0x4b   :  { %662 = vmatpush1.bf16.msra.mxu0 %v4427_v60  ;;  %3555 = vmatprep.subr.bf16.mxu1 %v4117_v1  ;;  %v4504_v50 = vrot.slane %v572_v25, %v4501_v49  ;;  %p4094_p0 = scmp.ne.s32.totalorder %s3212_s26, %s4093_s27  ;;  %p4099_p2 = scmp.lt.s32.totalorder %s4093_s27, %s4093_s27 }
  0x4c   :  { %663 = vmatprep.subr.bf16.mxu0 %v4434_v61 }
  0x4d   :  { %p4100_p3 = por %p4099_p2, %p4098_p1 }
  0x4e   :  { %3556 = vmatpush3.bf16.msra.mxu1 %v4440_v62 }
  0x4f   :  { %664 = vmatpush1.bf16.msra.mxu0 %v4446_v63  ;;  %3561 = vmatprep.subr.bf16.mxu1 %v4117_v1  ;;  %p4101_p4 = pnand %p4100_p3, %p4094_p0 }
  0x50   :  { %766 = vmatprep.subr.bf16.mxu0 %v4372_v51 }
  0x51   :  { %3558 = vmatmul.mubr.bf16.vlgmr.msra.gmra.mrb[8].mxu1 %v4118_v3 }
  0x52   :  { %690 = vmatmul.mubr.bf16.vlgmr.msra.gmra.mrb[8].mxu0 %v4118_v3  ;;  %3562 = vmatpush3.bf16.msra.mxu1 %v4381_v53 }
  0x53   :  { %767 = vmatpush1.bf16.msra.mxu0 %v4386_v54  ;;  %3563 = vmatprep.subr.bf16.mxu1 %v4117_v1 }
  0x54   :  { %768 = vmatprep.subr.bf16.mxu0 %v4391_v55  ;;  %798 = vmatprep.mubr.bf16.mxu0 %v4118_v3 }
  0x55   :  { %3569 = vmatprep.mubr.msk.bf16.mxu1 %vm4119_vm0, %v4117_v1 }
  0x56   :  { %3564 = vmatpush3.bf16.msra.mxu1 %v4398_v56 }
  0x57   :  { %769 = vmatpush1.bf16.msra.mxu0 %v4403_v57  ;;  %3565 = vmatprep.subr.bf16.mxu1 %v4117_v1 }
  0x58   :  { %770 = vmatprep.subr.bf16.mxu0 %v4412_v58 }
  0x5a   :  { %3566 = vmatpush3.bf16.msra.mxu1 %v4421_v59 }
  0x5b   :  { %771 = vmatpush1.bf16.msra.mxu0 %v4427_v60  ;;  %3567 = vmatprep.subr.bf16.mxu1 %v4117_v1 }
  0x5c   :  { %772 = vmatprep.subr.bf16.mxu0 %v4434_v61 }
  0x5e   :  { %3568 = vmatpush3.bf16.msra.mxu1 %v4440_v62 }
  0x5f   :  { %773 = vmatpush1.bf16.msra.mxu0 %v4446_v63  ;;  %3573 = vmatprep.subr.bf16.mxu1 %v4117_v1 }
  0x60   :  { %890 = vmatprep.subr.bf16.mxu0 %v4372_v51 }
  0xf4   :  { %v321_v0 = vpop.f32.mrb[0].mxu1 }
  0xf5   :  { %v280_v2 = vpop.f32.mrb[0].mxu0  ;;  %v3527_v4 = vpop.f32.mrb[1].mxu1 }
  0xf6   :  { %v282_v5 = vpop.f32.mrb[1].mxu0  ;;  %v324_v6 = vpop.f32.mrb[2].mxu1 }
  0xf7   :  { %v284_v7 = vpop.f32.mrb[2].mxu0  ;;  %v3528_v8 = vpop.f32.mrb[3].mxu1 }
  0xf8   :  { %v285_v9 = vpop.f32.mrb[3].mxu0 }
 0x114   :  { %v530_v10 = vpop.f32.mrb[4].mxu1 }
 0x115   :  { %v531_v11 = vadd.f32 %v530_v10, %v321_v0  ;;  %v489_v12 = vpop.f32.mrb[4].mxu0  ;;  %v3547_v13 = vpop.f32.mrb[5].mxu1  ;;  %v549_v0 = vrot.slane %v536_v24, %v4501_v49 }
 0x116   :  { %v490_v15 = vadd.f32 %v489_v12, %v280_v2  ;;  %v491_v16 = vpop.f32.mrb[5].mxu0  ;;  %v533_v17 = vpop.f32.mrb[6].mxu1 }
 0x117   :  { %v492_v18 = vadd.f32 %v491_v16, %v282_v5  ;;  %v493_v19 = vpop.f32.mrb[6].mxu0  ;;  %v3548_v20 = vpop.f32.mrb[7].mxu1  ;;  %v4508_v6 = vadd.f32 %v549_v0, %v531_v11 }
 0x118   :  { %v494_v21 = vpop.f32.mrb[7].mxu0  ;;  %v4493_v34 = vadd.f32 %v541_v27, %v490_v15 }
 0x119   :  { %v4498_v43 = vadd.f32 %v545_v31, %v492_v18 }
 0x124   :  { %v732_v30 = vpop.f32.mrb[8].mxu1 }
 0x125   :  { %v691_v32 = vpop.f32.mrb[8].mxu0  ;;  %v3559_v33 = vpop.f32.mrb[9].mxu1  ;;  %v733_v4 = vadd.f32 %v732_v30, %v4504_v50 }
 0x126   :  { %v692_v35 = vadd.f32 %v691_v32, %v4487_v28  ;;  %v693_v36 = vpop.f32.mrb[9].mxu0  ;;  %v735_v37 = vpop.f32.mrb[10].mxu1 }
 0x127   :  { %v694_v38 = vadd.f32 %v693_v36, %v4490_v29  ;;  %v695_v39 = vpop.f32.mrb[10].mxu0  ;;  %v3560_v40 = vpop.f32.mrb[11].mxu1 }
 0x128   :  { %v738_v41 = vadd.f32 %v692_v35, %v4493_v34  ;;  %v696_v42 = vpop.f32.mrb[11].mxu0 }
 0x129   :  { %v739_v45 = vadd.f32 %v694_v38, %v4498_v43 }
 0x12a   :  { %v3279_v44 = vmul.f32 -1.442695, %v738_v41 }
 0x12b   :  { %v3280_v46 = vmul.f32 -1.442695, %v739_v45 }
 0x12c   :  { %3929 = vpow2.f32 %v3279_v44 }
 0x12d   :  { %3931 = vpow2.f32 %v3280_v46 }
 0x136   :  { %v3930_v47 = vpop.eup %3929 }
 0x137   :  { %v746_v48 = vadd.f32 1.0, %v3930_v47  ;;  %v3932_v52 = vpop.eup %3931 }
 0x138   :  { %v747_v2 = vadd.f32 1.0, %v3932_v52 }
 0x139   :  { %3933 = vrcp.f32 %v746_v48 }
 0x13a   :  { %3935 = vrcp.f32 %v747_v2 }
 0x143   :  { %v3934_v5 = vpop.eup %3933 }
 0x144   :  { %v752_v7 = vmul.f32 %v3934_v5, %v733_v4  ;;  %v3936_v9 = vpop.eup %3935 }
 0x145   :  { %v755_v10 = vsub.f32 1.0, %v3936_v9  ;;  %v757_v13 = vmul.f32 0.0, %v3936_v9 }
 0x146   :  { %v753_v8 = vadd.f32 %v752_v7, %v4508_v6 }
 0x148   :  { %3937 = vtanh.f32 %v753_v8 }
 0x152   :  { %v3938_v12 = vpop.eup %3937 }
 0x153   :  { %v756_v14 = vmul.f32 %v3938_v12, %v755_v10 }
 0x155   :  { %v758_v15 = vadd.f32 %v757_v13, %v756_v14 }
 0x157   :  { %760 = vst.msk [vmem:[#allocation2] sm:$0x1] %vm759_vm1, %v758_v15  ;;  %761 = vst.msk [vmem:[#allocation3 + $0x7] sm:$0x1] %vm759_vm1, %v758_v15  ;;  %v762_v16 = vpack.c.bf16 %v758_v15, %v758_v15  ;;  %v876_v45 = vrot.slane %v758_v15, 7 }
 0x159   :  { %3281 = vmatmul.mubr.msk.bf16.vlgmr.msra.gmra.mrb[12].mxu0 %vm653_vm2, %v762_v16  ;;  %3570 = vmatmul.mubr.msk.bf16.vlgmr.msra.gmra.mrb[12].mxu1 %vm653_vm2, %v762_v16 }
 0x15a   :  { %891 = vmatpush1.bf16.msra.mxu0 %v4386_v54  ;;  %3574 = vmatpush3.bf16.msra.mxu1 %v4381_v53 }
 0x15b   :  { %892 = vmatprep.subr.bf16.mxu0 %v4391_v55  ;;  %3575 = vmatprep.subr.bf16.mxu1 %v4117_v1 }
 0x15c   :  { %922 = vmatprep.mubr.bf16.mxu0 %v4118_v3  ;;  %3581 = vmatprep.mubr.msk.bf16.mxu1 %vm4119_vm0, %v4117_v1 }
 0x15e   :  { %893 = vmatpush1.bf16.msra.mxu0 %v4403_v57  ;;  %3576 = vmatpush3.bf16.msra.mxu1 %v4398_v56 }
 0x15f   :  { %894 = vmatprep.subr.bf16.mxu0 %v4412_v58  ;;  %3577 = vmatprep.subr.bf16.mxu1 %v4117_v1 }
 0x162   :  { %895 = vmatpush1.bf16.msra.mxu0 %v4427_v60  ;;  %3578 = vmatpush3.bf16.msra.mxu1 %v4421_v59 }
 0x163   :  { %896 = vmatprep.subr.bf16.mxu0 %v4434_v61  ;;  %3579 = vmatprep.subr.bf16.mxu1 %v4117_v1 }
 0x166   :  { %897 = vmatpush1.bf16.msra.mxu0 %v4446_v63  ;;  %3580 = vmatpush3.bf16.msra.mxu1 %v4440_v62 }
 0x167   :  { %1013 = vmatprep.subr.bf16.mxu0 %v4372_v51  ;;  %3585 = vmatprep.subr.bf16.mxu1 %v4117_v1 }
 0x22c   :  { %v800_v11 = vpop.f32.mrb[12].mxu0  ;;  %v841_v17 = vpop.f32.mrb[12].mxu1 }
 0x22d   :  { %v801_v18 = vadd.f32 %v800_v11, %v4487_v28  ;;  %v802_v19 = vpop.f32.mrb[13].mxu0  ;;  %v3571_v20 = vpop.f32.mrb[13].mxu1  ;;  %v842_v41 = vadd.f32 %v841_v17, %v4504_v50 }
 0x22e   :  { %v803_v21 = vadd.f32 %v802_v19, %v4490_v29  ;;  %v804_v22 = vpop.f32.mrb[14].mxu0  ;;  %v844_v24 = vpop.f32.mrb[14].mxu1 }
 0x22f   :  { %v849_v25 = vrot.slane %v801_v18, 7  ;;  %v805_v27 = vpop.f32.mrb[15].mxu0  ;;  %v3572_v30 = vpop.f32.mrb[15].mxu1  ;;  %v868_v42 = vrot.slane %v842_v41, 7 }
 0x230   :  { %v850_v31 = vrot.slane %v803_v21, 7 }
 0x231   :  { %v853_v32 = vadd.f32 %v849_v25, %v4493_v34 }
 0x232   :  { %v854_v33 = vadd.f32 %v850_v31, %v4498_v43 }
 0x233   :  { %v3283_v35 = vmul.f32 -1.442695, %v853_v32 }
 0x234   :  { %v3284_v36 = vmul.f32 -1.442695, %v854_v33 }
 0x235   :  { %3939 = vpow2.f32 %v3283_v35 }
 0x236   :  { %3941 = vpow2.f32 %v3284_v36 }
 0x23f   :  { %v3940_v37 = vpop.eup %3939 }
 0x240   :  { %v3942_v38 = vpop.eup %3941  ;;  %v861_v39 = vadd.f32 1.0, %v3940_v37 }
 0x241   :  { %v862_v40 = vadd.f32 1.0, %v3942_v38 }
 0x242   :  { %3943 = vrcp.f32 %v861_v39 }
 0x243   :  { %3945 = vrcp.f32 %v862_v40 }
 0x24c   :  { %v3944_v44 = vpop.eup %3943 }
 0x24d   :  { %v3946_v46 = vpop.eup %3945  ;;  %v870_v47 = vmul.f32 %v3944_v44, %v868_v42 }
 0x24e   :  { %v878_v48 = vmul.f32 %v3946_v46, %v876_v45  ;;  %v873_v0 = vsub.f32 1.0, %v3946_v46 }
 0x24f   :  { %v871_v52 = vadd.f32 %v870_v47, %v4508_v6 }
 0x251   :  { %3947 = vtanh.f32 %v871_v52 }
 0x25b   :  { %v3948_v2 = vpop.eup %3947 }
 0x25c   :  { %v874_v4 = vmul.f32 %v3948_v2, %v873_v0 }
 0x25e   :  { %v879_v5 = vadd.f32 %v878_v48, %v874_v4 }
 0x260   :  { %881 = vst.msk [vmem:[#allocation2] sm:$0x2] %vm880_vm3, %v879_v5  ;;  %882 = vst.msk [vmem:[#allocation3 + $0x5] sm:$0x2] %vm880_vm3, %v879_v5  ;;  %v883_v7 = vpack.c.bf16 %v879_v5, %v879_v5  ;;  %v1000_v37 = vrot.slane %v879_v5, 7 }
 0x262   :  { %v885_v8 = vshrl.u32 %v883_v7, 16 }
 0x264   :  { %3285 = vmatmul.mubr.msk.bf16.vlgmr.msra.gmra.mrb[16].mxu0 %vm653_vm2, %v885_v8  ;;  %3582 = vmatmul.mubr.msk.bf16.vlgmr.msra.gmra.mrb[16].mxu1 %vm653_vm2, %v885_v8 }
 0x265   :  { %1014 = vmatpush1.bf16.msra.mxu0 %v4386_v54  ;;  %3586 = vmatpush3.bf16.msra.mxu1 %v4381_v53 }
 0x266   :  { %1015 = vmatprep.subr.bf16.mxu0 %v4391_v55  ;;  %3587 = vmatprep.subr.bf16.mxu1 %v4117_v1 }
 0x267   :  { %1045 = vmatprep.mubr.bf16.mxu0 %v4118_v3  ;;  %3593 = vmatprep.mubr.msk.bf16.mxu1 %vm4119_vm0, %v4117_v1 }
 0x269   :  { %1016 = vmatpush1.bf16.msra.mxu0 %v4403_v57  ;;  %3588 = vmatpush3.bf16.msra.mxu1 %v4398_v56 }
 0x26a   :  { %1017 = vmatprep.subr.bf16.mxu0 %v4412_v58  ;;  %3589 = vmatprep.subr.bf16.mxu1 %v4117_v1 }
 0x26d   :  { %1018 = vmatpush1.bf16.msra.mxu0 %v4427_v60  ;;  %3590 = vmatpush3.bf16.msra.mxu1 %v4421_v59 }
 0x26e   :  { %1019 = vmatprep.subr.bf16.mxu0 %v4434_v61  ;;  %3591 = vmatprep.subr.bf16.mxu1 %v4117_v1 }
 0x271   :  { %1020 = vmatpush1.bf16.msra.mxu0 %v4446_v63  ;;  %3592 = vmatpush3.bf16.msra.mxu1 %v4440_v62 }
 0x272   :  { %1138 = vmatprep.subr.bf16.mxu0 %v4372_v51  ;;  %3597 = vmatprep.subr.bf16.mxu1 %v4117_v1 }
 0x337   :  { %v924_v9 = vpop.f32.mrb[16].mxu0  ;;  %v965_v10 = vpop.f32.mrb[16].mxu1 }
 0x338   :  { %v925_v12 = vadd.f32 %v924_v9, %v4487_v28  ;;  %v926_v13 = vpop.f32.mrb[17].mxu0  ;;  %v3583_v14 = vpop.f32.mrb[17].mxu1  ;;  %v966_v33 = vadd.f32 %v965_v10, %v4504_v50 }
 0x339   :  { %v927_v15 = vadd.f32 %v926_v13, %v4490_v29  ;;  %v928_v16 = vpop.f32.mrb[18].mxu0  ;;  %v968_v11 = vpop.f32.mrb[18].mxu1 }
 0x33a   :  { %v973_v17 = vrot.slane %v925_v12, 6  ;;  %v929_v18 = vpop.f32.mrb[19].mxu0  ;;  %v3584_v19 = vpop.f32.mrb[19].mxu1  ;;  %v992_v35 = vrot.slane %v966_v33, 6 }
 0x33b   :  { %v974_v20 = vrot.slane %v927_v15, 6 }
 0x33c   :  { %v977_v21 = vadd.f32 %v973_v17, %v4493_v34 }
 0x33d   :  { %v978_v22 = vadd.f32 %v974_v20, %v4498_v43 }
 0x33e   :  { %v3287_v24 = vmul.f32 -1.442695, %v977_v21 }
 0x33f   :  { %v3288_v25 = vmul.f32 -1.442695, %v978_v22 }
 0x340   :  { %3949 = vpow2.f32 %v3287_v24 }
 0x341   :  { %3951 = vpow2.f32 %v3288_v25 }
 0x34a   :  { %v3950_v27 = vpop.eup %3949 }
 0x34b   :  { %v3952_v30 = vpop.eup %3951  ;;  %v985_v31 = vadd.f32 1.0, %v3950_v27 }
 0x34c   :  { %v986_v32 = vadd.f32 1.0, %v3952_v30 }
 0x34d   :  { %3953 = vrcp.f32 %v985_v31 }
 0x34e   :  { %3955 = vrcp.f32 %v986_v32 }
 0x357   :  { %v3954_v36 = vpop.eup %3953 }
 0x358   :  { %v3956_v38 = vpop.eup %3955  ;;  %v994_v39 = vmul.f32 %v3954_v36, %v992_v35 }
 0x359   :  { %v1002_v40 = vmul.f32 %v3956_v38, %v1000_v37  ;;  %v997_v42 = vsub.f32 1.0, %v3956_v38 }
 0x35a   :  { %v995_v41 = vadd.f32 %v994_v39, %v4508_v6 }
 0x35c   :  { %3957 = vtanh.f32 %v995_v41 }
 0x366   :  { %v3958_v44 = vpop.eup %3957 }
 0x367   :  { %v998_v45 = vmul.f32 %v3958_v44, %v997_v42 }
 0x369   :  { %v1003_v46 = vadd.f32 %v1002_v40, %v998_v45 }
 0x36b   :  { %1005 = vst.msk [vmem:[#allocation2] sm:$0x4] %vm1004_vm4, %v1003_v46  ;;  %1006 = vst.msk [vmem:[#allocation3 + $0x3] sm:$0x4] %vm1004_vm4, %v1003_v46  ;;  %v1007_v47 = vpack.c.bf16 %v1003_v46, %v1003_v46  ;;  %v1123_v27 = vrot.slane %v1003_v46, 7 }
 0x36d   :  { %v1009_v48 = vrot.slane %v1007_v47, 1 }
 0x36f   :  { %3289 = vmatmul.mubr.msk.bf16.vlgmr.msra.gmra.mrb[20].mxu0 %vm653_vm2, %v1009_v48  ;;  %3594 = vmatmul.mubr.msk.bf16.vlgmr.msra.gmra.mrb[20].mxu1 %vm653_vm2, %v1009_v48 }
 0x370   :  { %1139 = vmatpush1.bf16.msra.mxu0 %v4386_v54  ;;  %3598 = vmatpush3.bf16.msra.mxu1 %v4381_v53 }
 0x371   :  { %1140 = vmatprep.subr.bf16.mxu0 %v4391_v55  ;;  %3599 = vmatprep.subr.bf16.mxu1 %v4117_v1 }
 0x372   :  { %1170 = vmatprep.mubr.bf16.mxu0 %v4118_v3  ;;  %3605 = vmatprep.mubr.msk.bf16.mxu1 %vm4119_vm0, %v4117_v1 }
 0x374   :  { %1141 = vmatpush1.bf16.msra.mxu0 %v4403_v57  ;;  %3600 = vmatpush3.bf16.msra.mxu1 %v4398_v56 }
 0x375   :  { %1142 = vmatprep.subr.bf16.mxu0 %v4412_v58  ;;  %3601 = vmatprep.subr.bf16.mxu1 %v4117_v1 }
 0x378   :  { %1143 = vmatpush1.bf16.msra.mxu0 %v4427_v60  ;;  %3602 = vmatpush3.bf16.msra.mxu1 %v4421_v59 }
 0x379   :  { %1144 = vmatprep.subr.bf16.mxu0 %v4434_v61  ;;  %3603 = vmatprep.subr.bf16.mxu1 %v4117_v1 }
 0x37c   :  { %1145 = vmatpush1.bf16.msra.mxu0 %v4446_v63  ;;  %3604 = vmatpush3.bf16.msra.mxu1 %v4440_v62 }
 0x37d   :  { %1261 = vmatprep.subr.bf16.mxu0 %v4372_v51  ;;  %3609 = vmatprep.subr.bf16.mxu1 %v4117_v1 }
 0x442   :  { %v1047_v52 = vpop.f32.mrb[20].mxu0  ;;  %v1088_v0 = vpop.f32.mrb[20].mxu1 }
 0x443   :  { %v1048_v2 = vadd.f32 %v1047_v52, %v4487_v28  ;;  %v1049_v4 = vpop.f32.mrb[21].mxu0  ;;  %v3595_v5 = vpop.f32.mrb[21].mxu1  ;;  %v1089_v22 = vadd.f32 %v1088_v0, %v4504_v50 }
 0x444   :  { %v1050_v7 = vadd.f32 %v1049_v4, %v4490_v29  ;;  %v1051_v8 = vpop.f32.mrb[22].mxu0  ;;  %v1091_v9 = vpop.f32.mrb[22].mxu1 }
 0x445   :  { %v1096_v10 = vrot.slane %v1048_v2, 5  ;;  %v1052_v12 = vpop.f32.mrb[23].mxu0  ;;  %v3596_v13 = vpop.f32.mrb[23].mxu1  ;;  %v1115_v24 = vrot.slane %v1089_v22, 5 }
 0x446   :  { %v1097_v14 = vrot.slane %v1050_v7, 5 }
 0x447   :  { %v1100_v15 = vadd.f32 %v1096_v10, %v4493_v34 }
 0x448   :  { %v1101_v16 = vadd.f32 %v1097_v14, %v4498_v43 }
 0x449   :  { %v3291_v11 = vmul.f32 -1.442695, %v1100_v15 }
 0x44a   :  { %v3292_v17 = vmul.f32 -1.442695, %v1101_v16 }
 0x44b   :  { %3959 = vpow2.f32 %v3291_v11 }
 0x44c   :  { %3961 = vpow2.f32 %v3292_v17 }
 0x455   :  { %v3960_v18 = vpop.eup %3959 }
 0x456   :  { %v3962_v19 = vpop.eup %3961  ;;  %v1108_v20 = vadd.f32 1.0, %v3960_v18 }
 0x457   :  { %v1109_v21 = vadd.f32 1.0, %v3962_v19 }
 0x458   :  { %3963 = vrcp.f32 %v1108_v20 }
 0x459   :  { %3965 = vrcp.f32 %v1109_v21 }
 0x462   :  { %v3964_v25 = vpop.eup %3963 }
 0x463   :  { %v3966_v30 = vpop.eup %3965  ;;  %v1117_v31 = vmul.f32 %v3964_v25, %v1115_v24 }
 0x464   :  { %v1125_v32 = vmul.f32 %v3966_v30, %v1123_v27  ;;  %v1120_v35 = vsub.f32 1.0, %v3966_v30 }
 0x465   :  { %v1118_v33 = vadd.f32 %v1117_v31, %v4508_v6 }
 0x467   :  { %3967 = vtanh.f32 %v1118_v33 }
 0x471   :  { %v3968_v36 = vpop.eup %3967 }
 0x472   :  { %v1121_v37 = vmul.f32 %v3968_v36, %v1120_v35 }
 0x474   :  { %v1126_v38 = vadd.f32 %v1125_v32, %v1121_v37 }
 0x476   :  { %1128 = vst.msk [vmem:[#allocation2] sm:$0x8] %vm1127_vm5, %v1126_v38  ;;  %1129 = vst.msk [vmem:[#allocation3 + $0x1] sm:$0x8] %vm1127_vm5, %v1126_v38  ;;  %v1130_v39 = vpack.c.bf16 %v1126_v38, %v1126_v38  ;;  %v1248_v19 = vrot.slane %v1126_v38, 7 }
 0x478   :  { %v1132_v40 = vshrl.u32 %v1130_v39, 16 }
 0x47a   :  { %v1134_v41 = vrot.slane %v1132_v40, 1 }
 0x47c   :  { %3293 = vmatmul.mubr.msk.bf16.vlgmr.msra.gmra.mrb[24].mxu0 %vm653_vm2, %v1134_v41  ;;  %3606 = vmatmul.mubr.msk.bf16.vlgmr.msra.gmra.mrb[24].mxu1 %vm653_vm2, %v1134_v41 }
 0x47d   :  { %1262 = vmatpush1.bf16.msra.mxu0 %v4386_v54  ;;  %3610 = vmatpush3.bf16.msra.mxu1 %v4381_v53 }
 0x47e   :  { %1263 = vmatprep.subr.bf16.mxu0 %v4391_v55  ;;  %3611 = vmatprep.subr.bf16.mxu1 %v4117_v1 }
 0x47f   :  { %1293 = vmatprep.mubr.bf16.mxu0 %v4118_v3  ;;  %3617 = vmatprep.mubr.msk.bf16.mxu1 %vm4119_vm0, %v4117_v1 }
 0x481   :  { %1264 = vmatpush1.bf16.msra.mxu0 %v4403_v57  ;;  %3612 = vmatpush3.bf16.msra.mxu1 %v4398_v56 }
 0x482   :  { %1265 = vmatprep.subr.bf16.mxu0 %v4412_v58  ;;  %3613 = vmatprep.subr.bf16.mxu1 %v4117_v1 }
 0x485   :  { %1266 = vmatpush1.bf16.msra.mxu0 %v4427_v60  ;;  %3614 = vmatpush3.bf16.msra.mxu1 %v4421_v59 }
 0x486   :  { %1267 = vmatprep.subr.bf16.mxu0 %v4434_v61  ;;  %3615 = vmatprep.subr.bf16.mxu1 %v4117_v1 }
 0x489   :  { %1268 = vmatpush1.bf16.msra.mxu0 %v4446_v63  ;;  %3616 = vmatpush3.bf16.msra.mxu1 %v4440_v62 }
 0x48a   :  { %1386 = vmatprep.subr.bf16.mxu0 %v4372_v51  ;;  %3621 = vmatprep.subr.bf16.mxu1 %v4117_v1 }
 0x54f   :  { %v1172_v42 = vpop.f32.mrb[24].mxu0  ;;  %v1213_v44 = vpop.f32.mrb[24].mxu1 }
 0x550   :  { %v1173_v45 = vadd.f32 %v1172_v42, %v4487_v28  ;;  %v1174_v46 = vpop.f32.mrb[25].mxu0  ;;  %v3607_v47 = vpop.f32.mrb[25].mxu1  ;;  %v1214_v11 = vadd.f32 %v1213_v44, %v4504_v50 }
 0x551   :  { %v1175_v48 = vadd.f32 %v1174_v46, %v4490_v29  ;;  %v1176_v52 = vpop.f32.mrb[26].mxu0  ;;  %v1216_v0 = vpop.f32.mrb[26].mxu1 }
 0x552   :  { %v1221_v2 = vrot.slane %v1173_v45, 4  ;;  %v1177_v4 = vpop.f32.mrb[27].mxu0  ;;  %v3608_v5 = vpop.f32.mrb[27].mxu1  ;;  %v1240_v17 = vrot.slane %v1214_v11, 4 }
 0x553   :  { %v1222_v7 = vrot.slane %v1175_v48, 4 }
 0x554   :  { %v1225_v8 = vadd.f32 %v1221_v2, %v4493_v34 }
 0x555   :  { %v1226_v9 = vadd.f32 %v1222_v7, %v4498_v43 }
 0x556   :  { %v3295_v10 = vmul.f32 -1.442695, %v1225_v8 }
 0x557   :  { %v3296_v12 = vmul.f32 -1.442695, %v1226_v9 }
 0x558   :  { %3969 = vpow2.f32 %v3295_v10 }
 0x559   :  { %3971 = vpow2.f32 %v3296_v12 }
 0x562   :  { %v3970_v13 = vpop.eup %3969 }
 0x563   :  { %v3972_v14 = vpop.eup %3971  ;;  %v1233_v15 = vadd.f32 1.0, %v3970_v13 }
 0x564   :  { %v1234_v16 = vadd.f32 1.0, %v3972_v14 }
 0x565   :  { %3973 = vrcp.f32 %v1233_v15 }
 0x566   :  { %3975 = vrcp.f32 %v1234_v16 }
 0x56f   :  { %v3974_v18 = vpop.eup %3973 }
 0x570   :  { %v3976_v20 = vpop.eup %3975  ;;  %v1242_v21 = vmul.f32 %v3974_v18, %v1240_v17 }
 0x571   :  { %v1250_v22 = vmul.f32 %v3976_v20, %v1248_v19  ;;  %v1245_v25 = vsub.f32 1.0, %v3976_v20 }
 0x572   :  { %v1243_v24 = vadd.f32 %v1242_v21, %v4508_v6 }
 0x574   :  { %3977 = vtanh.f32 %v1243_v24 }
 0x57e   :  { %v3978_v27 = vpop.eup %3977 }
 0x57f   :  { %v1246_v30 = vmul.f32 %v3978_v27, %v1245_v25 }
 0x581   :  { %v1251_v31 = vadd.f32 %v1250_v22, %v1246_v30 }
 0x583   :  { %1253 = vst.msk [vmem:[#allocation2] sm:$0x10] %vm1252_vm6, %v1251_v31  ;;  %1254 = vst.msk [vmem:[#allocation3 - $0x1] sm:$0x10] %vm1252_vm6, %v1251_v31  ;;  %v1255_v32 = vpack.c.bf16 %v1251_v31, %v1251_v31  ;;  %v1371_v12 = vrot.slane %v1251_v31, 7 }
 0x585   :  { %v1257_v33 = vrot.slane %v1255_v32, 2 }
 0x587   :  { %3297 = vmatmul.mubr.msk.bf16.vlgmr.msra.gmra.mrb[28].mxu0 %vm653_vm2, %v1257_v33  ;;  %3618 = vmatmul.mubr.msk.bf16.vlgmr.msra.gmra.mrb[28].mxu1 %vm653_vm2, %v1257_v33 }
 0x588   :  { %1387 = vmatpush1.bf16.msra.mxu0 %v4386_v54  ;;  %3622 = vmatpush3.bf16.msra.mxu1 %v4381_v53 }
 0x589   :  { %1388 = vmatprep.subr.bf16.mxu0 %v4391_v55  ;;  %3623 = vmatprep.subr.bf16.mxu1 %v4117_v1 }
 0x58a   :  { %1418 = vmatprep.mubr.bf16.mxu0 %v4118_v3  ;;  %3629 = vmatprep.mubr.msk.bf16.mxu1 %vm4119_vm0, %v4117_v1 }
 0x58c   :  { %1389 = vmatpush1.bf16.msra.mxu0 %v4403_v57  ;;  %3624 = vmatpush3.bf16.msra.mxu1 %v4398_v56 }
 0x58d   :  { %1390 = vmatprep.subr.bf16.mxu0 %v4412_v58  ;;  %3625 = vmatprep.subr.bf16.mxu1 %v4117_v1 }
 0x590   :  { %1391 = vmatpush1.bf16.msra.mxu0 %v4427_v60  ;;  %3626 = vmatpush3.bf16.msra.mxu1 %v4421_v59 }
 0x591   :  { %1392 = vmatprep.subr.bf16.mxu0 %v4434_v61  ;;  %3627 = vmatprep.subr.bf16.mxu1 %v4117_v1 }
 0x594   :  { %1393 = vmatpush1.bf16.msra.mxu0 %v4446_v63  ;;  %3628 = vmatpush3.bf16.msra.mxu1 %v4440_v62 }
 0x595   :  { %1509 = vmatprep.subr.bf16.mxu0 %v4372_v51  ;;  %3633 = vmatprep.subr.bf16.mxu1 %v4117_v1 }
 0x65a   :  { %v1295_v35 = vpop.f32.mrb[28].mxu0  ;;  %v1336_v36 = vpop.f32.mrb[28].mxu1 }
 0x65b   :  { %v1296_v37 = vadd.f32 %v1295_v35, %v4487_v28  ;;  %v1297_v38 = vpop.f32.mrb[29].mxu0  ;;  %v3619_v39 = vpop.f32.mrb[29].mxu1  ;;  %v1337_v8 = vadd.f32 %v1336_v36, %v4504_v50 }
 0x65c   :  { %v1298_v40 = vadd.f32 %v1297_v38, %v4490_v29  ;;  %v1299_v41 = vpop.f32.mrb[30].mxu0  ;;  %v1339_v42 = vpop.f32.mrb[30].mxu1 }
 0x65d   :  { %v1344_v44 = vrot.slane %v1296_v37, 3  ;;  %v1300_v45 = vpop.f32.mrb[31].mxu0  ;;  %v3620_v46 = vpop.f32.mrb[31].mxu1  ;;  %v1363_v9 = vrot.slane %v1337_v8, 3  ;;  %v3877_v8 = vld [vmem:[%s5169_s8 + $0x18] ss:$12 sps:$4 sm:$0xff]  }
 0x65e   :  { %v1345_v47 = vrot.slane %v1298_v40, 3 }
 0x65f   :  { %v1348_v48 = vadd.f32 %v1344_v44, %v4493_v34 }
 0x660   :  { %v1349_v51 = vadd.f32 %v1345_v47, %v4498_v43 }
 0x661   :  { %v3299_v52 = vmul.f32 -1.442695, %v1348_v48 }
 0x662   :  { %v3300_v0 = vmul.f32 -1.442695, %v1349_v51 }
 0x663   :  { %3979 = vpow2.f32 %v3299_v52 }
 0x664   :  { %3981 = vpow2.f32 %v3300_v0 }
 0x66d   :  { %v3980_v2 = vpop.eup %3979 }
 0x66e   :  { %v3982_v4 = vpop.eup %3981  ;;  %v1356_v5 = vadd.f32 1.0, %v3980_v2  ;;  %v3875_v2 = vld [vmem:[%s5169_s8 + $0x4] ss:$12 sps:$4 sm:$0xff]  }
 0x66f   :  { %v1357_v7 = vadd.f32 1.0, %v3982_v4  ;;  %v3873_v4 = vld [vmem:[%s5169_s8] ss:$12 sps:$4 sm:$0xff]  }
 0x670   :  { %3983 = vrcp.f32 %v1356_v5  ;;  %v3876_v5 = vld [vmem:[%s5169_s8 + $0x8] ss:$12 sps:$4 sm:$0xff]  }
 0x671   :  { %3985 = vrcp.f32 %v1357_v7  ;;  %v3879_v7 = vld [vmem:[%s5169_s8 + $0x1c] ss:$12 sps:$4 sm:$0xff]  }
 0x67a   :  { %v3984_v10 = vpop.eup %3983 }
 0x67b   :  { %v3986_v13 = vpop.eup %3985  ;;  %v1365_v14 = vmul.f32 %v3984_v10, %v1363_v9  ;;  %v3880_v9 = vld [vmem:[%s5169_s8 + $0x20] ss:$12 sps:$4 sm:$0xff]  }
 0x67c   :  { %v1373_v15 = vmul.f32 %v3986_v13, %v1371_v12  ;;  %v1368_v11 = vsub.f32 1.0, %v3986_v13  ;;  %v3883_v10 = vld [vmem:[%s5169_s8 + $0x34] ss:$12 sps:$4 sm:$0xff]   ;;  %v3881_v12 = vld [vmem:[%s5169_s8 + $0x30] ss:$12 sps:$4 sm:$0xff]  }
 0x67d   :  { %v1366_v16 = vadd.f32 %v1365_v14, %v4508_v6  ;;  %v3884_v13 = vld [vmem:[%s5169_s8 + $0x38] ss:$12 sps:$4 sm:$0xff]  }
 0x67e   :  { %v3887_v14 = vld [vmem:[%s5169_s8 + $0x4c] ss:$12 sps:$4 sm:$0xff]  }
 0x67f   :  { %3987 = vtanh.f32 %v1366_v16  ;;  %v3888_v16 = vld [vmem:[%s5169_s8 + $0x50] ss:$12 sps:$4 sm:$0xff]  }
 0x689   :  { %v3988_v17 = vpop.eup %3987 }
 0x68a   :  { %v1369_v18 = vmul.f32 %v3988_v17, %v1368_v11  ;;  %v3891_v11 = vld [vmem:[%s5168_s7 + $0x4] ss:$12 sps:$4 sm:$0xff]  }
 0x68c   :  { %v1374_v19 = vadd.f32 %v1373_v15, %v1369_v18  ;;  %v3885_v15 = vld [vmem:[%s5169_s8 + $0x48] ss:$12 sps:$4 sm:$0xff]  }
 0x68e   :  { %1376 = vst.msk [vmem:[#allocation2] sm:$0x20] %vm1375_vm7, %v1374_v19  ;;  %1377 = vst.msk [vmem:[#allocation3 - $0x3] sm:$0x20] %vm1375_vm7, %v1374_v19  ;;  %v1378_v20 = vpack.c.bf16 %v1374_v19, %v1374_v19  ;;  %v1496_v40 = vrot.slane %v1374_v19, 7 }
 0x690   :  { %v1380_v21 = vshrl.u32 %v1378_v20, 16 }
 0x692   :  { %v1382_v22 = vrot.slane %v1380_v21, 2 }
 0x694   :  { %3301 = vmatmul.mubr.msk.bf16.vlgmr.msra.gmra.mrb[32].mxu0 %vm653_vm2, %v1382_v22  ;;  %3630 = vmatmul.mubr.msk.bf16.vlgmr.msra.gmra.mrb[32].mxu1 %vm653_vm2, %v1382_v22 }
 0x695   :  { %1510 = vmatpush1.bf16.msra.mxu0 %v4386_v54  ;;  %3634 = vmatpush3.bf16.msra.mxu1 %v4381_v53 }
 0x696   :  { %1511 = vmatprep.subr.bf16.mxu0 %v4391_v55  ;;  %3635 = vmatprep.subr.bf16.mxu1 %v4117_v1 }
 0x697   :  { %1541 = vmatprep.mubr.bf16.mxu0 %v4118_v3  ;;  %3641 = vmatprep.mubr.msk.bf16.mxu1 %vm4119_vm0, %v4117_v1 }
 0x699   :  { %1512 = vmatpush1.bf16.msra.mxu0 %v4403_v57  ;;  %3636 = vmatpush3.bf16.msra.mxu1 %v4398_v56 }
 0x69a   :  { %1513 = vmatprep.subr.bf16.mxu0 %v4412_v58  ;;  %3637 = vmatprep.subr.bf16.mxu1 %v4117_v1 }
 0x69d   :  { %1514 = vmatpush1.bf16.msra.mxu0 %v4427_v60  ;;  %3638 = vmatpush3.bf16.msra.mxu1 %v4421_v59 }
 0x69e   :  { %1515 = vmatprep.subr.bf16.mxu0 %v4434_v61  ;;  %3639 = vmatprep.subr.bf16.mxu1 %v4117_v1 }
 0x6a1   :  { %1516 = vmatpush1.bf16.msra.mxu0 %v4446_v63  ;;  %3640 = vmatpush3.bf16.msra.mxu1 %v4440_v62 }
 0x6a2   :  { %3645 = vmatprep.subr.bf16.mxu1 %v4117_v1  ;;  %1729 = vmatprep.subr.bf16.mxu0 %v3875_v2 }
 0x767   :  { %v1420_v53 = vpop.f32.mrb[32].mxu0  ;;  %v1461_v54 = vpop.f32.mrb[32].mxu1 }
 0x768   :  { %v1421_v55 = vadd.f32 %v1420_v53, %v4487_v28  ;;  %v1422_v56 = vpop.f32.mrb[33].mxu0  ;;  %v3631_v57 = vpop.f32.mrb[33].mxu1  ;;  %v1462_v37 = vadd.f32 %v1461_v54, %v4504_v50 }
 0x769   :  { %v1423_v58 = vadd.f32 %v1422_v56, %v4490_v29  ;;  %v1424_v60 = vpop.f32.mrb[34].mxu0  ;;  %v1464_v59 = vpop.f32.mrb[34].mxu1 }
 0x76a   :  { %v1469_v24 = vrot.slane %v1421_v55, 2  ;;  %v1425_v61 = vpop.f32.mrb[35].mxu0  ;;  %v3632_v25 = vpop.f32.mrb[35].mxu1  ;;  %v1488_v38 = vrot.slane %v1462_v37, 2 }
 0x76b   :  { %v1470_v27 = vrot.slane %v1423_v58, 2 }
 0x76c   :  { %v1473_v63 = vadd.f32 %v1469_v24, %v4493_v34 }
 0x76d   :  { %v1474_v62 = vadd.f32 %v1470_v27, %v4498_v43 }
 0x76e   :  { %v3303_v30 = vmul.f32 -1.442695, %v1473_v63 }
 0x76f   :  { %v3304_v31 = vmul.f32 -1.442695, %v1474_v62 }
 0x770   :  { %3989 = vpow2.f32 %v3303_v30 }
 0x771   :  { %3991 = vpow2.f32 %v3304_v31 }
 0x77a   :  { %v3990_v32 = vpop.eup %3989 }
 0x77b   :  { %v3992_v33 = vpop.eup %3991  ;;  %v1481_v35 = vadd.f32 1.0, %v3990_v32 }
 0x77c   :  { %v1482_v36 = vadd.f32 1.0, %v3992_v33 }
 0x77d   :  { %3993 = vrcp.f32 %v1481_v35 }
 0x77e   :  { %3995 = vrcp.f32 %v1482_v36 }
 0x787   :  { %v3994_v39 = vpop.eup %3993 }
 0x788   :  { %v3996_v41 = vpop.eup %3995  ;;  %v1490_v42 = vmul.f32 %v3994_v39, %v1488_v38 }
 0x789   :  { %v1498_v44 = vmul.f32 %v3996_v41, %v1496_v40  ;;  %v1493_v46 = vsub.f32 1.0, %v3996_v41  ;;  %v3892_v40 = vld [vmem:[%s5168_s7 + $0x8] ss:$12 sps:$4 sm:$0xff]  }
 0x78a   :  { %v1491_v45 = vadd.f32 %v1490_v42, %v4508_v6  ;;  %v3895_v41 = vld [vmem:[%s5168_s7 + $0x1c] ss:$12 sps:$4 sm:$0xff]   ;;  %v3893_v42 = vld [vmem:[%s5168_s7 + $0x18] ss:$12 sps:$4 sm:$0xff]  }
 0x78c   :  { %3997 = vtanh.f32 %v1491_v45  ;;  %v3899_v45 = vld [vmem:[%s5168_s7 + $0x34] ss:$12 sps:$4 sm:$0xff]  }
 0x796   :  { %v3998_v47 = vpop.eup %3997 }
 0x797   :  { %v1494_v48 = vmul.f32 %v3998_v47, %v1493_v46  ;;  %v3897_v46 = vld [vmem:[%s5168_s7 + $0x30] ss:$12 sps:$4 sm:$0xff]   ;;  %v3900_v47 = vld [vmem:[%s5168_s7 + $0x38] ss:$12 sps:$4 sm:$0xff]  }
 0x799   :  { %v4684_v51 = vadd.f32 %v1498_v44, %v1494_v48  ;;  %v3896_v44 = vld [vmem:[%s5168_s7 + $0x20] ss:$12 sps:$4 sm:$0xff]  }
 0x79a   :  { %v3903_v48 = vld [vmem:[%s5168_s7 + $0x4c] ss:$12 sps:$4 sm:$0xff]  }
 0x79b   :  { %1501 = vst.msk [vmem:[#allocation2] sm:$0x40] %vm1500_vm8, %v4684_v51  ;;  %1502 = vst.msk [vmem:[#allocation3 - $0x5] sm:$0x40] %vm1500_vm8, %v4684_v51  ;;  %v1503_v52 = vpack.c.bf16 %v4684_v51, %v4684_v51  ;;  %v1619_v31 = vrot.slane %v4684_v51, 7 }
 0x79c   :  { %v3901_v51 = vld [vmem:[%s5168_s7 + $0x48] ss:$12 sps:$4 sm:$0xff]  }
 0x79d   :  { %v1505_v0 = vrot.slane %v1503_v52, 3  ;;  %v3904_v52 = vld [vmem:[%s5168_s7 + $0x50] ss:$12 sps:$4 sm:$0xff]  }
 0x79f   :  { %3305 = vmatmul.mubr.msk.bf16.vlgmr.msra.gmra.mrb[36].mxu0 %vm653_vm2, %v1505_v0  ;;  %3642 = vmatmul.mubr.msk.bf16.vlgmr.msra.gmra.mrb[36].mxu1 %vm653_vm2, %v1505_v0  ;;  %v4793_v0 = vld [vmem:[%s5171_s10 + $0x4] ss:$12 sps:$4 sm:$0xff]  }
 0x7a0   :  { %1761 = vmatprep.mubr.bf16.mxu0 %v4118_v3  ;;  %3653 = vmatprep.mubr.msk.bf16.mxu1 %vm4119_vm0, %v4117_v1 }
 0x7a1   :  { %1730 = vmatpush1.bf16.msra.mxu0 %v3873_v4  ;;  %3646 = vmatpush3.bf16.msra.mxu1 %v3876_v5  ;;  %v4798_v4 = vld [vmem:[%s5171_s10] ss:$12 sps:$4 sm:$0xff]  }
 0x7a2   :  { %3647 = vmatprep.subr.bf16.mxu1 %v4117_v1  ;;  %1731 = vmatprep.subr.bf16.mxu0 %v3879_v7  ;;  %v4804_v7 = vld [vmem:[%s5171_s10 + $0x1c] ss:$12 sps:$4 sm:$0xff]  }
 0x7a5   :  { %1732 = vmatpush1.bf16.msra.mxu0 %v3877_v8  ;;  %3648 = vmatpush3.bf16.msra.mxu1 %v3880_v9  ;;  %v4810_v8 = vld [vmem:[%s5171_s10 + $0x8] ss:$12 sps:$4 sm:$0xff]   ;;  %v4818_v9 = vld [vmem:[%s5171_s10 + $0x18] ss:$12 sps:$4 sm:$0xff]  }
 0x7a6   :  { %3649 = vmatprep.subr.bf16.mxu1 %v4117_v1  ;;  %1733 = vmatprep.subr.bf16.mxu0 %v3883_v10  ;;  %v4825_v10 = vld [vmem:[%s5171_s10 + $0x34] ss:$12 sps:$4 sm:$0xff]  }
 0x7a9   :  { %1734 = vmatpush1.bf16.msra.mxu0 %v3881_v12  ;;  %3650 = vmatpush3.bf16.msra.mxu1 %v3884_v13  ;;  %v4831_v12 = vld [vmem:[%s5171_s10 + $0x20] ss:$12 sps:$4 sm:$0xff]   ;;  %v4840_v13 = vld [vmem:[%s5171_s10 + $0x30] ss:$12 sps:$4 sm:$0xff]  }
 0x7aa   :  { %1735 = vmatprep.subr.bf16.mxu0 %v3887_v14  ;;  %3651 = vmatprep.subr.bf16.mxu1 %v4117_v1  ;;  %v4846_v14 = vld [vmem:[%s5171_s10 + $0x4c] ss:$12 sps:$4 sm:$0xff]  }
 0x7ad   :  { %1736 = vmatpush1.bf16.msra.mxu0 %v3885_v15  ;;  %3652 = vmatpush3.bf16.msra.mxu1 %v3888_v16  ;;  %v4852_v15 = vld [vmem:[%s5171_s10 + $0x38] ss:$12 sps:$4 sm:$0xff]   ;;  %v4859_v16 = vld [vmem:[%s5171_s10 + $0x48] ss:$12 sps:$4 sm:$0xff]  }
 0x7ae   :  { %1877 = vmatprep.subr.bf16.mxu0 %v3891_v11  ;;  %3657 = vmatprep.subr.bf16.mxu1 %v4117_v1  ;;  %v4866_v11 = vld [vmem:[%s5171_s10 + $0x50] ss:$12 sps:$4 sm:$0xff]  }
 0x872   :  { %v1543_v17 = vpop.f32.mrb[36].mxu0  ;;  %v1584_v18 = vpop.f32.mrb[36].mxu1 }
 0x873   :  { %v1544_v19 = vadd.f32 %v1543_v17, %v4487_v28  ;;  %v1545_v20 = vpop.f32.mrb[37].mxu0  ;;  %v3643_v21 = vpop.f32.mrb[37].mxu1 }
 0x874   :  { %v1546_v22 = vadd.f32 %v1545_v20, %v4490_v29  ;;  %v1547_v53 = vpop.f32.mrb[38].mxu0  ;;  %v1587_v54 = vpop.f32.mrb[38].mxu1  ;;  %v1585_v29 = vadd.f32 %v1584_v18, %v4504_v50  ;;  %v3889_v50 = vld [vmem:[%s5168_s7] ss:$12 sps:$4 sm:$0xff]  }
 0x875   :  { %v1592_v55 = vrot.slane %v1544_v19, 1  ;;  %v1548_v56 = vpop.f32.mrb[39].mxu0  ;;  %v3644_v57 = vpop.f32.mrb[39].mxu1 }
 0x876   :  { %v1593_v58 = vrot.slane %v1546_v22, 1  ;;  %v1611_v62 = vrot.slane %v1585_v29, 1  ;;  %v1958_v29 = vld [vmem:[%s5170_s9] sm:$0x7] }
 0x877   :  { %v1596_v60 = vadd.f32 %v1592_v55, %v4493_v34 }
 0x878   :  { %v1597_v59 = vadd.f32 %v1593_v58, %v4498_v43 }
 0x879   :  { %v3307_v24 = vmul.f32 -1.442695, %v1596_v60 }
 0x87a   :  { %v3308_v61 = vmul.f32 -1.442695, %v1597_v59 }
 0x87b   :  { %3999 = vpow2.f32 %v3307_v24 }
 0x87c   :  { %4001 = vpow2.f32 %v3308_v61 }
 0x885   :  { %v4000_v25 = vpop.eup %3999 }
 0x886   :  { %v4002_v28 = vpop.eup %4001  ;;  %v1604_v27 = vadd.f32 1.0, %v4000_v25 }
 0x887   :  { %v1605_v63 = vadd.f32 1.0, %v4002_v28 }
 0x888   :  { %4003 = vrcp.f32 %v1604_v27 }
 0x889   :  { %4005 = vrcp.f32 %v1605_v63  ;;  %v1994_v63 = vld [vmem:[%s5172_s11] sm:$0x7] }
 0x892   :  { %v4004_v30 = vpop.eup %4003 }
 0x893   :  { %v4006_v32 = vpop.eup %4005  ;;  %v1613_v34 = vmul.f32 %v4004_v30, %v1611_v62  ;;  %v4901_v62 = vrot.slane %v1994_v63, %v4475_v23  ;;  %v1963_v30 = vrot.slane %v1958_v29, %v4475_v23 }
 0x894   :  { %v1621_v33 = vmul.f32 %v4006_v32, %v1619_v31  ;;  %v1616_v35 = vsub.f32 1.0, %v4006_v32  ;;  %v4905_v31 = vrot.slane %v1994_v63, %v4483_v26  ;;  %v1967_v32 = vrot.slane %v1958_v29, %v4483_v26 }
 0x895   :  { %v1614_v43 = vadd.f32 %v1613_v34, %v4508_v6 }
 0x897   :  { %4007 = vtanh.f32 %v1614_v43 }
 0x8a1   :  { %v4008_v36 = vpop.eup %4007 }
 0x8a2   :  { %v1617_v37 = vmul.f32 %v4008_v36, %v1616_v35 }
 0x8a4   :  { %v1622_v38 = vadd.f32 %v1621_v33, %v1617_v37 }
 0x8a6   :  { %1624 = vst.msk [vmem:[#allocation2] sm:$0x80] %vm1623_vm9, %v1622_v38  ;;  %1625 = vst.msk [vmem:[#allocation3 - $0x7] sm:$0x80] %vm1623_vm9, %v1622_v38 }
 0x8ad   :  { %v1628_v39 = vld [vmem:[#allocation3] sm:$0xff]  ;;  %v1626_v2 = vld [vmem:[#allocation2] sm:$0xff] }
 0x8ae   :  { %v1629_v6 = vpack.c.bf16 %v1628_v39, %v1628_v39  ;;  %v1627_v5 = vpack.c.bf16 %v1626_v2, %v1626_v2 }
 0x8b0   :  { %3321 = vmatmul.mubr.msk.bf16.vlgmr.msra.gmra.mrb[40].mxu0 %vm653_vm2, %v1629_v6  ;;  %3654 = vmatmul.mubr.msk.bf16.vlgmr.msra.gmra.mrb[40].mxu1 %vm653_vm2, %v1629_v6 }
 0x8b1   :  { %1878 = vmatpush1.bf16.msra.mxu0 %v3889_v50  ;;  %3658 = vmatpush3.bf16.msra.mxu1 %v3892_v40 }
 0x8b2   :  { %1879 = vmatprep.subr.bf16.mxu0 %v3895_v41  ;;  %3659 = vmatprep.subr.bf16.mxu1 %v4117_v1 }
 0x8b3   :  { %1909 = vmatprep.mubr.bf16.mxu0 %v4118_v3  ;;  %3665 = vmatprep.mubr.msk.bf16.mxu1 %vm4119_vm0, %v4117_v1 }
 0x8b5   :  { %1880 = vmatpush1.bf16.msra.mxu0 %v3893_v42  ;;  %3660 = vmatpush3.bf16.msra.mxu1 %v3896_v44 }
 0x8b6   :  { %1881 = vmatprep.subr.bf16.mxu0 %v3899_v45  ;;  %3661 = vmatprep.subr.bf16.mxu1 %v4117_v1 }
 0x8b9   :  { %1882 = vmatpush1.bf16.msra.mxu0 %v3897_v46  ;;  %3662 = vmatpush3.bf16.msra.mxu1 %v3900_v47  ;;  %v4917_v47 = vrot.slane %v1994_v63, %v4501_v49 }
 0x8ba   :  { %1883 = vmatprep.subr.bf16.mxu0 %v3903_v48  ;;  %3663 = vmatprep.subr.bf16.mxu1 %v4117_v1 }
 0x8bd   :  { %1884 = vmatpush1.bf16.msra.mxu0 %v3901_v51  ;;  %3664 = vmatpush3.bf16.msra.mxu1 %v3904_v52  ;;  %v1971_v51 = vrot.slane %v1958_v29, %v4501_v49 }
 0x8be   :  { %2075 = vmatprep.subr.bf16.mxu0 %v4793_v0  ;;  %3669 = vmatprep.subr.bf16.mxu1 %v4117_v1 }
 0x8c0   :  { %3335 = vmatmul.mubr.msk.bf16.vlgmr.msra.gmra.mrb[44].mxu0 %vm653_vm2, %v1627_v5  ;;  %3666 = vmatmul.mubr.msk.bf16.vlgmr.msra.gmra.mrb[44].mxu1 %vm653_vm2, %v1627_v5 }
 0x8c1   :  { %2076 = vmatpush1.bf16.msra.mxu0 %v4798_v4  ;;  %2107 = vmatprep.mubr.bf16.mxu0 %v4118_v3 }
 0x8c2   :  { %2077 = vmatprep.subr.bf16.mxu0 %v4804_v7  ;;  %3670 = vmatpush3.bf16.msra.mxu1 %v4810_v8 }
 0x8c3   :  { %3671 = vmatprep.subr.bf16.mxu1 %v4117_v1  ;;  %3677 = vmatprep.mubr.msk.bf16.mxu1 %vm4119_vm0, %v4117_v1 }
 0x8c5   :  { %2078 = vmatpush1.bf16.msra.mxu0 %v4818_v9 }
 0x8c6   :  { %2079 = vmatprep.subr.bf16.mxu0 %v4825_v10  ;;  %3672 = vmatpush3.bf16.msra.mxu1 %v4831_v12 }
 0x8c7   :  { %3673 = vmatprep.subr.bf16.mxu1 %v4117_v1 }
 0x8c9   :  { %2080 = vmatpush1.bf16.msra.mxu0 %v4840_v13 }
 0x8ca   :  { %2081 = vmatprep.subr.bf16.mxu0 %v4846_v14  ;;  %3674 = vmatpush3.bf16.msra.mxu1 %v4852_v15 }
 0x8cb   :  { %3675 = vmatprep.subr.bf16.mxu1 %v4117_v1 }
 0x8cd   :  { %2082 = vmatpush1.bf16.msra.mxu0 %v4859_v16 }
 0x8ce   :  { %3676 = vmatpush3.bf16.msra.mxu1 %v4866_v11  ;;  %2183 = vmatprep.subr.bf16.mxu0 %v4793_v0 }
 0x8cf   :  { %3681 = vmatprep.subr.bf16.mxu1 %v4117_v1 }
 0x8d0   :  { %2108 = vmatmul.mubr.bf16.vlgmr.msra.gmra.mrb[48].mxu0 %v4118_v3 }
 0x8d1   :  { %3678 = vmatmul.mubr.bf16.vlgmr.msra.gmra.mrb[48].mxu1 %v4118_v3  ;;  %2184 = vmatpush1.bf16.msra.mxu0 %v4798_v4 }
 0x8d2   :  { %3682 = vmatpush3.bf16.msra.mxu1 %v4810_v8  ;;  %2185 = vmatprep.subr.bf16.mxu0 %v4804_v7 }
 0x8d3   :  { %3683 = vmatprep.subr.bf16.mxu1 %v4117_v1  ;;  %2215 = vmatprep.mubr.bf16.mxu0 %v4118_v3 }
 0x8d4   :  { %3689 = vmatprep.mubr.msk.bf16.mxu1 %vm4119_vm0, %v4117_v1 }
 0x8d5   :  { %2186 = vmatpush1.bf16.msra.mxu0 %v4818_v9 }
 0x8d6   :  { %3684 = vmatpush3.bf16.msra.mxu1 %v4831_v12  ;;  %2187 = vmatprep.subr.bf16.mxu0 %v4825_v10 }
 0x8d7   :  { %3685 = vmatprep.subr.bf16.mxu1 %v4117_v1 }
 0x8d9   :  { %2188 = vmatpush1.bf16.msra.mxu0 %v4840_v13 }
 0x8da   :  { %3686 = vmatpush3.bf16.msra.mxu1 %v4852_v15  ;;  %2189 = vmatprep.subr.bf16.mxu0 %v4846_v14 }
 0x8db   :  { %3687 = vmatprep.subr.bf16.mxu1 %v4117_v1 }
 0x8dd   :  { %2190 = vmatpush1.bf16.msra.mxu0 %v4859_v16 }
 0x8de   :  { %3688 = vmatpush3.bf16.msra.mxu1 %v4866_v11  ;;  %2306 = vmatprep.subr.bf16.mxu0 %v4793_v0 }
 0x8df   :  { %3693 = vmatprep.subr.bf16.mxu1 %v4117_v1 }
 0x983   :  { %v1763_v17 = vpop.f32.mrb[40].mxu0  ;;  %v1804_v18 = vpop.f32.mrb[40].mxu1 }
 0x984   :  { %v1765_v19 = vpop.f32.mrb[41].mxu0  ;;  %v3655_v20 = vpop.f32.mrb[41].mxu1 }
 0x985   :  { %v1767_v21 = vpop.f32.mrb[42].mxu0  ;;  %v1807_v22 = vpop.f32.mrb[42].mxu1 }
 0x986   :  { %v1768_v53 = vpop.f32.mrb[43].mxu0  ;;  %v3656_v54 = vpop.f32.mrb[43].mxu1 }
 0x993   :  { %v1911_v55 = vpop.f32.mrb[44].mxu0  ;;  %v1952_v56 = vpop.f32.mrb[44].mxu1 }
 0x994   :  { %v1912_v57 = vadd.f32 %v1911_v55, %v1763_v17  ;;  %v1953_v58 = vadd.f32 %v1952_v56, %v1804_v18  ;;  %v1913_v60 = vpop.f32.mrb[45].mxu0  ;;  %v3667_v59 = vpop.f32.mrb[45].mxu1 }
 0x995   :  { %v1914_v24 = vadd.f32 %v1913_v60, %v1765_v19  ;;  %v1915_v61 = vpop.f32.mrb[46].mxu0  ;;  %v1955_v25 = vpop.f32.mrb[46].mxu1 }
 0x996   :  { %v1916_v28 = vpop.f32.mrb[47].mxu0  ;;  %v3668_v27 = vpop.f32.mrb[47].mxu1  ;;  %v4908_v33 = vadd.f32 %v1963_v30, %v1912_v57  ;;  %v4921_v17 = vadd.f32 %v1971_v51, %v1953_v58 }
 0x997   :  { %v4913_v6 = vadd.f32 %v1967_v32, %v1914_v24 }
 0x9a3   :  { %v2109_v34 = vpop.f32.mrb[48].mxu0 }
 0x9a4   :  { %v2110_v43 = vadd.f32 %v2109_v34, %v4901_v62  ;;  %v2111_v35 = vpop.f32.mrb[49].mxu0  ;;  %v2150_v36 = vpop.f32.mrb[48].mxu1 }
 0x9a5   :  { %v2112_v37 = vadd.f32 %v2111_v35, %v4905_v31  ;;  %v2113_v38 = vpop.f32.mrb[50].mxu0  ;;  %v3679_v50 = vpop.f32.mrb[49].mxu1  ;;  %v2151_v2 = vadd.f32 %v2150_v36, %v4917_v47 }
 0x9a6   :  { %v2156_v39 = vadd.f32 %v2110_v43, %v4908_v33  ;;  %v2114_v40 = vpop.f32.mrb[51].mxu0  ;;  %v2153_v23 = vpop.f32.mrb[50].mxu1 }
 0x9a7   :  { %v3680_v41 = vpop.f32.mrb[51].mxu1  ;;  %v2157_v26 = vadd.f32 %v2112_v37, %v4913_v6 }
 0x9a8   :  { %v3349_v42 = vmul.f32 -1.442695, %v2156_v39 }
 0x9a9   :  { %v3350_v44 = vmul.f32 -1.442695, %v2157_v26 }
 0x9aa   :  { %4009 = vpow2.f32 %v3349_v42 }
 0x9ab   :  { %4011 = vpow2.f32 %v3350_v44 }
 0x9b4   :  { %v4010_v45 = vpop.eup %4009 }
 0x9b5   :  { %v2164_v46 = vadd.f32 1.0, %v4010_v45  ;;  %v4012_v48 = vpop.eup %4011 }
 0x9b6   :  { %v2165_v52 = vadd.f32 1.0, %v4012_v48 }
 0x9b7   :  { %4013 = vrcp.f32 %v2164_v46 }
 0x9b8   :  { %4015 = vrcp.f32 %v2165_v52 }
 0x9c1   :  { %v4014_v5 = vpop.eup %4013 }
 0x9c2   :  { %v2170_v18 = vmul.f32 %v4014_v5, %v2151_v2  ;;  %v4016_v20 = vpop.eup %4015 }
 0x9c3   :  { %v2173_v21 = vsub.f32 1.0, %v4016_v20  ;;  %v2175_v53 = vmul.f32 0.0, %v4016_v20 }
 0x9c4   :  { %v2171_v19 = vadd.f32 %v2170_v18, %v4921_v17 }
 0x9c6   :  { %4017 = vtanh.f32 %v2171_v19 }
 0x9d0   :  { %v4018_v22 = vpop.eup %4017 }
 0x9d1   :  { %v2174_v54 = vmul.f32 %v4018_v22, %v2173_v21 }
 0x9d3   :  { %v2176_v55 = vadd.f32 %v2175_v53, %v2174_v54 }
 0x9d5   :  { %2177 = vst.msk [vmem:[#allocation4] sm:$0x1] %vm759_vm1, %v2176_v55  ;;  %2178 = vst.msk [vmem:[#allocation5 + $0x7] sm:$0x1] %vm759_vm1, %v2176_v55  ;;  %v2179_v49 = vpack.c.bf16 %v2176_v55, %v2176_v55  ;;  %v2293_v23 = vrot.slane %v2176_v55, 7 }
 0x9d7   :  { %3351 = vmatmul.mubr.msk.bf16.vlgmr.msra.gmra.mrb[52].mxu0 %vm653_vm2, %v2179_v49  ;;  %3690 = vmatmul.mubr.msk.bf16.vlgmr.msra.gmra.mrb[52].mxu1 %vm653_vm2, %v2179_v49 }
 0x9d8   :  { %2307 = vmatpush1.bf16.msra.mxu0 %v4798_v4  ;;  %3694 = vmatpush3.bf16.msra.mxu1 %v4810_v8 }
 0x9d9   :  { %2308 = vmatprep.subr.bf16.mxu0 %v4804_v7  ;;  %3695 = vmatprep.subr.bf16.mxu1 %v4117_v1 }
 0x9da   :  { %2338 = vmatprep.mubr.bf16.mxu0 %v4118_v3  ;;  %3701 = vmatprep.mubr.msk.bf16.mxu1 %vm4119_vm0, %v4117_v1 }
 0x9dc   :  { %2309 = vmatpush1.bf16.msra.mxu0 %v4818_v9  ;;  %3696 = vmatpush3.bf16.msra.mxu1 %v4831_v12 }
 0x9dd   :  { %2310 = vmatprep.subr.bf16.mxu0 %v4825_v10  ;;  %3697 = vmatprep.subr.bf16.mxu1 %v4117_v1 }
 0x9e0   :  { %2311 = vmatpush1.bf16.msra.mxu0 %v4840_v13  ;;  %3698 = vmatpush3.bf16.msra.mxu1 %v4852_v15 }
 0x9e1   :  { %2312 = vmatprep.subr.bf16.mxu0 %v4846_v14  ;;  %3699 = vmatprep.subr.bf16.mxu1 %v4117_v1 }
 0x9e4   :  { %2313 = vmatpush1.bf16.msra.mxu0 %v4859_v16  ;;  %3700 = vmatpush3.bf16.msra.mxu1 %v4866_v11 }
 0x9e5   :  { %2428 = vmatprep.subr.bf16.mxu0 %v4793_v0  ;;  %3705 = vmatprep.subr.bf16.mxu1 %v4117_v1 }
 0xaaa   :  { %v2217_v56 = vpop.f32.mrb[52].mxu0  ;;  %v2258_v57 = vpop.f32.mrb[52].mxu1 }
 0xaab   :  { %v2218_v58 = vadd.f32 %v2217_v56, %v4901_v62  ;;  %v2219_v60 = vpop.f32.mrb[53].mxu0  ;;  %v3691_v59 = vpop.f32.mrb[53].mxu1  ;;  %v2259_v50 = vadd.f32 %v2258_v57, %v4917_v47 }
 0xaac   :  { %v2220_v24 = vadd.f32 %v2219_v60, %v4905_v31  ;;  %v2221_v61 = vpop.f32.mrb[54].mxu0  ;;  %v2261_v25 = vpop.f32.mrb[54].mxu1 }
 0xaad   :  { %v2266_v28 = vrot.slane %v2218_v58, 7  ;;  %v2222_v27 = vpop.f32.mrb[55].mxu0  ;;  %v3692_v63 = vpop.f32.mrb[55].mxu1  ;;  %v2285_v39 = vrot.slane %v2259_v50, 7 }
 0xaae   :  { %v2267_v29 = vrot.slane %v2220_v24, 7 }
 0xaaf   :  { %v2270_v30 = vadd.f32 %v2266_v28, %v4908_v33 }
 0xab0   :  { %v2271_v32 = vadd.f32 %v2267_v29, %v4913_v6 }
 0xab1   :  { %v3353_v34 = vmul.f32 -1.442695, %v2270_v30 }
 0xab2   :  { %v3354_v43 = vmul.f32 -1.442695, %v2271_v32 }
 0xab3   :  { %4019 = vpow2.f32 %v3353_v34 }
 0xab4   :  { %4021 = vpow2.f32 %v3354_v43 }
 0xabd   :  { %v4020_v35 = vpop.eup %4019 }
 0xabe   :  { %v4022_v36 = vpop.eup %4021  ;;  %v2278_v37 = vadd.f32 1.0, %v4020_v35 }
 0xabf   :  { %v2279_v38 = vadd.f32 1.0, %v4022_v36 }
 0xac0   :  { %4023 = vrcp.f32 %v2278_v37 }
 0xac1   :  { %4025 = vrcp.f32 %v2279_v38 }
 0xaca   :  { %v4024_v40 = vpop.eup %4023 }
 0xacb   :  { %v4026_v41 = vpop.eup %4025  ;;  %v2287_v42 = vmul.f32 %v4024_v40, %v2285_v39 }
 0xacc   :  { %v2295_v26 = vmul.f32 %v4026_v41, %v2293_v23  ;;  %v2290_v45 = vsub.f32 1.0, %v4026_v41 }
 0xacd   :  { %v2288_v44 = vadd.f32 %v2287_v42, %v4921_v17 }
 0xacf   :  { %4027 = vtanh.f32 %v2288_v44 }
 0xad9   :  { %v4028_v46 = vpop.eup %4027 }
 0xada   :  { %v2291_v48 = vmul.f32 %v4028_v46, %v2290_v45 }
 0xadc   :  { %v2296_v51 = vadd.f32 %v2295_v26, %v2291_v48 }
 0xade   :  { %2297 = vst.msk [vmem:[#allocation4] sm:$0x2] %vm880_vm3, %v2296_v51  ;;  %2298 = vst.msk [vmem:[#allocation5 + $0x5] sm:$0x2] %vm880_vm3, %v2296_v51  ;;  %v2299_v52 = vpack.c.bf16 %v2296_v51, %v2296_v51  ;;  %v2416_v32 = vrot.slane %v2296_v51, 7 }
 0xae0   :  { %v2301_v2 = vshrl.u32 %v2299_v52, 16 }
 0xae2   :  { %3355 = vmatmul.mubr.msk.bf16.vlgmr.msra.gmra.mrb[56].mxu0 %vm653_vm2, %v2301_v2  ;;  %3702 = vmatmul.mubr.msk.bf16.vlgmr.msra.gmra.mrb[56].mxu1 %vm653_vm2, %v2301_v2 }
 0xae3   :  { %2429 = vmatpush1.bf16.msra.mxu0 %v4798_v4  ;;  %3706 = vmatpush3.bf16.msra.mxu1 %v4810_v8 }
 0xae4   :  { %2430 = vmatprep.subr.bf16.mxu0 %v4804_v7  ;;  %3707 = vmatprep.subr.bf16.mxu1 %v4117_v1 }
 0xae5   :  { %2460 = vmatprep.mubr.bf16.mxu0 %v4118_v3  ;;  %3713 = vmatprep.mubr.msk.bf16.mxu1 %vm4119_vm0, %v4117_v1 }
 0xae7   :  { %2431 = vmatpush1.bf16.msra.mxu0 %v4818_v9  ;;  %3708 = vmatpush3.bf16.msra.mxu1 %v4831_v12 }
 0xae8   :  { %2432 = vmatprep.subr.bf16.mxu0 %v4825_v10  ;;  %3709 = vmatprep.subr.bf16.mxu1 %v4117_v1 }
 0xaeb   :  { %2433 = vmatpush1.bf16.msra.mxu0 %v4840_v13  ;;  %3710 = vmatpush3.bf16.msra.mxu1 %v4852_v15 }
 0xaec   :  { %2434 = vmatprep.subr.bf16.mxu0 %v4846_v14  ;;  %3711 = vmatprep.subr.bf16.mxu1 %v4117_v1 }
 0xaef   :  { %2435 = vmatpush1.bf16.msra.mxu0 %v4859_v16  ;;  %3712 = vmatpush3.bf16.msra.mxu1 %v4866_v11 }
 0xaf0   :  { %2552 = vmatprep.subr.bf16.mxu0 %v4793_v0  ;;  %3717 = vmatprep.subr.bf16.mxu1 %v4117_v1 }
 0xbb5   :  { %v2340_v5 = vpop.f32.mrb[56].mxu0  ;;  %v2381_v18 = vpop.f32.mrb[56].mxu1 }
 0xbb6   :  { %v2341_v19 = vadd.f32 %v2340_v5, %v4901_v62  ;;  %v2342_v20 = vpop.f32.mrb[57].mxu0  ;;  %v3703_v21 = vpop.f32.mrb[57].mxu1  ;;  %v2382_v63 = vadd.f32 %v2381_v18, %v4917_v47 }
 0xbb7   :  { %v2343_v22 = vadd.f32 %v2342_v20, %v4905_v31  ;;  %v2344_v53 = vpop.f32.mrb[58].mxu0  ;;  %v2384_v54 = vpop.f32.mrb[58].mxu1 }
 0xbb8   :  { %v2389_v55 = vrot.slane %v2341_v19, 6  ;;  %v2345_v49 = vpop.f32.mrb[59].mxu0  ;;  %v3704_v56 = vpop.f32.mrb[59].mxu1  ;;  %v2408_v29 = vrot.slane %v2382_v63, 6 }
 0xbb9   :  { %v2390_v57 = vrot.slane %v2343_v22, 6 }
 0xbba   :  { %v2393_v58 = vadd.f32 %v2389_v55, %v4908_v33 }
 0xbbb   :  { %v2394_v60 = vadd.f32 %v2390_v57, %v4913_v6 }
 0xbbc   :  { %v3357_v59 = vmul.f32 -1.442695, %v2393_v58 }
 0xbbd   :  { %v3358_v24 = vmul.f32 -1.442695, %v2394_v60 }
 0xbbe   :  { %4029 = vpow2.f32 %v3357_v59 }
 0xbbf   :  { %4031 = vpow2.f32 %v3358_v24 }
 0xbc8   :  { %v4030_v61 = vpop.eup %4029 }
 0xbc9   :  { %v4032_v25 = vpop.eup %4031  ;;  %v2401_v28 = vadd.f32 1.0, %v4030_v61 }
 0xbca   :  { %v2402_v27 = vadd.f32 1.0, %v4032_v25 }
 0xbcb   :  { %4033 = vrcp.f32 %v2401_v28 }
 0xbcc   :  { %4035 = vrcp.f32 %v2402_v27 }
 0xbd5   :  { %v4034_v30 = vpop.eup %4033 }
 0xbd6   :  { %v4036_v34 = vpop.eup %4035  ;;  %v2410_v43 = vmul.f32 %v4034_v30, %v2408_v29 }
 0xbd7   :  { %v2418_v35 = vmul.f32 %v4036_v34, %v2416_v32  ;;  %v2413_v37 = vsub.f32 1.0, %v4036_v34 }
 0xbd8   :  { %v2411_v36 = vadd.f32 %v2410_v43, %v4921_v17 }
 0xbda   :  { %4037 = vtanh.f32 %v2411_v36 }
 0xbe4   :  { %v4038_v38 = vpop.eup %4037 }
 0xbe5   :  { %v2414_v50 = vmul.f32 %v4038_v38, %v2413_v37 }
 0xbe7   :  { %v2419_v39 = vadd.f32 %v2418_v35, %v2414_v50 }
 0xbe9   :  { %2420 = vst.msk [vmem:[#allocation4] sm:$0x4] %vm1004_vm4, %v2419_v39  ;;  %2421 = vst.msk [vmem:[#allocation5 + $0x3] sm:$0x4] %vm1004_vm4, %v2419_v39  ;;  %v2422_v40 = vpack.c.bf16 %v2419_v39, %v2419_v39  ;;  %v2538_v60 = vrot.slane %v2419_v39, 7 }
 0xbeb   :  { %v2424_v23 = vrot.slane %v2422_v40, 1 }
 0xbed   :  { %3359 = vmatmul.mubr.msk.bf16.vlgmr.msra.gmra.mrb[60].mxu0 %vm653_vm2, %v2424_v23  ;;  %3714 = vmatmul.mubr.msk.bf16.vlgmr.msra.gmra.mrb[60].mxu1 %vm653_vm2, %v2424_v23 }
 0xbee   :  { %2553 = vmatpush1.bf16.msra.mxu0 %v4798_v4  ;;  %3718 = vmatpush3.bf16.msra.mxu1 %v4810_v8 }
 0xbef   :  { %2554 = vmatprep.subr.bf16.mxu0 %v4804_v7  ;;  %3719 = vmatprep.subr.bf16.mxu1 %v4117_v1 }
 0xbf0   :  { %2584 = vmatprep.mubr.bf16.mxu0 %v4118_v3  ;;  %3725 = vmatprep.mubr.msk.bf16.mxu1 %vm4119_vm0, %v4117_v1 }
 0xbf2   :  { %2555 = vmatpush1.bf16.msra.mxu0 %v4818_v9  ;;  %3720 = vmatpush3.bf16.msra.mxu1 %v4831_v12 }
 0xbf3   :  { %2556 = vmatprep.subr.bf16.mxu0 %v4825_v10  ;;  %3721 = vmatprep.subr.bf16.mxu1 %v4117_v1 }
 0xbf6   :  { %2557 = vmatpush1.bf16.msra.mxu0 %v4840_v13  ;;  %3722 = vmatpush3.bf16.msra.mxu1 %v4852_v15 }
 0xbf7   :  { %2558 = vmatprep.subr.bf16.mxu0 %v4846_v14  ;;  %3723 = vmatprep.subr.bf16.mxu1 %v4117_v1 }
 0xbfa   :  { %2559 = vmatpush1.bf16.msra.mxu0 %v4859_v16  ;;  %3724 = vmatpush3.bf16.msra.mxu1 %v4866_v11 }
 0xbfb   :  { %2674 = vmatprep.subr.bf16.mxu0 %v4793_v0  ;;  %3729 = vmatprep.subr.bf16.mxu1 %v4117_v1 }
 0xcc0   :  { %v2462_v41 = vpop.f32.mrb[60].mxu0  ;;  %v2503_v42 = vpop.f32.mrb[60].mxu1 }
 0xcc1   :  { %v2463_v26 = vadd.f32 %v2462_v41, %v4901_v62  ;;  %v2464_v44 = vpop.f32.mrb[61].mxu0  ;;  %v3715_v45 = vpop.f32.mrb[61].mxu1  ;;  %v2504_v56 = vadd.f32 %v2503_v42, %v4917_v47 }
 0xcc2   :  { %v2465_v46 = vadd.f32 %v2464_v44, %v4905_v31  ;;  %v2466_v48 = vpop.f32.mrb[62].mxu0  ;;  %v2506_v51 = vpop.f32.mrb[62].mxu1 }
 0xcc3   :  { %v2511_v52 = vrot.slane %v2463_v26, 5  ;;  %v2467_v2 = vpop.f32.mrb[63].mxu0  ;;  %v3716_v5 = vpop.f32.mrb[63].mxu1  ;;  %v2530_v57 = vrot.slane %v2504_v56, 5 }
 0xcc4   :  { %v2512_v18 = vrot.slane %v2465_v46, 5 }
 0xcc5   :  { %v2515_v19 = vadd.f32 %v2511_v52, %v4908_v33 }
 0xcc6   :  { %v2516_v20 = vadd.f32 %v2512_v18, %v4913_v6 }
 0xcc7   :  { %v3361_v21 = vmul.f32 -1.442695, %v2515_v19 }
 0xcc8   :  { %v3362_v22 = vmul.f32 -1.442695, %v2516_v20 }
 0xcc9   :  { %4039 = vpow2.f32 %v3361_v21 }
 0xcca   :  { %4041 = vpow2.f32 %v3362_v22 }
 0xcd3   :  { %v4040_v53 = vpop.eup %4039 }
 0xcd4   :  { %v4042_v54 = vpop.eup %4041  ;;  %v2523_v55 = vadd.f32 1.0, %v4040_v53 }
 0xcd5   :  { %v2524_v49 = vadd.f32 1.0, %v4042_v54 }
 0xcd6   :  { %4043 = vrcp.f32 %v2523_v55 }
 0xcd7   :  { %4045 = vrcp.f32 %v2524_v49 }
 0xce0   :  { %v4044_v58 = vpop.eup %4043 }
 0xce1   :  { %v4046_v59 = vpop.eup %4045  ;;  %v2532_v24 = vmul.f32 %v4044_v58, %v2530_v57 }
 0xce2   :  { %v2540_v61 = vmul.f32 %v4046_v59, %v2538_v60  ;;  %v2535_v28 = vsub.f32 1.0, %v4046_v59 }
 0xce3   :  { %v2533_v25 = vadd.f32 %v2532_v24, %v4921_v17 }
 0xce5   :  { %4047 = vtanh.f32 %v2533_v25 }
 0xcef   :  { %v4048_v27 = vpop.eup %4047 }
 0xcf0   :  { %v2536_v63 = vmul.f32 %v4048_v27, %v2535_v28 }
 0xcf2   :  { %v2541_v29 = vadd.f32 %v2540_v61, %v2536_v63 }
 0xcf4   :  { %2542 = vst.msk [vmem:[#allocation4] sm:$0x8] %vm1127_vm5, %v2541_v29  ;;  %2543 = vst.msk [vmem:[#allocation5 + $0x1] sm:$0x8] %vm1127_vm5, %v2541_v29  ;;  %v2544_v30 = vpack.c.bf16 %v2541_v29, %v2541_v29  ;;  %v2662_v21 = vrot.slane %v2541_v29, 7 }
 0xcf6   :  { %v2546_v32 = vshrl.u32 %v2544_v30, 16 }
 0xcf8   :  { %v2548_v34 = vrot.slane %v2546_v32, 1 }
 0xcfa   :  { %3363 = vmatmul.mubr.msk.bf16.vlgmr.msra.gmra.mrb[64].mxu0 %vm653_vm2, %v2548_v34  ;;  %3726 = vmatmul.mubr.msk.bf16.vlgmr.msra.gmra.mrb[64].mxu1 %vm653_vm2, %v2548_v34 }
 0xcfb   :  { %2675 = vmatpush1.bf16.msra.mxu0 %v4798_v4  ;;  %3730 = vmatpush3.bf16.msra.mxu1 %v4810_v8 }
 0xcfc   :  { %2676 = vmatprep.subr.bf16.mxu0 %v4804_v7  ;;  %3731 = vmatprep.subr.bf16.mxu1 %v4117_v1 }
 0xcfd   :  { %2706 = vmatprep.mubr.bf16.mxu0 %v4118_v3  ;;  %3737 = vmatprep.mubr.msk.bf16.mxu1 %vm4119_vm0, %v4117_v1 }
 0xcff   :  { %2677 = vmatpush1.bf16.msra.mxu0 %v4818_v9  ;;  %3732 = vmatpush3.bf16.msra.mxu1 %v4831_v12 }
 0xd00   :  { %2678 = vmatprep.subr.bf16.mxu0 %v4825_v10  ;;  %3733 = vmatprep.subr.bf16.mxu1 %v4117_v1 }
 0xd03   :  { %2679 = vmatpush1.bf16.msra.mxu0 %v4840_v13  ;;  %3734 = vmatpush3.bf16.msra.mxu1 %v4852_v15 }
 0xd04   :  { %2680 = vmatprep.subr.bf16.mxu0 %v4846_v14  ;;  %3735 = vmatprep.subr.bf16.mxu1 %v4117_v1 }
 0xd07   :  { %2681 = vmatpush1.bf16.msra.mxu0 %v4859_v16  ;;  %3736 = vmatpush3.bf16.msra.mxu1 %v4866_v11 }
 0xd08   :  { %2798 = vmatprep.subr.bf16.mxu0 %v4793_v0  ;;  %3741 = vmatprep.subr.bf16.mxu1 %v4117_v1 }
 0xdcd   :  { %v2586_v43 = vpop.f32.mrb[64].mxu0  ;;  %v2627_v35 = vpop.f32.mrb[64].mxu1 }
 0xdce   :  { %v2587_v36 = vadd.f32 %v2586_v43, %v4901_v62  ;;  %v2588_v37 = vpop.f32.mrb[65].mxu0  ;;  %v3727_v38 = vpop.f32.mrb[65].mxu1  ;;  %v2628_v18 = vadd.f32 %v2627_v35, %v4917_v47 }
 0xdcf   :  { %v2589_v50 = vadd.f32 %v2588_v37, %v4905_v31  ;;  %v2590_v39 = vpop.f32.mrb[66].mxu0  ;;  %v2630_v40 = vpop.f32.mrb[66].mxu1 }
 0xdd0   :  { %v2635_v23 = vrot.slane %v2587_v36, 4  ;;  %v2591_v41 = vpop.f32.mrb[67].mxu0  ;;  %v3728_v42 = vpop.f32.mrb[67].mxu1  ;;  %v2654_v19 = vrot.slane %v2628_v18, 4 }
 0xdd1   :  { %v2636_v26 = vrot.slane %v2589_v50, 4 }
 0xdd2   :  { %v2639_v44 = vadd.f32 %v2635_v23, %v4908_v33 }
 0xdd3   :  { %v2640_v45 = vadd.f32 %v2636_v26, %v4913_v6 }
 0xdd4   :  { %v3365_v46 = vmul.f32 -1.442695, %v2639_v44 }
 0xdd5   :  { %v3366_v48 = vmul.f32 -1.442695, %v2640_v45 }
 0xdd6   :  { %4049 = vpow2.f32 %v3365_v46 }
 0xdd7   :  { %4051 = vpow2.f32 %v3366_v48 }
 0xde0   :  { %v4050_v51 = vpop.eup %4049 }
 0xde1   :  { %v4052_v52 = vpop.eup %4051  ;;  %v2647_v2 = vadd.f32 1.0, %v4050_v51 }
 0xde2   :  { %v2648_v5 = vadd.f32 1.0, %v4052_v52 }
 0xde3   :  { %4053 = vrcp.f32 %v2647_v2 }
 0xde4   :  { %4055 = vrcp.f32 %v2648_v5 }
 0xded   :  { %v4054_v20 = vpop.eup %4053 }
 0xdee   :  { %v4056_v22 = vpop.eup %4055  ;;  %v2656_v53 = vmul.f32 %v4054_v20, %v2654_v19 }
 0xdef   :  { %v2664_v54 = vmul.f32 %v4056_v22, %v2662_v21  ;;  %v2659_v49 = vsub.f32 1.0, %v4056_v22 }
 0xdf0   :  { %v2657_v55 = vadd.f32 %v2656_v53, %v4921_v17 }
 0xdf2   :  { %4057 = vtanh.f32 %v2657_v55 }
 0xdfc   :  { %v4058_v56 = vpop.eup %4057 }
 0xdfd   :  { %v2660_v57 = vmul.f32 %v4058_v56, %v2659_v49 }
 0xdff   :  { %v2665_v58 = vadd.f32 %v2664_v54, %v2660_v57 }
 0xe01   :  { %2666 = vst.msk [vmem:[#allocation4] sm:$0x10] %vm1252_vm6, %v2665_v58  ;;  %2667 = vst.msk [vmem:[#allocation5 - $0x1] sm:$0x10] %vm1252_vm6, %v2665_v58  ;;  %v2668_v60 = vpack.c.bf16 %v2665_v58, %v2665_v58  ;;  %v2784_v44 = vrot.slane %v2665_v58, 7 }
 0xe03   :  { %v2670_v59 = vrot.slane %v2668_v60, 2 }
 0xe05   :  { %3367 = vmatmul.mubr.msk.bf16.vlgmr.msra.gmra.mrb[68].mxu0 %vm653_vm2, %v2670_v59  ;;  %3738 = vmatmul.mubr.msk.bf16.vlgmr.msra.gmra.mrb[68].mxu1 %vm653_vm2, %v2670_v59 }
 0xe06   :  { %2799 = vmatpush1.bf16.msra.mxu0 %v4798_v4  ;;  %3742 = vmatpush3.bf16.msra.mxu1 %v4810_v8 }
 0xe07   :  { %2800 = vmatprep.subr.bf16.mxu0 %v4804_v7  ;;  %3743 = vmatprep.subr.bf16.mxu1 %v4117_v1 }
 0xe08   :  { %2830 = vmatprep.mubr.bf16.mxu0 %v4118_v3  ;;  %3749 = vmatprep.mubr.msk.bf16.mxu1 %vm4119_vm0, %v4117_v1 }
 0xe0a   :  { %2801 = vmatpush1.bf16.msra.mxu0 %v4818_v9  ;;  %3744 = vmatpush3.bf16.msra.mxu1 %v4831_v12 }
 0xe0b   :  { %2802 = vmatprep.subr.bf16.mxu0 %v4825_v10  ;;  %3745 = vmatprep.subr.bf16.mxu1 %v4117_v1 }
 0xe0e   :  { %2803 = vmatpush1.bf16.msra.mxu0 %v4840_v13  ;;  %3746 = vmatpush3.bf16.msra.mxu1 %v4852_v15 }
 0xe0f   :  { %2804 = vmatprep.subr.bf16.mxu0 %v4846_v14  ;;  %3747 = vmatprep.subr.bf16.mxu1 %v4117_v1 }
 0xe12   :  { %2805 = vmatpush1.bf16.msra.mxu0 %v4859_v16  ;;  %3748 = vmatpush3.bf16.msra.mxu1 %v4866_v11 }
 0xe13   :  { %2920 = vmatprep.subr.bf16.mxu0 %v4793_v0  ;;  %3753 = vmatprep.subr.bf16.mxu1 %v4117_v1 }
 0xed8   :  { %v2708_v24 = vpop.f32.mrb[68].mxu0  ;;  %v2749_v61 = vpop.f32.mrb[68].mxu1 }
 0xed9   :  { %v2709_v25 = vadd.f32 %v2708_v24, %v4901_v62  ;;  %v2710_v28 = vpop.f32.mrb[69].mxu0  ;;  %v3739_v27 = vpop.f32.mrb[69].mxu1  ;;  %v2750_v41 = vadd.f32 %v2749_v61, %v4917_v47 }
 0xeda   :  { %v2711_v63 = vadd.f32 %v2710_v28, %v4905_v31  ;;  %v2712_v29 = vpop.f32.mrb[70].mxu0  ;;  %v2752_v30 = vpop.f32.mrb[70].mxu1 }
 0xedb   :  { %v2757_v32 = vrot.slane %v2709_v25, 3  ;;  %v2713_v34 = vpop.f32.mrb[71].mxu0  ;;  %v3740_v43 = vpop.f32.mrb[71].mxu1  ;;  %v2776_v42 = vrot.slane %v2750_v41, 3 }
 0xedc   :  { %v2758_v35 = vrot.slane %v2711_v63, 3 }
 0xedd   :  { %v2761_v36 = vadd.f32 %v2757_v32, %v4908_v33 }
 0xede   :  { %v2762_v0 = vadd.f32 %v2758_v35, %v4913_v6 }
 0xedf   :  { %v3369_v37 = vmul.f32 -1.442695, %v2761_v36  ;;  %v3921_v36 = vld [vmem:[%s5174_s13] sm:$0xff]  }
 0xee0   :  { %v3370_v38 = vmul.f32 -1.442695, %v2762_v0  ;;  %v3922_v0 = vld [vmem:[%s5173_s12] sm:$0xff]  }
 0xee1   :  { %4059 = vpow2.f32 %v3369_v37  ;;  %v3923_v37 = vld [vmem:[%s5174_s13 + $0x8] sm:$0xff]  }
 0xee2   :  { %4061 = vpow2.f32 %v3370_v38  ;;  %v3924_v38 = vld [vmem:[%s5173_s12 + $0x8] sm:$0xff]  }
 0xeeb   :  { %v4060_v50 = vpop.eup %4059 }
 0xeec   :  { %v4062_v39 = vpop.eup %4061  ;;  %v2769_v40 = vadd.f32 1.0, %v4060_v50  ;;  %v3925_v50 = vld [vmem:[%s5174_s13 + $0x10] sm:$0xff]  }
 0xeed   :  { %v2770_v23 = vadd.f32 1.0, %v4062_v39  ;;  %v3926_v39 = vld [vmem:[%s5173_s12 + $0x10] sm:$0xff]  }
 0xeee   :  { %4063 = vrcp.f32 %v2769_v40  ;;  %v3927_v40 = vld [vmem:[%s5174_s13 + $0x18] sm:$0xff]  }
 0xeef   :  { %4065 = vrcp.f32 %v2770_v23  ;;  %v3928_v23 = vld [vmem:[%s5173_s12 + $0x18] sm:$0xff]  }
 0xef8   :  { %v4064_v26 = vpop.eup %4063 }
 0xef9   :  { %v4066_v45 = vpop.eup %4065  ;;  %v2778_v46 = vmul.f32 %v4064_v26, %v2776_v42 }
 0xefa   :  { %v2786_v48 = vmul.f32 %v4066_v45, %v2784_v44  ;;  %v2781_v52 = vsub.f32 1.0, %v4066_v45 }
 0xefb   :  { %v2779_v51 = vadd.f32 %v2778_v46, %v4921_v17 }
 0xefd   :  { %4067 = vtanh.f32 %v2779_v51 }
 0xf07   :  { %v4068_v2 = vpop.eup %4067 }
 0xf08   :  { %v2782_v5 = vmul.f32 %v4068_v2, %v2781_v52 }
 0xf0a   :  { %v2787_v18 = vadd.f32 %v2786_v48, %v2782_v5 }
 0xf0c   :  { %2788 = vst.msk [vmem:[#allocation4] sm:$0x20] %vm1375_vm7, %v2787_v18  ;;  %2789 = vst.msk [vmem:[#allocation5 - $0x3] sm:$0x20] %vm1375_vm7, %v2787_v18  ;;  %v2790_v19 = vpack.c.bf16 %v2787_v18, %v2787_v18  ;;  %v2908_v61 = vrot.slane %v2787_v18, 7 }
 0xf0e   :  { %v2792_v20 = vshrl.u32 %v2790_v19, 16 }
 0xf10   :  { %v2794_v21 = vrot.slane %v2792_v20, 2 }
 0xf12   :  { %3371 = vmatmul.mubr.msk.bf16.vlgmr.msra.gmra.mrb[72].mxu0 %vm653_vm2, %v2794_v21  ;;  %3750 = vmatmul.mubr.msk.bf16.vlgmr.msra.gmra.mrb[72].mxu1 %vm653_vm2, %v2794_v21 }
 0xf13   :  { %2921 = vmatpush1.bf16.msra.mxu0 %v4798_v4  ;;  %3754 = vmatpush3.bf16.msra.mxu1 %v4810_v8 }
 0xf14   :  { %2922 = vmatprep.subr.bf16.mxu0 %v4804_v7  ;;  %3755 = vmatprep.subr.bf16.mxu1 %v4117_v1 }
 0xf15   :  { %2952 = vmatprep.mubr.bf16.mxu0 %v4118_v3  ;;  %3761 = vmatprep.mubr.msk.bf16.mxu1 %vm4119_vm0, %v4117_v1 }
 0xf17   :  { %2923 = vmatpush1.bf16.msra.mxu0 %v4818_v9  ;;  %3756 = vmatpush3.bf16.msra.mxu1 %v4831_v12 }
 0xf18   :  { %2924 = vmatprep.subr.bf16.mxu0 %v4825_v10  ;;  %3757 = vmatprep.subr.bf16.mxu1 %v4117_v1 }
 0xf1b   :  { %2925 = vmatpush1.bf16.msra.mxu0 %v4840_v13  ;;  %3758 = vmatpush3.bf16.msra.mxu1 %v4852_v15 }
 0xf1c   :  { %2926 = vmatprep.subr.bf16.mxu0 %v4846_v14  ;;  %3759 = vmatprep.subr.bf16.mxu1 %v4117_v1 }
 0xf1f   :  { %2927 = vmatpush1.bf16.msra.mxu0 %v4859_v16  ;;  %3760 = vmatpush3.bf16.msra.mxu1 %v4866_v11 }
 0xf20   :  { %3765 = vmatprep.subr.bf16.mxu0 %v4117_v1  ;;  %3777 = vmatprep.subr.bf16.mxu1 %v4117_v1 }
 0xfe5   :  { %v2832_v3 = vpop.f32.mrb[72].mxu0  ;;  %v2873_v4 = vpop.f32.mrb[72].mxu1 }
 0xfe6   :  { %v2833_v7 = vadd.f32 %v2832_v3, %v4901_v62  ;;  %v2834_v8 = vpop.f32.mrb[73].mxu0  ;;  %v3751_v9 = vpop.f32.mrb[73].mxu1  ;;  %v2874_v60 = vadd.f32 %v2873_v4, %v4917_v47 }
 0xfe7   :  { %v2835_v10 = vadd.f32 %v2834_v8, %v4905_v31  ;;  %v2836_v12 = vpop.f32.mrb[74].mxu0  ;;  %v2876_v13 = vpop.f32.mrb[74].mxu1 }
 0xfe8   :  { %v2881_v14 = vrot.slane %v2833_v7, 2  ;;  %v2837_v15 = vpop.f32.mrb[75].mxu0  ;;  %v3752_v22 = vpop.f32.mrb[75].mxu1  ;;  %v2900_v59 = vrot.slane %v2874_v60, 2 }
 0xfe9   :  { %v2882_v16 = vrot.slane %v2835_v10, 2 }
 0xfea   :  { %v2885_v11 = vadd.f32 %v2881_v14, %v4908_v33 }
 0xfeb   :  { %v2886_v53 = vadd.f32 %v2882_v16, %v4913_v6 }
 0xfec   :  { %v3373_v54 = vmul.f32 -1.442695, %v2885_v11 }
 0xfed   :  { %v3374_v55 = vmul.f32 -1.442695, %v2886_v53 }
 0xfee   :  { %4069 = vpow2.f32 %v3373_v54 }
 0xfef   :  { %4071 = vpow2.f32 %v3374_v55 }
 0xff8   :  { %v4070_v49 = vpop.eup %4069 }
 0xff9   :  { %v4072_v56 = vpop.eup %4071  ;;  %v2893_v57 = vadd.f32 1.0, %v4070_v49 }
 0xffa   :  { %v2894_v58 = vadd.f32 1.0, %v4072_v56 }
 0xffb   :  { %4073 = vrcp.f32 %v2893_v57 }
 0xffc   :  { %4075 = vrcp.f32 %v2894_v58 }
0x1005   :  { %v4074_v24 = vpop.eup %4073 }
0x1006   :  { %v4076_v25 = vpop.eup %4075  ;;  %v2902_v28 = vmul.f32 %v4074_v24, %v2900_v59 }
0x1007   :  { %v2910_v27 = vmul.f32 %v4076_v25, %v2908_v61  ;;  %v2905_v29 = vsub.f32 1.0, %v4076_v25 }
0x1008   :  { %v2903_v63 = vadd.f32 %v2902_v28, %v4921_v17 }
0x100a   :  { %4077 = vtanh.f32 %v2903_v63 }
0x1014   :  { %v4078_v30 = vpop.eup %4077 }
0x1015   :  { %v2906_v32 = vmul.f32 %v4078_v30, %v2905_v29 }
0x1017   :  { %v2911_v34 = vadd.f32 %v2910_v27, %v2906_v32 }
0x1019   :  { %2912 = vst.msk [vmem:[#allocation4] sm:$0x40] %vm1500_vm8, %v2911_v34  ;;  %2913 = vst.msk [vmem:[#allocation5 - $0x5] sm:$0x40] %vm1500_vm8, %v2911_v34  ;;  %v2914_v43 = vpack.c.bf16 %v2911_v34, %v2911_v34  ;;  %v3030_v10 = vrot.slane %v2911_v34, 7 }
0x101b   :  { %v2916_v35 = vrot.slane %v2914_v43, 3 }
0x101d   :  { %3375 = vmatmul.mubr.msk.bf16.vlgmr.msra.gmra.mrb[76].mxu0 %vm653_vm2, %v2916_v35  ;;  %3762 = vmatmul.mubr.msk.bf16.vlgmr.msra.gmra.mrb[76].mxu1 %vm653_vm2, %v2916_v35 }
0x101e   :  { %3773 = vmatprep.mubr.msk.bf16.mxu0 %vm4119_vm0, %v4117_v1  ;;  %3785 = vmatprep.mubr.msk.bf16.mxu1 %vm4119_vm0, %v4117_v1 }
0x101f   :  { %3766 = vmatpush3.bf16.msra.mxu0 %v3921_v36  ;;  %3778 = vmatpush3.bf16.msra.mxu1 %v3922_v0 }
0x1020   :  { %3767 = vmatprep.subr.bf16.mxu0 %v4117_v1  ;;  %3779 = vmatprep.subr.bf16.mxu1 %v4117_v1 }
0x1023   :  { %3768 = vmatpush3.bf16.msra.mxu0 %v3923_v37  ;;  %3780 = vmatpush3.bf16.msra.mxu1 %v3924_v38 }
0x1024   :  { %3769 = vmatprep.subr.bf16.mxu0 %v4117_v1  ;;  %3781 = vmatprep.subr.bf16.mxu1 %v4117_v1 }
0x1027   :  { %3770 = vmatpush3.bf16.msra.mxu0 %v3925_v50  ;;  %3782 = vmatpush3.bf16.msra.mxu1 %v3926_v39 }
0x1028   :  { %3771 = vmatprep.subr.bf16.mxu0 %v4117_v1  ;;  %3783 = vmatprep.subr.bf16.mxu1 %v4117_v1 }
0x102b   :  { %3772 = vmatpush3.bf16.msra.mxu0 %v3927_v40  ;;  %3784 = vmatpush3.bf16.msra.mxu1 %v3928_v23 }
0x10f0   :  { %v2954_v41 = vpop.f32.mrb[76].mxu0  ;;  %v2995_v42 = vpop.f32.mrb[76].mxu1 }
0x10f1   :  { %v2955_v26 = vadd.f32 %v2954_v41, %v4901_v62  ;;  %v2956_v44 = vpop.f32.mrb[77].mxu0  ;;  %v3763_v45 = vpop.f32.mrb[77].mxu1 }
0x10f2   :  { %v2957_v46 = vadd.f32 %v2956_v44, %v4905_v31  ;;  %v2958_v48 = vpop.f32.mrb[78].mxu0  ;;  %v2998_v51 = vpop.f32.mrb[78].mxu1  ;;  %v2996_v31 = vadd.f32 %v2995_v42, %v4917_v47 }
0x10f3   :  { %v3003_v52 = vrot.slane %v2955_v26, 1  ;;  %v2959_v2 = vpop.f32.mrb[79].mxu0  ;;  %v3764_v5 = vpop.f32.mrb[79].mxu1 }
0x10f4   :  { %v3004_v18 = vrot.slane %v2957_v46, 1  ;;  %v3022_v8 = vrot.slane %v2996_v31, 1 }
0x10f5   :  { %v3007_v19 = vadd.f32 %v3003_v52, %v4908_v33 }
0x10f6   :  { %v3008_v1 = vadd.f32 %v3004_v18, %v4913_v6 }
0x10f7   :  { %v3377_v20 = vmul.f32 -1.442695, %v3007_v19 }
0x10f8   :  { %v3378_v21 = vmul.f32 -1.442695, %v3008_v1 }
0x10f9   :  { %4079 = vpow2.f32 %v3377_v20 }
0x10fa   :  { %4081 = vpow2.f32 %v3378_v21 }
0x1103   :  { %v4080_v3 = vpop.eup %4079 }
0x1104   :  { %v4082_v62 = vpop.eup %4081  ;;  %v3015_v4 = vadd.f32 1.0, %v4080_v3 }
0x1105   :  { %v3016_v7 = vadd.f32 1.0, %v4082_v62 }
0x1106   :  { %4083 = vrcp.f32 %v3015_v4 }
0x1107   :  { %4085 = vrcp.f32 %v3016_v7 }
0x1110   :  { %v4084_v9 = vpop.eup %4083 }
0x1111   :  { %v4086_v12 = vpop.eup %4085  ;;  %v3024_v13 = vmul.f32 %v4084_v9, %v3022_v8 }
0x1112   :  { %v3032_v33 = vmul.f32 %v4086_v12, %v3030_v10  ;;  %v3027_v14 = vsub.f32 1.0, %v4086_v12 }
0x1113   :  { %v3025_v6 = vadd.f32 %v3024_v13, %v4921_v17  ;;  %v3389_v17 = vld [vmem:[%s5175_s14] ss:$0 sm:$0xff] }
0x1115   :  { %4087 = vtanh.f32 %v3025_v6 }
0x111f   :  { %v4088_v15 = vpop.eup %4087 }
0x1120   :  { %v3028_v22 = vmul.f32 %v4088_v15, %v3027_v14 }
0x1122   :  { %v3033_v16 = vadd.f32 %v3032_v33, %v3028_v22 }
0x1124   :  { %3034 = vst.msk [vmem:[#allocation4] sm:$0x80] %vm1623_vm9, %v3033_v16  ;;  %3035 = vst.msk [vmem:[#allocation5 - $0x7] sm:$0x80] %vm1623_vm9, %v3033_v16 }
0x112b   :  { %v3046_v11 = vld [vmem:[#allocation5] sm:$0xff]  ;;  %v3036_v53 = vld [vmem:[#allocation4] sm:$0xff] }
0x112c   :  { %v3047_v47 = vpack.c.bf16 %v3046_v11, %v3046_v11  ;;  %v3037_v54 = vpack.c.bf16 %v3036_v53, %v3036_v53 }
0x112e   :  { %3774 = vmatmul.mubr.msk.bf16.vlgmr.msra.gmra.mrb[80].mxu0 %vm653_vm2, %v3047_v47  ;;  %3786 = vmatmul.mubr.msk.bf16.vlgmr.msra.gmra.mrb[80].mxu1 %vm653_vm2, %v3037_v54 }
0x1201   :  { %v3117_v55 = vpop.f32.mrb[80].mxu0  ;;  %v3184_v49 = vpop.f32.mrb[80].mxu1 }
0x1202   :  { %v3185_v56 = vadd.f32 %v3184_v49, %v3117_v55  ;;  %v3775_v57 = vpop.f32.mrb[81].mxu0  ;;  %v3787_v58 = vpop.f32.mrb[81].mxu1 }
0x1203   :  { %v3120_v60 = vpop.f32.mrb[82].mxu0  ;;  %v3187_v59 = vpop.f32.mrb[82].mxu1 }
0x1204   :  { %v3197_v24 = vadd.f32 %v3389_v17, %v3185_v56  ;;  %v3776_v61 = vpop.f32.mrb[83].mxu0  ;;  %v3788_v25 = vpop.f32.mrb[83].mxu1 }
0x1206   :  { %v3390_v28 = vmul.f32 -1.442695, %v3197_v24 }
0x1208   :  { %4089 = vpow2.f32 %v3390_v28 }
0x1212   :  { %v4090_v27 = vpop.eup %4089 }
0x1213   :  { %v3201_v63 = vadd.f32 1.0, %v4090_v27 }
0x1215   :  { %4091 = vrcp.f32 %v3201_v63 }
0x121f   :  { %v4092_v29 = vpop.eup %4091 }
0x1220   :  { %3204 = vst [vmem:[#allocation6] sm:$0xff] %v4092_v29 }
0x1221   :  { %4104 = shalt.err (!%p4101_p4)
}
0x1222   :  { %s4105_s4 = scalar_lea.hbm %s5176_s15, 128 }
0x1223   :  { %p4106_p5 = scmp.ne.s32.totalorder %s5176_s15, %s4105_s4  ;;  %p4109_p6 = scmp.lt.u32.totalorder %s4105_s4, %s5176_s15 }
0x1225   :  { %p4111_p7 = pnand %p4109_p6, %p4106_p5 }
0x1227   :  { %4114 = shalt.err (!%p4111_p7)
}
0x1228   :  { %3214 = dma.vmem_to_hbm [thread:$0]  %s3212_s26, 128, %s5176_s15, [#allocation7]  }
0x1229   :  { %4115 = dma.done.wait [#allocation7], 128  }
0x122a   :  { %4116 = vsyncadd [#allocation7], 4294967168 }
0x122b   :  { %3218 = vsyncpa [#allocation7], 1 }

</bundles_post_ra>
